<compile_context>
chip_gen: v5e
topology: v5e:2x2
jax: 0.10.0
libtpu: 0.0.40
codegen_flags: <defaults>
</compile_context>

<pallas_src>
import math
import functools

import jax
import jax.numpy as jnp
from jax.experimental import pallas as pl
from jax.experimental.pallas import tpu as pltpu

LATENT = 20
IN_DIM = 784          # fed / stored at true width (no 896 pad); tail stores masked
HID_DIM = 400
HID_PAD = 512         # 4 * 128 (hidden width is weight-side only, keep lane-padded)
LAT_PAD = 128         # mu in lanes [0:128), log_var in lanes [128:256) of fused head


def _round_up(n, m):
    return (n + m - 1) // m * m


# ----------------------------------------------------------------------------
# Kernel
# ----------------------------------------------------------------------------
def vae_kernel(x_ref, eps_ref,
               we_ref, be_ref,
               wmv_ref, bmv_ref,
               wd1_ref, bd1_ref,
               wd2_ref, bd2_ref,
               recon_ref, muvar_ref):
    cdt = we_ref.dtype                      # MXU operand dtype (bf16 by default)
    x = x_ref[...]                          # (TB, 784) f32

    # ---- encode: h1 = relu(x @ We + be) --------------------------------------
    h1 = jnp.dot(x.astype(cdt), we_ref[...],
                 preferred_element_type=jnp.float32) + be_ref[...]
    h1 = jnp.maximum(h1, 0.0)               # (TB, HID_PAD) f32

    # ---- fused mu / log_var heads: one lane-dense (TB, 256) matmul -----------
    muvar = jnp.dot(h1.astype(cdt), wmv_ref[...],
                    preferred_element_type=jnp.float32) + bmv_ref[...]
    mu = muvar[:, :LAT_PAD]                 # 128-aligned lane slice

    # ---- reparameterize (faithful to reference: std = exp(0.5 * mu)) ---------
    std = jnp.exp(0.5 * mu)                 # padded mu lanes are 0 -> exp(0) = 1
    z = eps_ref[...] * std + mu             # padded eps lanes are 0 -> z stays 0

    # ---- decode: sigmoid(relu(z @ Wd1 + bd1) @ Wd2 + bd2) ---------------------
    h2 = jnp.dot(z.astype(cdt), wd1_ref[...],
                 preferred_element_type=jnp.float32) + bd1_ref[...]
    h2 = jnp.maximum(h2, 0.0)               # (TB, HID_PAD) f32
    logits = jnp.dot(h2.astype(cdt), wd2_ref[...],
                     preferred_element_type=jnp.float32) + bd2_ref[...]

    # sigmoid in f32 (v5e has no bf16 EUP), single cast feeding the bf16 store.
    recon_ref[...] = jax.nn.sigmoid(logits).astype(recon_ref.dtype)
    muvar_ref[...] = muvar


# ----------------------------------------------------------------------------
# Parameter preparation (call once, outside the per-step forward)
# ----------------------------------------------------------------------------
def prepare_params(params, weight_dtype=jnp.bfloat16):
    """Pad params to kernel shapes and fuse the mu/var heads.

    Weights are cast to bf16 by default (f32 MXU accumulation is kept in the
    kernel); biases stay f32.  Pass weight_dtype=jnp.float32 for full-f32
    matmuls (then tighten the tolerance in the caller)."""
    def pad2(a, shape):
        return jnp.zeros(shape, jnp.float32).at[:a.shape[0], :a.shape[1]].set(a)

    we = pad2(params["we"], (IN_DIM, HID_PAD)).astype(weight_dtype)
    be = pad2(params["be"], (1, HID_PAD))

    wmv = jnp.zeros((HID_PAD, 2 * LAT_PAD), jnp.float32)
    wmv = wmv.at[:HID_DIM, :LATENT].set(params["wmu"])
    wmv = wmv.at[:HID_DIM, LAT_PAD:LAT_PAD + LATENT].set(params["wvar"])
    wmv = wmv.astype(weight_dtype)
    bmv = jnp.zeros((1, 2 * LAT_PAD), jnp.float32)
    bmv = bmv.at[:, :LATENT].set(params["bmu"])
    bmv = bmv.at[:, LAT_PAD:LAT_PAD + LATENT].set(params["bvar"])

    wd1 = pad2(params["wd1"], (LAT_PAD, HID_PAD)).astype(weight_dtype)
    bd1 = pad2(params["bd1"], (1, HID_PAD))
    wd2 = pad2(params["wd2"], (HID_PAD, IN_DIM)).astype(weight_dtype)
    bd2 = pad2(params["bd2"], (1, IN_DIM))
    return dict(we=we, be=be, wmv=wmv, bmv=bmv,
                wd1=wd1, bd1=bd1, wd2=wd2, bd2=bd2)


# ----------------------------------------------------------------------------
# Per-generation budget & batch-tile selection
# ----------------------------------------------------------------------------
_BUDGET_CACHE = None


def _tpu_budget():
    """(vmem_limit_bytes, max_block_b), sized per TPU generation."""
    global _BUDGET_CACHE
    if _BUDGET_CACHE is None:
        vmem_cap = 64 * 1024 * 1024                       # conservative default
        try:
            info = pltpu.get_tpu_info()
            vmem_cap = int(getattr(info, "vmem_capacity_bytes", vmem_cap))
        except Exception:
            pass
        if vmem_cap >= 100 * 1024 * 1024:                 # v5e / v6e: 128 MiB
            _BUDGET_CACHE = (100 * 1024 * 1024, 1024)
        else:                                             # v7x: 64 MiB
            _BUDGET_CACHE = (48 * 1024 * 1024, 512)
    return _BUDGET_CACHE


def _pick_tile(b, block_b):
    """Batch tile: single 16-aligned tile for small B (bf16 sublane packing);
    otherwise the largest 128-multiple <= block_b that pads B by < 128 rows."""
    if b <= block_b:
        return _round_up(max(b, 16), 16)
    block_b = max(128, _round_up(block_b, 128))
    for cand in range(block_b, 127, -128):
        if _round_up(b, cand) - b < 128:
            return cand
    return 128


# ----------------------------------------------------------------------------
# Forward wrapper
# ----------------------------------------------------------------------------
@functools.partial(jax.jit, static_argnames=("block_b",))
def vae_forward(x, eps, pparams, block_b=None):
    """x: (B, 1, 28, 28) or (B, 784) float32; eps: (B, 20) float32.

    Returns (reconstruction (B, 784) bf16, mu (B, 20) f32, log_var (B, 20) f32)."""
    vmem_limit, max_block_b = _tpu_budget()
    if block_b is None:
        block_b = max_block_b

    x2 = x.reshape(-1, IN_DIM).astype(jnp.float32)
    B = x2.shape[0]

    tb = _pick_tile(B, block_b)
    b_pad = _round_up(B, tb)
    grid = (b_pad // tb,)

    # Only the batch dim is ever padded (feature dims stay at true width);
    # eps is lane-padded to 128 so z / mu share lanes (tiny array, zero pad).
    if b_pad != B:
        x2 = jnp.pad(x2, ((0, b_pad - B), (0, 0)))
    epsp = jnp.zeros((b_pad, LAT_PAD), jnp.float32).at[:B, :LATENT].set(
        eps.astype(jnp.float32))

    def act_spec(cols):
        return pl.BlockSpec((tb, cols), lambda i: (i, 0))

    def w_spec(arr):
        # Constant index_map -> weights stay VMEM-resident across the grid.
        # TODO(synk): on v7x, pipeline_mode=pl.Buffered(1) here would reclaim the
        # redundant second buffer of these grid-invariant blocks (~2 MiB bf16).
        return pl.BlockSpec(arr.shape, lambda i: (0, 0))

    in_specs = [
        act_spec(IN_DIM),                          # x tile, true 784-lane width
        act_spec(LAT_PAD),                         # eps tile
        w_spec(pparams["we"]), w_spec(pparams["be"]),
        w_spec(pparams["wmv"]), w_spec(pparams["bmv"]),
        w_spec(pparams["wd1"]), w_spec(pparams["bd1"]),
        w_spec(pparams["wd2"]), w_spec(pparams["bd2"]),
    ]
    out_specs = [act_spec(IN_DIM), act_spec(2 * LAT_PAD)]
    out_shapes = (
        jax.ShapeDtypeStruct((b_pad, IN_DIM), jnp.bfloat16),      # recon (bf16)
        jax.ShapeDtypeStruct((b_pad, 2 * LAT_PAD), jnp.float32),  # mu || log_var
    )

    recon_p, muvar_p = pl.pallas_call(
        vae_kernel,
        out_shape=out_shapes,
        grid=grid,
        in_specs=in_specs,
        out_specs=out_specs,
        compiler_params=pltpu.CompilerParams(
            dimension_semantics=("parallel",),      # batch tiles are independent
            vmem_limit_bytes=vmem_limit),
    )(x2, epsp,
      pparams["we"], pparams["be"],
      pparams["wmv"], pparams["bmv"],
      pparams["wd1"], pparams["bd1"],
      pparams["wd2"], pparams["bd2"])

    recon = recon_p if b_pad == B else recon_p[:B]
    mu = muvar_p[:B, :LATENT]
    logvar = muvar_p[:B, LAT_PAD:LAT_PAD + LATENT]
    return recon, mu, logvar


# ----------------------------------------------------------------------------
# Init + pure-JAX reference
# ----------------------------------------------------------------------------
def init_params(key):
    """Deterministic PyTorch-style init: U(-1/sqrt(fan_in), 1/sqrt(fan_in)).
    Weights stored pre-transposed as (in_features, out_features)."""
    def linear(k, fan_in, fan_out):
        kw, kb = jax.random.split(k)
        bound = 1.0 / math.sqrt(fan_in)
        w = jax.random.uniform(kw, (fan_in, fan_out), jnp.float32, -bound, bound)
        b = jax.random.uniform(kb, (1, fan_out), jnp.float32, -bound, bound)
        return w, b

    ks = jax.random.split(key, 5)
    we, be = linear(ks[0], IN_DIM, HID_DIM)
    wmu, bmu = linear(ks[1], HID_DIM, LATENT)
    wvar, bvar = linear(ks[2], HID_DIM, LATENT)
    wd1, bd1 = linear(ks[3], LATENT, HID_DIM)
    wd2, bd2 = linear(ks[4], HID_DIM, IN_DIM)
    return dict(we=we, be=be, wmu=wmu, bmu=bmu, wvar=wvar, bvar=bvar,
                wd1=wd1, bd1=bd1, wd2=wd2, bd2=bd2)


def vae_forward_ref(x, eps, p):
    """Pure-JAX f32 reference (unpadded) for correctness checking."""
    x2 = x.reshape(-1, IN_DIM).astype(jnp.float32)
    h1 = jnp.maximum(x2 @ p["we"] + p["be"], 0.0)
    mu = h1 @ p["wmu"] + p["bmu"]
    logvar = h1 @ p["wvar"] + p["bvar"]
    z = eps * jnp.exp(0.5 * mu) + mu          # reference quirk: uses mu, not logvar
    h2 = jnp.maximum(z @ p["wd1"] + p["bd1"], 0.0)
    recon = jax.nn.sigmoid(h2 @ p["wd2"] + p["bd2"])
    return recon, mu, logvar


if __name__ == "__main__":
    key = jax.random.PRNGKey(0)
    k_params, k_x, k_eps = jax.random.split(key, 3)

    params = init_params(k_params)
    pparams = prepare_params(params)            # bf16 MXU operands by default

    B = 2
    x = jax.random.uniform(k_x, (B, 1, 28, 28), jnp.float32)   # MNIST-like input
    eps = jax.random.normal(k_eps, (B, LATENT), jnp.float32)

    recon, mu, logvar = vae_forward(x, eps, pparams)
    jax.block_until_ready((recon, mu, logvar))

    # sanity check against the pure-JAX f32 reference (bf16-operand tolerance)
    r_ref, mu_ref, lv_ref = vae_forward_ref(x, eps, params)
    assert recon.shape == (B, IN_DIM) and recon.dtype == jnp.bfloat16
    assert mu.shape == (B, LATENT) and logvar.shape == (B, LATENT)
    assert jnp.allclose(recon.astype(jnp.float32), r_ref, atol=2e-2)
    assert jnp.allclose(mu, mu_ref, atol=2e-2)
    assert jnp.allclose(logvar, lv_ref, atol=2e-2)

    print("KERNEL_OK")
</pallas_src>

<mosaic_0001>
module attributes {stable_mosaic.version = 11 : i64} {
  func.func @vae_kernel(%arg0: i32, %arg1: memref<16x784xf32, #tpu.memory_space<vmem>>, %arg2: memref<16x128xf32, #tpu.memory_space<vmem>>, %arg3: memref<784x512xbf16, #tpu.memory_space<vmem>>, %arg4: memref<1x512xf32, #tpu.memory_space<vmem>>, %arg5: memref<512x256xbf16, #tpu.memory_space<vmem>>, %arg6: memref<1x256xf32, #tpu.memory_space<vmem>>, %arg7: memref<128x512xbf16, #tpu.memory_space<vmem>>, %arg8: memref<1x512xf32, #tpu.memory_space<vmem>>, %arg9: memref<512x784xbf16, #tpu.memory_space<vmem>>, %arg10: memref<1x784xf32, #tpu.memory_space<vmem>>, %arg11: memref<16x784xbf16, #tpu.memory_space<vmem>>, %arg12: memref<16x256xf32, #tpu.memory_space<vmem>>) attributes {dimension_semantics = [#tpu.dimension_semantics<parallel>], iteration_bounds = array<i64: 1>, scalar_prefetch = 0 : i64, scratch_operands = 0 : i64, tpu.core_type = #tpu.core_type<tc>, window_params = [{transform_indices = @transform_0, window_bounds = array<i64: 16, 784>}, {transform_indices = @transform_1, window_bounds = array<i64: 16, 128>}, {pipeline_mode = #tpu.pipeline_mode<synchronous>, transform_indices = @transform_2, window_bounds = array<i64: 784, 512>}, {pipeline_mode = #tpu.pipeline_mode<synchronous>, transform_indices = @transform_3, window_bounds = array<i64: 1, 512>}, {pipeline_mode = #tpu.pipeline_mode<synchronous>, transform_indices = @transform_4, window_bounds = array<i64: 512, 256>}, {pipeline_mode = #tpu.pipeline_mode<synchronous>, transform_indices = @transform_5, window_bounds = array<i64: 1, 256>}, {pipeline_mode = #tpu.pipeline_mode<synchronous>, transform_indices = @transform_6, window_bounds = array<i64: 128, 512>}, {pipeline_mode = #tpu.pipeline_mode<synchronous>, transform_indices = @transform_7, window_bounds = array<i64: 1, 512>}, {pipeline_mode = #tpu.pipeline_mode<synchronous>, transform_indices = @transform_8, window_bounds = array<i64: 512, 784>}, {pipeline_mode = #tpu.pipeline_mode<synchronous>, transform_indices = @transform_9, window_bounds = array<i64: 1, 784>}, {transform_indices = @transform_10, window_bounds = array<i64: 16, 784>}, {transform_indices = @transform_11, window_bounds = array<i64: 16, 256>}]} {
    %c0 = arith.constant 0 : index
    %c0_0 = arith.constant 0 : index
    %0 = vector.load %arg1[%c0, %c0_0] : memref<16x784xf32, #tpu.memory_space<vmem>>, vector<16x784xf32>
    %1 = arith.truncf %0 : vector<16x784xf32> to vector<16x784xbf16>
    %c0_1 = arith.constant 0 : index
    %c0_2 = arith.constant 0 : index
    %2 = vector.load %arg3[%c0_1, %c0_2] : memref<784x512xbf16, #tpu.memory_space<vmem>>, vector<784x512xbf16>
    %cst = arith.constant dense<0.000000e+00> : vector<16x512xf32>
    %3 = tpu.matmul %1, %2, %cst {dimension_numbers = #tpu.dot_dimension_numbers<[1], [0], [0], [1], [0, 0, 1, 1], [], []>} : vector<16x784xbf16>, vector<784x512xbf16>, vector<16x512xf32> -> vector<16x512xf32>
    %c0_3 = arith.constant 0 : index
    %c0_4 = arith.constant 0 : index
    %4 = vector.load %arg4[%c0_3, %c0_4] : memref<1x512xf32, #tpu.memory_space<vmem>>, vector<1x512xf32>
    %5 = vector.broadcast %4 : vector<1x512xf32> to vector<16x512xf32>
    %6 = arith.addf %3, %5 : vector<16x512xf32>
    %cst_5 = arith.constant 0.000000e+00 : f32
    %7 = vector.broadcast %cst_5 : f32 to vector<16x512xf32>
    %8 = arith.maximumf %6, %7 : vector<16x512xf32>
    %9 = arith.truncf %8 : vector<16x512xf32> to vector<16x512xbf16>
    %c0_6 = arith.constant 0 : index
    %c0_7 = arith.constant 0 : index
    %10 = vector.load %arg5[%c0_6, %c0_7] : memref<512x256xbf16, #tpu.memory_space<vmem>>, vector<512x256xbf16>
    %cst_8 = arith.constant dense<0.000000e+00> : vector<16x256xf32>
    %11 = tpu.matmul %9, %10, %cst_8 {dimension_numbers = #tpu.dot_dimension_numbers<[1], [0], [0], [1], [0, 0, 1, 1], [], []>} : vector<16x512xbf16>, vector<512x256xbf16>, vector<16x256xf32> -> vector<16x256xf32>
    %c0_9 = arith.constant 0 : index
    %c0_10 = arith.constant 0 : index
    %12 = vector.load %arg6[%c0_9, %c0_10] : memref<1x256xf32, #tpu.memory_space<vmem>>, vector<1x256xf32>
    %13 = vector.broadcast %12 : vector<1x256xf32> to vector<16x256xf32>
    %14 = arith.addf %11, %13 : vector<16x256xf32>
    %15 = vector.extract_strided_slice %14 {offsets = [0, 0], sizes = [16, 128], strides = [1, 1]} : vector<16x256xf32> to vector<16x128xf32>
    %cst_11 = arith.constant 5.000000e-01 : f32
    %16 = vector.broadcast %cst_11 : f32 to vector<16x128xf32>
    %17 = arith.mulf %16, %15 : vector<16x128xf32>
    %18 = math.exp %17 : vector<16x128xf32>
    %c0_12 = arith.constant 0 : index
    %c0_13 = arith.constant 0 : index
    %19 = vector.load %arg2[%c0_12, %c0_13] : memref<16x128xf32, #tpu.memory_space<vmem>>, vector<16x128xf32>
    %20 = arith.mulf %19, %18 : vector<16x128xf32>
    %21 = arith.addf %20, %15 : vector<16x128xf32>
    %22 = arith.truncf %21 : vector<16x128xf32> to vector<16x128xbf16>
    %c0_14 = arith.constant 0 : index
    %c0_15 = arith.constant 0 : index
    %23 = vector.load %arg7[%c0_14, %c0_15] : memref<128x512xbf16, #tpu.memory_space<vmem>>, vector<128x512xbf16>
    %cst_16 = arith.constant dense<0.000000e+00> : vector<16x512xf32>
    %24 = tpu.matmul %22, %23, %cst_16 {dimension_numbers = #tpu.dot_dimension_numbers<[1], [0], [0], [1], [0, 0, 1, 1], [], []>} : vector<16x128xbf16>, vector<128x512xbf16>, vector<16x512xf32> -> vector<16x512xf32>
    %c0_17 = arith.constant 0 : index
    %c0_18 = arith.constant 0 : index
    %25 = vector.load %arg8[%c0_17, %c0_18] : memref<1x512xf32, #tpu.memory_space<vmem>>, vector<1x512xf32>
    %26 = vector.broadcast %25 : vector<1x512xf32> to vector<16x512xf32>
    %27 = arith.addf %24, %26 : vector<16x512xf32>
    %cst_19 = arith.constant 0.000000e+00 : f32
    %28 = vector.broadcast %cst_19 : f32 to vector<16x512xf32>
    %29 = arith.maximumf %27, %28 : vector<16x512xf32>
    %30 = arith.truncf %29 : vector<16x512xf32> to vector<16x512xbf16>
    %c0_20 = arith.constant 0 : index
    %c0_21 = arith.constant 0 : index
    %31 = vector.load %arg9[%c0_20, %c0_21] : memref<512x784xbf16, #tpu.memory_space<vmem>>, vector<512x784xbf16>
    %cst_22 = arith.constant dense<0.000000e+00> : vector<16x784xf32>
    %32 = tpu.matmul %30, %31, %cst_22 {dimension_numbers = #tpu.dot_dimension_numbers<[1], [0], [0], [1], [0, 0, 1, 1], [], []>} : vector<16x512xbf16>, vector<512x784xbf16>, vector<16x784xf32> -> vector<16x784xf32>
    %c0_23 = arith.constant 0 : index
    %c0_24 = arith.constant 0 : index
    %33 = vector.load %arg10[%c0_23, %c0_24] : memref<1x784xf32, #tpu.memory_space<vmem>>, vector<1x784xf32>
    %34 = vector.broadcast %33 : vector<1x784xf32> to vector<16x784xf32>
    %35 = arith.addf %32, %34 : vector<16x784xf32>
    %36 = arith.negf %35 : vector<16x784xf32>
    %37 = math.exp %36 : vector<16x784xf32>
    %cst_25 = arith.constant 1.000000e+00 : f32
    %38 = vector.broadcast %cst_25 : f32 to vector<16x784xf32>
    %39 = arith.addf %38, %37 : vector<16x784xf32>
    %40 = arith.divf %38, %39 : vector<16x784xf32>
    %41 = arith.truncf %40 : vector<16x784xf32> to vector<16x784xbf16>
    %c0_26 = arith.constant 0 : index
    %c0_27 = arith.constant 0 : index
    %42 = vector.load %arg11[%c0_26, %c0_27] : memref<16x784xbf16, #tpu.memory_space<vmem>>, vector<16x784xbf16>
    tpu.vector_store %arg11[%c0_26, %c0_27], %41 {strides = array<i32>} : memref<16x784xbf16, #tpu.memory_space<vmem>>, vector<16x784xbf16>,
    %c0_28 = arith.constant 0 : index
    %c0_29 = arith.constant 0 : index
    %43 = vector.load %arg12[%c0_28, %c0_29] : memref<16x256xf32, #tpu.memory_space<vmem>>, vector<16x256xf32>
    tpu.vector_store %arg12[%c0_28, %c0_29], %14 {strides = array<i32>} : memref<16x256xf32, #tpu.memory_space<vmem>>, vector<16x256xf32>,
    return
  }
  func.func @transform_0(%arg0: i32) -> (i32, i32) {
    %c0_i32 = arith.constant 0 : i32
    %c0_i32_0 = arith.constant 0 : i32
    return %arg0, %c0_i32 : i32, i32
  }
  func.func @transform_1(%arg0: i32) -> (i32, i32) {
    %c0_i32 = arith.constant 0 : i32
    %c0_i32_0 = arith.constant 0 : i32
    return %arg0, %c0_i32 : i32, i32
  }
  func.func @transform_2(%arg0: i32) -> (i32, i32) {
    %c0_i32 = arith.constant 0 : i32
    %c0_i32_0 = arith.constant 0 : i32
    %c0_i32_1 = arith.constant 0 : i32
    return %c0_i32, %c0_i32_0 : i32, i32
  }
  func.func @transform_3(%arg0: i32) -> (i32, i32) {
    %c0_i32 = arith.constant 0 : i32
    %c0_i32_0 = arith.constant 0 : i32
    %c0_i32_1 = arith.constant 0 : i32
    return %c0_i32, %c0_i32_0 : i32, i32
  }
  func.func @transform_4(%arg0: i32) -> (i32, i32) {
    %c0_i32 = arith.constant 0 : i32
    %c0_i32_0 = arith.constant 0 : i32
    %c0_i32_1 = arith.constant 0 : i32
    return %c0_i32, %c0_i32_0 : i32, i32
  }
  func.func @transform_5(%arg0: i32) -> (i32, i32) {
    %c0_i32 = arith.constant 0 : i32
    %c0_i32_0 = arith.constant 0 : i32
    %c0_i32_1 = arith.constant 0 : i32
    return %c0_i32, %c0_i32_0 : i32, i32
  }
  func.func @transform_6(%arg0: i32) -> (i32, i32) {
    %c0_i32 = arith.constant 0 : i32
    %c0_i32_0 = arith.constant 0 : i32
    %c0_i32_1 = arith.constant 0 : i32
    return %c0_i32, %c0_i32_0 : i32, i32
  }
  func.func @transform_7(%arg0: i32) -> (i32, i32) {
    %c0_i32 = arith.constant 0 : i32
    %c0_i32_0 = arith.constant 0 : i32
    %c0_i32_1 = arith.constant 0 : i32
    return %c0_i32, %c0_i32_0 : i32, i32
  }
  func.func @transform_8(%arg0: i32) -> (i32, i32) {
    %c0_i32 = arith.constant 0 : i32
    %c0_i32_0 = arith.constant 0 : i32
    %c0_i32_1 = arith.constant 0 : i32
    return %c0_i32, %c0_i32_0 : i32, i32
  }
  func.func @transform_9(%arg0: i32) -> (i32, i32) {
    %c0_i32 = arith.constant 0 : i32
    %c0_i32_0 = arith.constant 0 : i32
    %c0_i32_1 = arith.constant 0 : i32
    return %c0_i32, %c0_i32_0 : i32, i32
  }
  func.func @transform_10(%arg0: i32) -> (i32, i32) {
    %c0_i32 = arith.constant 0 : i32
    %c0_i32_0 = arith.constant 0 : i32
    return %arg0, %c0_i32 : i32, i32
  }
  func.func @transform_11(%arg0: i32) -> (i32, i32) {
    %c0_i32 = arith.constant 0 : i32
    %c0_i32_0 = arith.constant 0 : i32
    return %arg0, %c0_i32 : i32, i32
  }
}

</mosaic_0001>

<bundles_post_ra>
// kernel: vae_forward.1
= control target key start
LH: loop header
LB: loop body
LE: loop exit
PB: predicated region body
PF: predicated region fallthrough
CT: control target
= control target key end

     0   :  { %vm1245_vm0 = vcmask 130048   ;;  %s10686_s2 = inlined_call_operand.vmem [shape: bf16[784,512], index: 2, kind: input, shape index: {}]   ;;  %s10687_s0 = inlined_call_operand.vmem [shape: f32[16,784], index: 0, kind: input, shape index: {}]   ;;  %s10688_s4 = inlined_call_operand.vmem [shape: bf16[512,256], index: 4, kind: input, shape index: {}]   ;;  %s10689_s3 = inlined_call_operand.vmem [shape: f32[1,512], index: 3, kind: input, shape index: {}]   ;;  %s10690_s6 = inlined_call_operand.vmem [shape: bf16[128,512], index: 6, kind: input, shape index: {}]   ;;  %s10691_s5 = inlined_call_operand.vmem [shape: f32[1,256], index: 5, kind: input, shape index: {}]   ;;  %s10692_s8 = inlined_call_operand.vmem [shape: bf16[512,784], index: 8, kind: input, shape index: {}]   ;;  %s10693_s11 = inlined_call_operand.vmem [shape: f32[16,256], index: 11, kind: output, shape index: {1}]   ;;  %s10694_s1 = inlined_call_operand.vmem [shape: f32[16,128], index: 1, kind: input, shape index: {}]   ;;  %s10695_s7 = inlined_call_operand.vmem [shape: f32[1,512], index: 7, kind: input, shape index: {}]   ;;  %s10696_s9 = inlined_call_operand.vmem [shape: f32[1,784], index: 9, kind: input, shape index: {}]   ;;  %s10697_s10 = inlined_call_operand.vmem [shape: bf16[16,784], index: 10, kind: output, shape index: {0}]  }
   0x1   :  { %v4663_v0 = vld [vmem:[%s10686_s2 + $0xe0] sm:$0xf]  ;;  %v6661_v1 = vld [vmem:[%s10686_s2 + $0xec] sm:$0xf0] }
   0x2   :  { %v4791_v2 = vld [vmem:[%s10686_s2 + $0x1e0] sm:$0xf]  ;;  %v4664_v3 = vor.u32 %v6661_v1, %v4663_v0  ;;  %v6693_v4 = vld [vmem:[%s10686_s2 + $0x1ec] sm:$0xf0] }
   0x3   :  { %v4919_v5 = vld [vmem:[%s10686_s2 + $0x2e0] sm:$0xf]  ;;  %v6725_v6 = vld [vmem:[%s10686_s2 + $0x2ec] sm:$0xf0]  ;;  %v4792_v7 = vor.u32 %v6693_v4, %v4791_v2 }
   0x4   :  { %v4920_v8 = vor.u32 %v6725_v6, %v4919_v5  ;;  %v5047_v9 = vld [vmem:[%s10686_s2 + $0x3e0] sm:$0xf]  ;;  %v6757_v10 = vld [vmem:[%s10686_s2 + $0x3ec] sm:$0xf0]  ;;  %1249 = vmatpush.bf16.msra.mxu0 %v4664_v3 }
   0x5   :  { %v4647_v11 = vld [vmem:[%s10686_s2 + $0xc0] sm:$0xf]  ;;  %v5048_v12 = vor.u32 %v6757_v10, %v5047_v9  ;;  %v6657_v13 = vld [vmem:[%s10686_s2 + $0xcc] sm:$0xf0]  ;;  %1263 = vmatpush.bf16.msra.mxu1 %v4792_v7 }
   0x6   :  { %v4775_v14 = vld [vmem:[%s10686_s2 + $0x1c0] sm:$0xf]  ;;  %v6689_v15 = vld [vmem:[%s10686_s2 + $0x1cc] sm:$0xf0]  ;;  %1277 = vmatpush.bf16.msra.mxu2 %v4920_v8  ;;  %v4648_v16 = vor.u32 %v6657_v13, %v4647_v11 }
   0x7   :  { %v4776_v17 = vor.u32 %v6689_v15, %v4775_v14  ;;  %v4903_v18 = vld [vmem:[%s10686_s2 + $0x2c0] sm:$0xf]  ;;  %v6721_v19 = vld [vmem:[%s10686_s2 + $0x2cc] sm:$0xf0]  ;;  %1291 = vmatpush.bf16.msra.mxu3 %v5048_v12 }
   0x8   :  { %v5031_v20 = vld [vmem:[%s10686_s2 + $0x3c0] sm:$0xf]  ;;  %v4904_v21 = vor.u32 %v6721_v19, %v4903_v18  ;;  %v6753_v22 = vld [vmem:[%s10686_s2 + $0x3cc] sm:$0xf0]  ;;  %1250 = vmatpush.bf16.msra.mxu0 %v4648_v16 }
   0x9   :  { %v4631_v23 = vld [vmem:[%s10686_s2 + $0xa0] sm:$0xf]  ;;  %v6653_v24 = vld [vmem:[%s10686_s2 + $0xac] sm:$0xf0]  ;;  %v5032_v25 = vor.u32 %v6753_v22, %v5031_v20  ;;  %1264 = vmatpush.bf16.msra.mxu1 %v4776_v17 }
   0xa   :  { %v4759_v26 = vld [vmem:[%s10686_s2 + $0x1a0] sm:$0xf]  ;;  %v6685_v27 = vld [vmem:[%s10686_s2 + $0x1ac] sm:$0xf0]  ;;  %v4632_v29 = vor.u32 %v6653_v24, %v4631_v23  ;;  %1278 = vmatpush.bf16.msra.mxu2 %v4904_v21 }
   0xb   :  { %v4887_v28 = vld [vmem:[%s10686_s2 + $0x2a0] sm:$0xf]  ;;  %v6717_v30 = vld [vmem:[%s10686_s2 + $0x2ac] sm:$0xf0]  ;;  %v4760_v33 = vor.u32 %v6685_v27, %v4759_v26  ;;  %1292 = vmatpush.bf16.msra.mxu3 %v5032_v25 }
   0xc   :  { %v5015_v31 = vld [vmem:[%s10686_s2 + $0x3a0] sm:$0xf]  ;;  %v6749_v32 = vld [vmem:[%s10686_s2 + $0x3ac] sm:$0xf0]  ;;  %v4888_v34 = vor.u32 %v6717_v30, %v4887_v28  ;;  %1251 = vmatpush.bf16.msra.mxu0 %v4632_v29 }
   0xd   :  { %v4615_v35 = vld [vmem:[%s10686_s2 + $0x80] sm:$0xf]  ;;  %v6649_v36 = vld [vmem:[%s10686_s2 + $0x8c] sm:$0xf0]  ;;  %v5016_v38 = vor.u32 %v6749_v32, %v5015_v31  ;;  %1265 = vmatpush.bf16.msra.mxu1 %v4760_v33  ;;  %v6659_v32 = vld [vmem:[%s10686_s2 + $0xe4] sm:$0xf] }
   0xe   :  { %v4743_v37 = vld [vmem:[%s10686_s2 + $0x180] sm:$0xf]  ;;  %v6681_v39 = vld [vmem:[%s10686_s2 + $0x18c] sm:$0xf0]  ;;  %v4616_v44 = vor.u32 %v6649_v36, %v4615_v35  ;;  %1279 = vmatpush.bf16.msra.mxu2 %v4888_v34  ;;  %v4665_v33 = vld [vmem:[%s10686_s2 + $0xf0] sm:$0xf0] }
   0xf   :  { %v4871_v40 = vld [vmem:[%s10686_s2 + $0x280] sm:$0xf]  ;;  %v6713_v41 = vld [vmem:[%s10686_s2 + $0x28c] sm:$0xf0]  ;;  %v4744_v45 = vor.u32 %v6681_v39, %v4743_v37  ;;  %1293 = vmatpush.bf16.msra.mxu3 %v5016_v38  ;;  %v47_v36 = vld [vmem:[%s10687_s0 + $0x48] sm:$0xff] }
  0x10   :  { %v4999_v42 = vld [vmem:[%s10686_s2 + $0x380] sm:$0xf]  ;;  %v6745_v43 = vld [vmem:[%s10686_s2 + $0x38c] sm:$0xf0]  ;;  %v4872_v46 = vor.u32 %v6713_v41, %v4871_v40  ;;  %1252 = vmatpush.bf16.msra.mxu0 %v4616_v44  ;;  %v6691_v41 = vld [vmem:[%s10686_s2 + $0x1e4] sm:$0xf] }
  0x11   :  { %v4599_v47 = vld [vmem:[%s10686_s2 + $0x60] sm:$0xf]  ;;  %v6645_v48 = vld [vmem:[%s10686_s2 + $0x6c] sm:$0xf0]  ;;  %v5000_v50 = vor.u32 %v6745_v43, %v4999_v42  ;;  %1266 = vmatpush.bf16.msra.mxu1 %v4744_v45  ;;  %v45_v43 = vld [vmem:[%s10687_s0 + $0x38] sm:$0xff] }
  0x12   :  { %v4727_v49 = vld [vmem:[%s10686_s2 + $0x160] sm:$0xf]  ;;  %v6677_v51 = vld [vmem:[%s10686_s2 + $0x16c] sm:$0xf0]  ;;  %v4600_v56 = vor.u32 %v6645_v48, %v4599_v47  ;;  %1280 = vmatpush.bf16.msra.mxu2 %v4872_v46  ;;  %v4793_v46 = vld [vmem:[%s10686_s2 + $0x1f0] sm:$0xf0] }
  0x13   :  { %v4855_v52 = vld [vmem:[%s10686_s2 + $0x260] sm:$0xf]  ;;  %v6709_v53 = vld [vmem:[%s10686_s2 + $0x26c] sm:$0xf0]  ;;  %v4728_v57 = vor.u32 %v6677_v51, %v4727_v49  ;;  %1294 = vmatpush.bf16.msra.mxu3 %v5000_v50  ;;  %v41_v47 = vld [vmem:[%s10687_s0 + $0x18] sm:$0xff]  ;;  %v4668_v50 = vor.u32 %v6659_v32, %v4665_v33 }
  0x14   :  { %v4983_v54 = vld [vmem:[%s10686_s2 + $0x360] sm:$0xf]  ;;  %v6741_v55 = vld [vmem:[%s10686_s2 + $0x36c] sm:$0xf0]  ;;  %v4856_v58 = vor.u32 %v6709_v53, %v4855_v52  ;;  %1253 = vmatpush.bf16.msra.mxu0 %v4600_v56 }
  0x15   :  { %v4583_v59 = vld [vmem:[%s10686_s2 + $0x40] sm:$0xf]  ;;  %v6641_v60 = vld [vmem:[%s10686_s2 + $0x4c] sm:$0xf0]  ;;  %v4984_v62 = vor.u32 %v6741_v55, %v4983_v54  ;;  %1267 = vmatpush.bf16.msra.mxu1 %v4728_v57  ;;  %v6655_v57 = vld [vmem:[%s10686_s2 + $0xc4] sm:$0xf] }
  0x16   :  { %v4711_v61 = vld [vmem:[%s10686_s2 + $0x140] sm:$0xf]  ;;  %v6673_v63 = vld [vmem:[%s10686_s2 + $0x14c] sm:$0xf0]  ;;  %v4584_v4 = vor.u32 %v6641_v60, %v4583_v59  ;;  %1281 = vmatpush.bf16.msra.mxu2 %v4856_v58  ;;  %v4649_v58 = vld [vmem:[%s10686_s2 + $0xd0] sm:$0xf0] }
  0x17   :  { %v4839_v0 = vld [vmem:[%s10686_s2 + $0x240] sm:$0xf]  ;;  %v6705_v1 = vld [vmem:[%s10686_s2 + $0x24c] sm:$0xf0]  ;;  %v4712_v6 = vor.u32 %v6673_v63, %v4711_v61  ;;  %1295 = vmatpush.bf16.msra.mxu3 %v4984_v62  ;;  %v39_v61 = vld [vmem:[%s10687_s0 + $0x8] sm:$0xff]  ;;  %v4796_v63 = vor.u32 %v6691_v41, %v4793_v46 }
  0x18   :  { %v4967_v2 = vld [vmem:[%s10686_s2 + $0x340] sm:$0xf]  ;;  %v6737_v3 = vld [vmem:[%s10686_s2 + $0x34c] sm:$0xf0]  ;;  %v4840_v7 = vor.u32 %v6705_v1, %v4839_v0  ;;  %1254 = vmatpush.bf16.msra.mxu0 %v4584_v4  ;;  %v6687_v1 = vld [vmem:[%s10686_s2 + $0x1c4] sm:$0xf]  ;;  %v4652_v4 = vor.u32 %v6655_v57, %v4649_v58 }
  0x19   :  { %v4567_v5 = vld [vmem:[%s10686_s2 + $0x20] sm:$0xf]  ;;  %v6637_v8 = vld [vmem:[%s10686_s2 + $0x2c] sm:$0xf0]  ;;  %v4968_v11 = vor.u32 %v6737_v3, %v4967_v2  ;;  %1268 = vmatpush.bf16.msra.mxu1 %v4712_v6  ;;  %v4777_v2 = vld [vmem:[%s10686_s2 + $0x1d0] sm:$0xf0] }
  0x1a   :  { %v4695_v9 = vld [vmem:[%s10686_s2 + $0x120] sm:$0xf]  ;;  %v6669_v10 = vld [vmem:[%s10686_s2 + $0x12c] sm:$0xf0]  ;;  %v4568_v18 = vor.u32 %v6637_v8, %v4567_v5  ;;  %1282 = vmatpush.bf16.msra.mxu2 %v4840_v7  ;;  %v4729_v41 = vld [vmem:[%s10686_s2 + $0x170] sm:$0xf0] }
  0x1b   :  { %v4823_v12 = vld [vmem:[%s10686_s2 + $0x220] sm:$0xf]  ;;  %v6701_v13 = vld [vmem:[%s10686_s2 + $0x22c] sm:$0xf0]  ;;  %v4696_v23 = vor.u32 %v6669_v10, %v4695_v9  ;;  %1296 = vmatpush.bf16.msra.mxu3 %v4968_v11  ;;  %v6651_v10 = vld [vmem:[%s10686_s2 + $0xa4] sm:$0xf] }
  0x1c   :  { %v4951_v14 = vld [vmem:[%s10686_s2 + $0x320] sm:$0xf]  ;;  %v6733_v15 = vld [vmem:[%s10686_s2 + $0x32c] sm:$0xf0]  ;;  %v4824_v24 = vor.u32 %v6701_v13, %v4823_v12  ;;  %1255 = vmatpush.bf16.msra.mxu0 %v4568_v18  ;;  %v4633_v11 = vld [vmem:[%s10686_s2 + $0xb0] sm:$0xf0]  ;;  %v4780_v12 = vor.u32 %v6687_v1, %v4777_v2 }
  0x1d   :  { %v4551_v16 = vld [vmem:[%s10686_s2] sm:$0xf]  ;;  %v6633_v17 = vld [vmem:[%s10686_s2 + $0xc] sm:$0xf0]  ;;  %v4952_v28 = vor.u32 %v6733_v15, %v4951_v14  ;;  %1269 = vmatpush.bf16.msra.mxu1 %v4696_v23  ;;  %v6683_v14 = vld [vmem:[%s10686_s2 + $0x1a4] sm:$0xf] }
  0x1e   :  { %v4679_v19 = vld [vmem:[%s10686_s2 + $0x100] sm:$0xf]  ;;  %v6665_v20 = vld [vmem:[%s10686_s2 + $0x10c] sm:$0xf0]  ;;  %v4552_v35 = vor.u32 %v6633_v17, %v4551_v16  ;;  %1283 = vmatpush.bf16.msra.mxu2 %v4824_v24  ;;  %v4761_v15 = vld [vmem:[%s10686_s2 + $0x1b0] sm:$0xf0]  ;;  %v4636_v17 = vor.u32 %v6651_v10, %v4633_v11 }
  0x1f   :  { %v4807_v21 = vld [vmem:[%s10686_s2 + $0x200] sm:$0xf]  ;;  %v6697_v22 = vld [vmem:[%s10686_s2 + $0x20c] sm:$0xf0]  ;;  %v4680_v39 = vor.u32 %v6665_v20, %v4679_v19  ;;  %1297 = vmatpush.bf16.msra.mxu3 %v4952_v28  ;;  %v4617_v23 = vld [vmem:[%s10686_s2 + $0x90] sm:$0xf0]  ;;  %v4764_v24 = vor.u32 %v6683_v14, %v4761_v15 }
  0x20   :  { %v4935_v25 = vld [vmem:[%s10686_s2 + $0x300] sm:$0xf]  ;;  %v6729_v26 = vld [vmem:[%s10686_s2 + $0x30c] sm:$0xf0]  ;;  %v4808_v40 = vor.u32 %v6697_v22, %v4807_v21  ;;  %1256 = vmatpush.bf16.msra.mxu0 %v4552_v35  ;;  %v6647_v22 = vld [vmem:[%s10686_s2 + $0x84] sm:$0xf] }
  0x21   :  { %v5175_v27 = vld [vmem:[%s10686_s2 + $0x4e0] sm:$0xf]  ;;  %v6789_v29 = vld [vmem:[%s10686_s2 + $0x4ec] sm:$0xf0]  ;;  %v4936_v44 = vor.u32 %v6729_v26, %v4935_v25  ;;  %1270 = vmatpush.bf16.msra.mxu1 %v4680_v39  ;;  %v6679_v26 = vld [vmem:[%s10686_s2 + $0x184] sm:$0xf] }
  0x22   :  { %v5303_v30 = vld [vmem:[%s10686_s2 + $0x5e0] sm:$0xf]  ;;  %v6821_v31 = vld [vmem:[%s10686_s2 + $0x5ec] sm:$0xf0]  ;;  %v5176_v45 = vor.u32 %v6789_v29, %v5175_v27  ;;  %1284 = vmatpush.bf16.msra.mxu2 %v4808_v40  ;;  %v4745_v27 = vld [vmem:[%s10686_s2 + $0x190] sm:$0xf0]  ;;  %v4620_v29 = vor.u32 %v6647_v22, %v4617_v23 }
  0x23   :  { %v40_v34 = vld [vmem:[%s10687_s0 + $0x10] sm:$0xff]  ;;  %v5319_v37 = vld [vmem:[%s10686_s2 + $0x600] sm:$0xf]  ;;  %v5304_v49 = vor.u32 %v6821_v31, %v5303_v30  ;;  %1298 = vmatpush.bf16.msra.mxu3 %v4936_v44  ;;  %v6675_v40 = vld [vmem:[%s10686_s2 + $0x164] sm:$0xf] }
  0x24   :  { %v6825_v38 = vld [vmem:[%s10686_s2 + $0x60c] sm:$0xf0]  ;;  %v38_v42 = vld [vmem:[%s10687_s0] sm:$0xff]  ;;  %v7516_v54 = vpack.c.bf16 %v47_v36, %v40_v34  ;;  %1305 = vmatpush.bf16.msrb.mxu0 %v5176_v45  ;;  %v4601_v35 = vld [vmem:[%s10686_s2 + $0x70] sm:$0xf0] }
  0x25   :  { %v48_v48 = vld [vmem:[%s10687_s0 + $0x50] sm:$0xff]  ;;  %v5159_v51 = vld [vmem:[%s10686_s2 + $0x4c0] sm:$0xf]  ;;  %v7518_v55 = vpack.c.bf16 %v45_v43, %v38_v42  ;;  %v5320_v59 = vor.u32 %v6825_v38, %v5319_v37  ;;  %1319 = vmatpush.bf16.msrb.mxu1 %v5304_v49  ;;  %v6643_v34 = vld [vmem:[%s10686_s2 + $0x64] sm:$0xf]  ;;  %v4748_v38 = vor.u32 %v6679_v26, %v4745_v27 }
  0x26   :  { %v6785_v52 = vld [vmem:[%s10686_s2 + $0x4cc] sm:$0xf0]  ;;  %v5287_v53 = vld [vmem:[%s10686_s2 + $0x5c0] sm:$0xf]  ;;  %v7529_v60 = vpack.c.bf16 %v48_v48, %v41_v47  ;;  %1285 = vmatmul.bf16.vlgmr.msra.gmra.mxu2 %v7516_v54  ;;  %v51_v37 = vld [vmem:[%s10687_s0 + $0x68] sm:$0xff]  ;;  %v4604_v43 = vor.u32 %v6643_v34, %v4601_v35 }
  0x27   :  { %v6817_v56 = vld [vmem:[%s10686_s2 + $0x5cc] sm:$0xf0]  ;;  %v46_v62 = vld [vmem:[%s10687_s0 + $0x40] sm:$0xff]  ;;  %v5160_v0 = vor.u32 %v6785_v52, %v5159_v51  ;;  %1347 = vmatpush.bf16.msrb.mxu3 %v4668_v50  ;;  %1257 = vmatmul.bf16.vlgmr.msra.gmra.mxu0 %v7518_v55  ;;  %v4585_v49 = vld [vmem:[%s10686_s2 + $0x50] sm:$0xf0]  ;;  %v4732_v51 = vor.u32 %v6675_v40, %v4729_v41 }
  0x28   :  { %v5288_v3 = vor.u32 %v6817_v56, %v5287_v53  ;;  %v5143_v5 = vld [vmem:[%s10686_s2 + $0x4a0] sm:$0xf]  ;;  %v6781_v6 = vld [vmem:[%s10686_s2 + $0x4ac] sm:$0xf0]  ;;  %v7554_v8 = vpack.c.bf16 %v46_v62, %v39_v61  ;;  %1340 = vmatpush.bf16.msrb.mxu2 %v5320_v59  ;;  %1299 = vmatmul.bf16.vlgmr.msra.gmra.mxu3 %v7529_v60  ;;  %v6639_v48 = vld [vmem:[%s10686_s2 + $0x44] sm:$0xf] }
  0x29   :  { %v5271_v7 = vld [vmem:[%s10686_s2 + $0x5a0] sm:$0xf]  ;;  %v6813_v9 = vld [vmem:[%s10686_s2 + $0x5ac] sm:$0xf0]  ;;  %1306 = vmatpush.bf16.msrb.mxu0 %v5160_v0  ;;  %v5144_v13 = vor.u32 %v6781_v6, %v5143_v5  ;;  %v6671_v53 = vld [vmem:[%s10686_s2 + $0x144] sm:$0xf]  ;;  %v4588_v58 = vor.u32 %v6639_v48, %v4585_v49 }
  0x2a   :  { %1320 = vmatpush.bf16.msrb.mxu1 %v5288_v3  ;;  %v5272_v16 = vor.u32 %v6813_v9, %v5271_v7  ;;  %v5127_v18 = vld [vmem:[%s10686_s2 + $0x480] sm:$0xf]  ;;  %v6777_v19 = vld [vmem:[%s10686_s2 + $0x48c] sm:$0xf0]  ;;  %v4713_v56 = vld [vmem:[%s10686_s2 + $0x150] sm:$0xf0] }
  0x2b   :  { %1348 = vmatpush.bf16.msrb.mxu3 %v4652_v4  ;;  %v5255_v20 = vld [vmem:[%s10686_s2 + $0x580] sm:$0xf]  ;;  %1271 = vmatmul.bf16.vlgmr.msra.gmra.mxu1 %v7554_v8  ;;  %v6809_v21 = vld [vmem:[%s10686_s2 + $0x58c] sm:$0xf0]  ;;  %v5128_v25 = vor.u32 %v6777_v19, %v5127_v18  ;;  %v6635_v0 = vld [vmem:[%s10686_s2 + $0x24] sm:$0xf]  ;;  %v4716_v4 = vor.u32 %v6671_v53, %v4713_v56 }
  0x2c   :  { %1361 = vmatpush.bf16.msra.mxu2 %v4796_v63  ;;  %v5256_v28 = vor.u32 %v6809_v21, %v5255_v20  ;;  %v5111_v30 = vld [vmem:[%s10686_s2 + $0x460] sm:$0xf]  ;;  %v6773_v31 = vld [vmem:[%s10686_s2 + $0x46c] sm:$0xf0]  ;;  %v4569_v1 = vld [vmem:[%s10686_s2 + $0x30] sm:$0xf0] }
  0x2d   :  { %1307 = vmatpush.bf16.msrb.mxu0 %v5144_v13  ;;  %v5239_v32 = vld [vmem:[%s10686_s2 + $0x560] sm:$0xf]  ;;  %v6805_v33 = vld [vmem:[%s10686_s2 + $0x56c] sm:$0xf0]  ;;  %v5112_v39 = vor.u32 %v6773_v31, %v5111_v30  ;;  %v6667_v2 = vld [vmem:[%s10686_s2 + $0x124] sm:$0xf]  ;;  %v4572_v11 = vor.u32 %v6635_v0, %v4569_v1 }
  0x2e   :  { %1321 = vmatpush.bf16.msrb.mxu1 %v5272_v16  ;;  %v44_v36 = vld [vmem:[%s10687_s0 + $0x30] sm:$0xff]  ;;  %v5240_v42 = vor.u32 %v6805_v33, %v5239_v32  ;;  %v5095_v44 = vld [vmem:[%s10686_s2 + $0x440] sm:$0xf]  ;;  %v6631_v13 = vld [vmem:[%s10686_s2 + $0x4] sm:$0xf] }
  0x2f   :  { %1349 = vmatpush.bf16.msrb.mxu3 %v4636_v17  ;;  %v6769_v45 = vld [vmem:[%s10686_s2 + $0x44c] sm:$0xf0]  ;;  %v5223_v46 = vld [vmem:[%s10686_s2 + $0x540] sm:$0xf]  ;;  %v7645_v50 = vpack.c.bf16 %v51_v37, %v44_v36  ;;  %v4697_v3 = vld [vmem:[%s10686_s2 + $0x130] sm:$0xf0] }
  0x30   :  { %1362 = vmatpush.bf16.msra.mxu2 %v4780_v12  ;;  %v6801_v47 = vld [vmem:[%s10686_s2 + $0x54c] sm:$0xf0]  ;;  %v5096_v52 = vor.u32 %v6769_v45, %v5095_v44  ;;  %v5079_v59 = vld [vmem:[%s10686_s2 + $0x420] sm:$0xf]  ;;  %v4553_v14 = vld [vmem:[%s10686_s2 + $0x10] sm:$0xf0]  ;;  %v4700_v21 = vor.u32 %v6667_v2, %v4697_v3 }
  0x31   :  { %1308 = vmatpush.bf16.msrb.mxu0 %v5128_v25  ;;  %v5224_v57 = vor.u32 %v6801_v47, %v5223_v46  ;;  %v6765_v61 = vld [vmem:[%s10686_s2 + $0x42c] sm:$0xf0]  ;;  %v5207_v62 = vld [vmem:[%s10686_s2 + $0x520] sm:$0xf]  ;;  %v6723_v15 = vld [vmem:[%s10686_s2 + $0x2e4] sm:$0xf]  ;;  %v4556_v27 = vor.u32 %v6631_v13, %v4553_v14 }
  0x32   :  { %1322 = vmatpush.bf16.msrb.mxu1 %v5256_v28  ;;  %v6797_v63 = vld [vmem:[%s10686_s2 + $0x52c] sm:$0xf0]  ;;  %v5080_v5 = vor.u32 %v6765_v61, %v5079_v59  ;;  %v5063_v6 = vld [vmem:[%s10686_s2 + $0x400] sm:$0xf]  ;;  %v4921_v16 = vld [vmem:[%s10686_s2 + $0x2f0] sm:$0xf0] }
  0x33   :  { %1350 = vmatpush.bf16.msrb.mxu3 %v4620_v29  ;;  %v6761_v7 = vld [vmem:[%s10686_s2 + $0x40c] sm:$0xf0]  ;;  %v5191_v9 = vld [vmem:[%s10686_s2 + $0x500] sm:$0xf]  ;;  %v5208_v10 = vor.u32 %v6797_v63, %v5207_v62  ;;  %v6755_v17 = vld [vmem:[%s10686_s2 + $0x3e4] sm:$0xf]  ;;  %v4924_v31 = vor.u32 %v6723_v15, %v4921_v16 }
  0x34   :  { %1363 = vmatpush.bf16.msra.mxu2 %v4764_v24  ;;  %v6793_v12 = vld [vmem:[%s10686_s2 + $0x50c] sm:$0xf0]  ;;  %v5049_v18 = vld [vmem:[%s10686_s2 + $0x3f0] sm:$0xf0]  ;;  %v6787_v19 = vld [vmem:[%s10686_s2 + $0x4e4] sm:$0xf]  ;;  %v5064_v22 = vor.u32 %v6761_v7, %v5063_v6 }
  0x35   :  { %1309 = vmatpush.bf16.msrb.mxu0 %v5112_v39  ;;  %v5177_v20 = vld [vmem:[%s10686_s2 + $0x4f0] sm:$0xf0]  ;;  %v42_v23 = vld [vmem:[%s10687_s0 + $0x20] sm:$0xff]  ;;  %v49_v24 = vld [vmem:[%s10687_s0 + $0x58] sm:$0xff]  ;;  %v5192_v26 = vor.u32 %v6793_v12, %v5191_v9  ;;  %v5052_v32 = vor.u32 %v6755_v17, %v5049_v18 }
  0x36   :  { %1323 = vmatpush.bf16.msrb.mxu1 %v5240_v42  ;;  %5333 = vmatmul.msk.bf16.vlgmr.msrb.gmra.mxu2 %vm1245_vm0, %v7645_v50  ;;  %v6663_v25 = vld [vmem:[%s10686_s2 + $0x104] sm:$0xf]  ;;  %v4681_v28 = vld [vmem:[%s10686_s2 + $0x110] sm:$0xf0]  ;;  %v43_v29 = vld [vmem:[%s10687_s0 + $0x28] sm:$0xff]  ;;  %v5180_v36 = vor.u32 %v6787_v19, %v5177_v20  ;;  %v7742_v37 = vpack.c.bf16 %v49_v24, %v42_v23 }
  0x37   :  { %1351 = vmatpush.bf16.msrb.mxu3 %v4604_v43  ;;  %v50_v30 = vld [vmem:[%s10687_s0 + $0x60] sm:$0xff]  ;;  %v5305_v34 = vld [vmem:[%s10686_s2 + $0x5f0] sm:$0xf0]  ;;  %v4684_v41 = vor.u32 %v6663_v25, %v4681_v28 }
  0x38   :  { %1364 = vmatpush.bf16.msra.mxu2 %v4748_v38  ;;  %v6819_v33 = vld [vmem:[%s10686_s2 + $0x5e4] sm:$0xf]  ;;  %v4905_v38 = vld [vmem:[%s10686_s2 + $0x2d0] sm:$0xf0]  ;;  %v7753_v42 = vpack.c.bf16 %v50_v30, %v43_v29 }
  0x39   :  { %1310 = vmatpush.bf16.msrb.mxu0 %v5096_v52  ;;  %v6719_v35 = vld [vmem:[%s10686_s2 + $0x2c4] sm:$0xf]  ;;  %v5033_v40 = vld [vmem:[%s10686_s2 + $0x3d0] sm:$0xf0]  ;;  %v5308_v45 = vor.u32 %v6819_v33, %v5305_v34 }
  0x3a   :  { %1324 = vmatpush.bf16.msrb.mxu1 %v5224_v57  ;;  %v6751_v39 = vld [vmem:[%s10686_s2 + $0x3c4] sm:$0xf]  ;;  %v5161_v44 = vld [vmem:[%s10686_s2 + $0x4d0] sm:$0xf0]  ;;  %v4908_v46 = vor.u32 %v6719_v35, %v4905_v38 }
  0x3b   :  { %1352 = vmatpush.bf16.msrb.mxu3 %v4588_v58  ;;  %v6783_v43 = vld [vmem:[%s10686_s2 + $0x4c4] sm:$0xf]  ;;  %v5036_v47 = vor.u32 %v6751_v39, %v5033_v40  ;;  %v5289_v49 = vld [vmem:[%s10686_s2 + $0x5d0] sm:$0xf0] }
  0x3c   :  { %1365 = vmatpush.bf16.msra.mxu2 %v4732_v51  ;;  %v6815_v48 = vld [vmem:[%s10686_s2 + $0x5c4] sm:$0xf]  ;;  %v5164_v52 = vor.u32 %v6783_v43, %v5161_v44  ;;  %v4889_v53 = vld [vmem:[%s10686_s2 + $0x2b0] sm:$0xf0] }
  0x3d   :  { %1311 = vmatpush.bf16.msrb.mxu0 %v5080_v5  ;;  %v6715_v51 = vld [vmem:[%s10686_s2 + $0x2a4] sm:$0xf]  ;;  %v5017_v57 = vld [vmem:[%s10686_s2 + $0x3b0] sm:$0xf0]  ;;  %v5292_v61 = vor.u32 %v6815_v48, %v5289_v49 }
  0x3e   :  { %1325 = vmatpush.bf16.msrb.mxu1 %v5208_v10  ;;  %v6747_v56 = vld [vmem:[%s10686_s2 + $0x3a4] sm:$0xf]  ;;  %v5145_v59 = vld [vmem:[%s10686_s2 + $0x4b0] sm:$0xf0]  ;;  %v4892_v62 = vor.u32 %v6715_v51, %v4889_v53 }
  0x3f   :  { %1353 = vmatpush.bf16.msrb.mxu3 %v4572_v11  ;;  %v6779_v58 = vld [vmem:[%s10686_s2 + $0x4a4] sm:$0xf]  ;;  %v5020_v63 = vor.u32 %v6747_v56, %v5017_v57  ;;  %v5273_v1 = vld [vmem:[%s10686_s2 + $0x5b0] sm:$0xf0] }
  0x40   :  { %1366 = vmatpush.bf16.msra.mxu2 %v4716_v4  ;;  %v6811_v0 = vld [vmem:[%s10686_s2 + $0x5a4] sm:$0xf]  ;;  %v5148_v3 = vor.u32 %v6779_v58, %v5145_v59  ;;  %v4873_v4 = vld [vmem:[%s10686_s2 + $0x290] sm:$0xf0] }
  0x41   :  { %1312 = vmatpush.bf16.msrb.mxu0 %v5064_v22  ;;  %v6711_v2 = vld [vmem:[%s10686_s2 + $0x284] sm:$0xf]  ;;  %v5001_v6 = vld [vmem:[%s10686_s2 + $0x390] sm:$0xf0]  ;;  %v5276_v10 = vor.u32 %v6811_v0, %v5273_v1  ;;  %v4671_v0 = vld [vmem:[%s10686_s2 + $0xe8] sm:$0xf] }
  0x42   :  { %1326 = vmatpush.bf16.msrb.mxu1 %v5192_v26  ;;  %v6743_v5 = vld [vmem:[%s10686_s2 + $0x384] sm:$0xf]  ;;  %v5129_v9 = vld [vmem:[%s10686_s2 + $0x490] sm:$0xf0]  ;;  %v4876_v11 = vor.u32 %v6711_v2, %v4873_v4  ;;  %v6662_v1 = vld [vmem:[%s10686_s2 + $0xf4] sm:$0xf0] }
  0x43   :  { %1354 = vmatpush.bf16.msrb.mxu3 %v4556_v27  ;;  %v6775_v7 = vld [vmem:[%s10686_s2 + $0x484] sm:$0xf]  ;;  %v5004_v12 = vor.u32 %v6743_v5, %v5001_v6  ;;  %v5257_v14 = vld [vmem:[%s10686_s2 + $0x590] sm:$0xf0]  ;;  %v4927_v5 = vld [vmem:[%s10686_s2 + $0x2e8] sm:$0xf] }
  0x44   :  { %1367 = vmatpush.bf16.msra.mxu2 %v4700_v21  ;;  %1313 = vmatmul.bf16.vlgmr.msrb.gmra.mxu0 %v7742_v37  ;;  %v6807_v13 = vld [vmem:[%s10686_s2 + $0x584] sm:$0xf]  ;;  %v5132_v16 = vor.u32 %v6775_v7, %v5129_v9  ;;  %v4857_v17 = vld [vmem:[%s10686_s2 + $0x270] sm:$0xf0]  ;;  %v6726_v6 = vld [vmem:[%s10686_s2 + $0x2f4] sm:$0xf0] }
  0x45   :  { %1375 = vmatpush.bf16.msra.mxu0 %v4924_v31  ;;  %1327 = vmatmul.bf16.vlgmr.msrb.gmra.mxu1 %v7753_v42  ;;  %v6707_v15 = vld [vmem:[%s10686_s2 + $0x264] sm:$0xf]  ;;  %v4985_v19 = vld [vmem:[%s10686_s2 + $0x370] sm:$0xf0]  ;;  %v5260_v22 = vor.u32 %v6807_v13, %v5257_v14  ;;  %v4672_v13 = vor.u32 %v6662_v1, %v4671_v0  ;;  %v5055_v14 = vld [vmem:[%s10686_s2 + $0x3e8] sm:$0xf] }
  0x46   :  { %1389 = vmatpush.bf16.msra.mxu1 %v5052_v32  ;;  %1355 = vmatmul.bf16.vlgmr.msrb.gmra.mxu3 %v7518_v55  ;;  %v6739_v18 = vld [vmem:[%s10686_s2 + $0x364] sm:$0xf]  ;;  %v5113_v21 = vld [vmem:[%s10686_s2 + $0x470] sm:$0xf0]  ;;  %v4860_v23 = vor.u32 %v6707_v15, %v4857_v17  ;;  %v6758_v15 = vld [vmem:[%s10686_s2 + $0x3f4] sm:$0xf0] }
  0x47   :  { %1403 = vmatpush.bf16.msra.mxu3 %v5180_v36  ;;  %v6771_v20 = vld [vmem:[%s10686_s2 + $0x464] sm:$0xf]  ;;  %v4988_v24 = vor.u32 %v6739_v18, %v4985_v19  ;;  %v5241_v26 = vld [vmem:[%s10686_s2 + $0x570] sm:$0xf0]  ;;  %v4799_v17 = vld [vmem:[%s10686_s2 + $0x1e8] sm:$0xf]  ;;  %v4928_v19 = vor.u32 %v6726_v6, %v4927_v5 }
  0x48   :  { %1368 = vmatpush.bf16.msra.mxu2 %v4684_v41  ;;  %v6803_v25 = vld [vmem:[%s10686_s2 + $0x564] sm:$0xf]  ;;  %v5116_v28 = vor.u32 %v6771_v20, %v5113_v21  ;;  %v4841_v29 = vld [vmem:[%s10686_s2 + $0x250] sm:$0xf0]  ;;  %v6694_v18 = vld [vmem:[%s10686_s2 + $0x1f4] sm:$0xf0] }
  0x49   :  { %1376 = vmatpush.bf16.msra.mxu0 %v4908_v46  ;;  %v6703_v27 = vld [vmem:[%s10686_s2 + $0x244] sm:$0xf]  ;;  %v4969_v31 = vld [vmem:[%s10686_s2 + $0x350] sm:$0xf0]  ;;  %v5244_v34 = vor.u32 %v6803_v25, %v5241_v26  ;;  %v4655_v21 = vld [vmem:[%s10686_s2 + $0xc8] sm:$0xf]  ;;  %v4800_v26 = vor.u32 %v6694_v18, %v4799_v17 }
  0x4a   :  { %1390 = vmatpush.bf16.msra.mxu1 %v5036_v47  ;;  %v6735_v30 = vld [vmem:[%s10686_s2 + $0x344] sm:$0xf]  ;;  %v5097_v33 = vld [vmem:[%s10686_s2 + $0x450] sm:$0xf0]  ;;  %v4844_v35 = vor.u32 %v6703_v27, %v4841_v29  ;;  %v6722_v25 = vld [vmem:[%s10686_s2 + $0x2d4] sm:$0xf0] }
  0x4b   :  { %1404 = vmatpush.bf16.msra.mxu3 %v5164_v52  ;;  %1369 = vmatmul.bf16.vlgmr.msra.gmra.mxu2 %v7554_v8  ;;  %v6767_v32 = vld [vmem:[%s10686_s2 + $0x444] sm:$0xf]  ;;  %v4972_v36 = vor.u32 %v6735_v30, %v4969_v31  ;;  %v5225_v39 = vld [vmem:[%s10686_s2 + $0x550] sm:$0xf0]  ;;  %v5039_v27 = vld [vmem:[%s10686_s2 + $0x3c8] sm:$0xf] }
  0x4c   :  { %1417 = vmatpush.bf16.msrb.mxu2 %v5308_v45  ;;  %v6799_v38 = vld [vmem:[%s10686_s2 + $0x544] sm:$0xf]  ;;  %v5100_v41 = vor.u32 %v6767_v32, %v5097_v33  ;;  %v4825_v43 = vld [vmem:[%s10686_s2 + $0x230] sm:$0xf0]  ;;  %v4783_v30 = vld [vmem:[%s10686_s2 + $0x1c8] sm:$0xf] }
  0x4d   :  { %1377 = vmatpush.bf16.msra.mxu0 %v4892_v62  ;;  %v6699_v40 = vld [vmem:[%s10686_s2 + $0x224] sm:$0xf]  ;;  %v4953_v45 = vld [vmem:[%s10686_s2 + $0x330] sm:$0xf0]  ;;  %v5228_v48 = vor.u32 %v6799_v38, %v5225_v39  ;;  %v6690_v31 = vld [vmem:[%s10686_s2 + $0x1d4] sm:$0xf0] }
  0x4e   :  { %1391 = vmatpush.bf16.msra.mxu1 %v5020_v63  ;;  %v6731_v44 = vld [vmem:[%s10686_s2 + $0x324] sm:$0xf]  ;;  %v5081_v47 = vld [vmem:[%s10686_s2 + $0x430] sm:$0xf0]  ;;  %v4828_v52 = vor.u32 %v6699_v40, %v4825_v43  ;;  %v4639_v33 = vld [vmem:[%s10686_s2 + $0xa8] sm:$0xf]  ;;  %v4784_v39 = vor.u32 %v6690_v31, %v4783_v30 }
  0x4f   :  { %1405 = vmatpush.bf16.msra.mxu3 %v5148_v3  ;;  %v6763_v46 = vld [vmem:[%s10686_s2 + $0x424] sm:$0xf]  ;;  %v5209_v51 = vld [vmem:[%s10686_s2 + $0x530] sm:$0xf0]  ;;  %v4956_v53 = vor.u32 %v6731_v44, %v4953_v45  ;;  %v6718_v38 = vld [vmem:[%s10686_s2 + $0x2b4] sm:$0xf0] }
  0x50   :  { %1418 = vmatpush.bf16.msrb.mxu2 %v5292_v61  ;;  %v6795_v49 = vld [vmem:[%s10686_s2 + $0x524] sm:$0xf]  ;;  %v4809_v57 = vld [vmem:[%s10686_s2 + $0x210] sm:$0xf0]  ;;  %v5084_v59 = vor.u32 %v6763_v46, %v5081_v47  ;;  %v5023_v40 = vld [vmem:[%s10686_s2 + $0x3a8] sm:$0xf] }
  0x51   :  { %1378 = vmatpush.bf16.msra.mxu0 %v4876_v11  ;;  %v6695_v56 = vld [vmem:[%s10686_s2 + $0x204] sm:$0xf]  ;;  %v4937_v61 = vld [vmem:[%s10686_s2 + $0x310] sm:$0xf0]  ;;  %v5212_v3 = vor.u32 %v6795_v49, %v5209_v51  ;;  %v4767_v44 = vld [vmem:[%s10686_s2 + $0x1a8] sm:$0xf] }
  0x52   :  { %1392 = vmatpush.bf16.msra.mxu1 %v5004_v12  ;;  %v6727_v58 = vld [vmem:[%s10686_s2 + $0x304] sm:$0xf]  ;;  %v5065_v63 = vld [vmem:[%s10686_s2 + $0x410] sm:$0xf0]  ;;  %v4812_v7 = vor.u32 %v6695_v56, %v4809_v57  ;;  %v6686_v45 = vld [vmem:[%s10686_s2 + $0x1b4] sm:$0xf0] }
  0x53   :  { %1406 = vmatpush.bf16.msra.mxu3 %v5132_v16  ;;  %v6759_v62 = vld [vmem:[%s10686_s2 + $0x404] sm:$0xf]  ;;  %v5321_v4 = vld [vmem:[%s10686_s2 + $0x610] sm:$0xf0]  ;;  %v4940_v9 = vor.u32 %v6727_v58, %v4937_v61  ;;  %v4623_v47 = vld [vmem:[%s10686_s2 + $0x88] sm:$0xf] }
  0x54   :  { %1419 = vmatpush.bf16.msrb.mxu2 %v5276_v10  ;;  %v6823_v2 = vld [vmem:[%s10686_s2 + $0x604] sm:$0xf]  ;;  %v5193_v11 = vld [vmem:[%s10686_s2 + $0x510] sm:$0xf0]  ;;  %v5068_v12 = vor.u32 %v6759_v62, %v5065_v63  ;;  %v4879_v51 = vld [vmem:[%s10686_s2 + $0x288] sm:$0xf] }
  0x55   :  { %1379 = vmatpush.bf16.msra.mxu0 %v4860_v23  ;;  %v6791_v10 = vld [vmem:[%s10686_s2 + $0x504] sm:$0xf]  ;;  %v5324_v16 = vor.u32 %v6823_v2, %v5321_v4  ;;  %v5056_v23 = vor.u32 %v6758_v15, %v5055_v14  ;;  %v5007_v56 = vld [vmem:[%s10686_s2 + $0x388] sm:$0xf]  ;;  %v6746_v57 = vld [vmem:[%s10686_s2 + $0x394] sm:$0xf0] }
  0x56   :  { %1393 = vmatpush.bf16.msra.mxu1 %v4988_v24  ;;  %v5196_v20 = vor.u32 %v6791_v10, %v5193_v11  ;;  %v4911_v24 = vld [vmem:[%s10686_s2 + $0x2c8] sm:$0xf]  ;;  %v6682_v61 = vld [vmem:[%s10686_s2 + $0x194] sm:$0xf0]  ;;  %v5008_v1 = vor.u32 %v6746_v57, %v5007_v56  ;;  %v6660_v56 = vld [vmem:[%s10686_s2 + $0xec] sm:$0xf] }
  0x57   :  { %1407 = vmatpush.bf16.msra.mxu3 %v5116_v28  ;;  %v6754_v28 = vld [vmem:[%s10686_s2 + $0x3d4] sm:$0xf0]  ;;  %v4912_v32 = vor.u32 %v6722_v25, %v4911_v24  ;;  %v4607_v63 = vld [vmem:[%s10686_s2 + $0x68] sm:$0xf]  ;;  %v4673_v57 = vld [vmem:[%s10686_s2 + $0xf8] sm:$0xf0] }
  0x58   :  { %1420 = vmatpush.bf16.msrb.mxu2 %v5260_v22  ;;  %v6658_v22 = vld [vmem:[%s10686_s2 + $0xd4] sm:$0xf0]  ;;  %v4863_v2 = vld [vmem:[%s10686_s2 + $0x268] sm:$0xf] }
  0x59   :  { %1380 = vmatpush.bf16.msra.mxu0 %v4844_v35  ;;  %v4656_v29 = vor.u32 %v6658_v22, %v4655_v21  ;;  %v5040_v35 = vor.u32 %v6754_v28, %v5039_v27  ;;  %v6646_v0 = vld [vmem:[%s10686_s2 + $0x74] sm:$0xf0]  ;;  %v4991_v5 = vld [vmem:[%s10686_s2 + $0x368] sm:$0xf] }
  0x5a   :  { %1394 = vmatpush.bf16.msra.mxu1 %v4972_v36  ;;  %v4895_v36 = vld [vmem:[%s10686_s2 + $0x2a8] sm:$0xf]  ;;  %v6742_v6 = vld [vmem:[%s10686_s2 + $0x374] sm:$0xf0] }
  0x5b   :  { %1408 = vmatpush.bf16.msra.mxu3 %v5100_v41  ;;  %v6750_v41 = vld [vmem:[%s10686_s2 + $0x3b4] sm:$0xf0]  ;;  %v4896_v46 = vor.u32 %v6718_v38, %v4895_v36  ;;  %v4992_v14 = vor.u32 %v6742_v6, %v4991_v5  ;;  %v4847_v15 = vld [vmem:[%s10686_s2 + $0x248] sm:$0xf]  ;;  %v4676_v6 = vor.u32 %v6660_v56, %v4673_v57 }
  0x5c   :  { %1421 = vmatpush.bf16.msrb.mxu2 %v5244_v34  ;;  %v6654_v34 = vld [vmem:[%s10686_s2 + $0xb4] sm:$0xf0]  ;;  %v5024_v49 = vor.u32 %v6750_v41, %v5023_v40  ;;  %v4975_v18 = vld [vmem:[%s10686_s2 + $0x348] sm:$0xf] }
  0x5d   :  { %1381 = vmatpush.bf16.msra.mxu0 %v4828_v52  ;;  %v4640_v43 = vor.u32 %v6654_v34, %v4639_v33  ;;  %v6714_v52 = vld [vmem:[%s10686_s2 + $0x294] sm:$0xf0]  ;;  %v4719_v21 = vld [vmem:[%s10686_s2 + $0x148] sm:$0xf] }
  0x5e   :  { %1395 = vmatpush.bf16.msra.mxu1 %v4956_v53  ;;  %v4768_v53 = vor.u32 %v6686_v45, %v4767_v44  ;;  %v4880_v62 = vor.u32 %v6714_v52, %v4879_v51  ;;  %v6678_v10 = vld [vmem:[%s10686_s2 + $0x174] sm:$0xf0]  ;;  %v4575_v24 = vld [vmem:[%s10686_s2 + $0x28] sm:$0xf] }
  0x5f   :  { %1409 = vmatpush.bf16.msra.mxu3 %v5084_v59  ;;  %v4751_v59 = vld [vmem:[%s10686_s2 + $0x188] sm:$0xf]  ;;  %v6674_v22 = vld [vmem:[%s10686_s2 + $0x154] sm:$0xf0] }
  0x60   :  { %1422 = vmatpush.bf16.msrb.mxu2 %v5228_v48  ;;  %v6650_v48 = vld [vmem:[%s10686_s2 + $0x94] sm:$0xf0]  ;;  %v4752_v4 = vor.u32 %v6682_v61, %v4751_v59  ;;  %v4831_v27 = vld [vmem:[%s10686_s2 + $0x228] sm:$0xf] }
  0x61   :  { %1382 = vmatpush.bf16.msra.mxu0 %v4812_v7  ;;  %v4624_v58 = vor.u32 %v6650_v48, %v4623_v47  ;;  %v4608_v7 = vor.u32 %v6646_v0, %v4607_v63  ;;  %v6638_v25 = vld [vmem:[%s10686_s2 + $0x34] sm:$0xf0]  ;;  %v4959_v30 = vld [vmem:[%s10686_s2 + $0x328] sm:$0xf] }
  0x62   :  { %1396 = vmatpush.bf16.msra.mxu1 %v4940_v9  ;;  %v4735_v9 = vld [vmem:[%s10686_s2 + $0x168] sm:$0xf]  ;;  %v6702_v28 = vld [vmem:[%s10686_s2 + $0x234] sm:$0xf0] }
  0x63   :  { %1410 = vmatpush.bf16.msra.mxu3 %v5068_v12  ;;  %v4591_v12 = vld [vmem:[%s10686_s2 + $0x48] sm:$0xf]  ;;  %v4736_v17 = vor.u32 %v6678_v10, %v4735_v9  ;;  %v6734_v31 = vld [vmem:[%s10686_s2 + $0x334] sm:$0xf0]  ;;  %v4832_v36 = vor.u32 %v6702_v28, %v4831_v27  ;;  %v6656_v9 = vld [vmem:[%s10686_s2 + $0xcc] sm:$0xf] }
  0x64   :  { %1423 = vmatpush.bf16.msrb.mxu2 %v5212_v3  ;;  %1383 = vmatmul.bf16.vlgmr.msra.gmra.mxu0 %v7516_v54  ;;  %v6710_v3 = vld [vmem:[%s10686_s2 + $0x274] sm:$0xf0]  ;;  %v4703_v33 = vld [vmem:[%s10686_s2 + $0x128] sm:$0xf]  ;;  %v4960_v41 = vor.u32 %v6734_v31, %v4959_v30  ;;  %v4657_v10 = vld [vmem:[%s10686_s2 + $0xd8] sm:$0xf0] }
  0x65   :  { %1473 = vmatpush.bf16.msrb.mxu0 %v4928_v19  ;;  %1397 = vmatmul.bf16.vlgmr.msra.gmra.mxu1 %v7529_v60  ;;  %v4864_v11 = vor.u32 %v6710_v3, %v4863_v2  ;;  %v6738_v19 = vld [vmem:[%s10686_s2 + $0x354] sm:$0xf0]  ;;  %v4815_v44 = vld [vmem:[%s10686_s2 + $0x208] sm:$0xf]  ;;  %v6692_v3 = vld [vmem:[%s10686_s2 + $0x1ec] sm:$0xf] }
  0x66   :  { %1445 = vmatpush.bf16.msrb.mxu1 %v4672_v13  ;;  %1411 = vmatmul.bf16.vlgmr.msra.gmra.mxu3 %v7742_v37  ;;  %v6642_v13 = vld [vmem:[%s10686_s2 + $0x54] sm:$0xf0]  ;;  %v5311_v61 = vld [vmem:[%s10686_s2 + $0x5e8] sm:$0xf]  ;;  %v4769_v30 = vld [vmem:[%s10686_s2 + $0x1b8] sm:$0xf0] }
  0x67   :  { %1438 = vmatpush.bf16.msrb.mxu3 %v5324_v16  ;;  %v6706_v16 = vld [vmem:[%s10686_s2 + $0x254] sm:$0xf0]  ;;  %v5167_v63 = vld [vmem:[%s10686_s2 + $0x4c8] sm:$0xf] }
  0x68   :  { %1424 = vmatpush.bf16.msrb.mxu2 %v5196_v20  ;;  %v4592_v20 = vor.u32 %v6642_v13, %v4591_v12  ;;  %v6670_v34 = vld [vmem:[%s10686_s2 + $0x134] sm:$0xf0]  ;;  %v5295_v13 = vld [vmem:[%s10686_s2 + $0x5c8] sm:$0xf] }
  0x69   :  { %1474 = vmatpush.bf16.msrb.mxu0 %v4912_v32  ;;  %v4576_v32 = vor.u32 %v6638_v25, %v4575_v24  ;;  %v6634_v38 = vld [vmem:[%s10686_s2 + $0x14] sm:$0xf0]  ;;  %v4704_v47 = vor.u32 %v6670_v34, %v4703_v33  ;;  %v5279_v25 = vld [vmem:[%s10686_s2 + $0x5a8] sm:$0xf]  ;;  %v6648_v33 = vld [vmem:[%s10686_s2 + $0x8c] sm:$0xf] }
  0x6a   :  { %1446 = vmatpush.bf16.msrb.mxu1 %v4656_v29  ;;  %v4720_v29 = vor.u32 %v6674_v22, %v4719_v21  ;;  %v6790_v40 = vld [vmem:[%s10686_s2 + $0x4f4] sm:$0xf0]  ;;  %v6652_v21 = vld [vmem:[%s10686_s2 + $0xac] sm:$0xf]  ;;  %v4641_v22 = vld [vmem:[%s10686_s2 + $0xb8] sm:$0xf0] }
  0x6b   :  { %1459 = vmatpush.bf16.msra.mxu3 %v4800_v26  ;;  %1425 = vmatmul.bf16.vlgmr.msrb.gmra.mxu2 %v7753_v42  ;;  %v4976_v26 = vor.u32 %v6738_v19, %v4975_v18  ;;  %v6698_v45 = vld [vmem:[%s10686_s2 + $0x214] sm:$0xf0]  ;;  %v4785_v18 = vld [vmem:[%s10686_s2 + $0x1d8] sm:$0xf0]  ;;  %v4660_v19 = vor.u32 %v6656_v9, %v4657_v10  ;;  %v5135_v27 = vld [vmem:[%s10686_s2 + $0x488] sm:$0xf]  ;;  %v4644_v31 = vor.u32 %v6652_v21, %v4641_v22 }
  0x6c   :  { %1487 = vmatpush.bf16.msra.mxu2 %v5056_v23  ;;  %v4848_v23 = vor.u32 %v6706_v16, %v4847_v15  ;;  %v6730_v48 = vld [vmem:[%s10686_s2 + $0x314] sm:$0xf0]  ;;  %v4816_v59 = vor.u32 %v6698_v45, %v4815_v44  ;;  %v5151_v15 = vld [vmem:[%s10686_s2 + $0x4a8] sm:$0xf]  ;;  %v4625_v34 = vld [vmem:[%s10686_s2 + $0x98] sm:$0xf0] }
  0x6d   :  { %1475 = vmatpush.bf16.msrb.mxu0 %v4896_v46  ;;  %v4943_v46 = vld [vmem:[%s10686_s2 + $0x308] sm:$0xf]  ;;  %v6826_v51 = vld [vmem:[%s10686_s2 + $0x614] sm:$0xf0]  ;;  %v4753_v44 = vld [vmem:[%s10686_s2 + $0x198] sm:$0xf0]  ;;  %v4628_v45 = vor.u32 %v6648_v33, %v4625_v34 }
  0x6e   :  { %1447 = vmatpush.bf16.msrb.mxu1 %v4640_v43  ;;  %v4687_v43 = vld [vmem:[%s10686_s2 + $0x108] sm:$0xf]  ;;  %v4944_v0 = vor.u32 %v6730_v48, %v4943_v46  ;;  %v6782_v16 = vld [vmem:[%s10686_s2 + $0x4b4] sm:$0xf0]  ;;  %v4609_v48 = vld [vmem:[%s10686_s2 + $0x78] sm:$0xf0] }
  0x6f   :  { %1460 = vmatpush.bf16.msra.mxu3 %v4784_v39  ;;  %v5183_v39 = vld [vmem:[%s10686_s2 + $0x4e8] sm:$0xf]  ;;  %v6778_v28 = vld [vmem:[%s10686_s2 + $0x494] sm:$0xf0]  ;;  %v4721_v9 = vld [vmem:[%s10686_s2 + $0x158] sm:$0xf0] }
  0x70   :  { %1488 = vmatpush.bf16.msra.mxu2 %v5040_v35  ;;  %v4559_v35 = vld [vmem:[%s10686_s2 + $0x8] sm:$0xf]  ;;  %v6770_v57 = vld [vmem:[%s10686_s2 + $0x454] sm:$0xf0]  ;;  %v4705_v21 = vld [vmem:[%s10686_s2 + $0x138] sm:$0xf0] }
  0x71   :  { %1476 = vmatpush.bf16.msrb.mxu0 %v4880_v62  ;;  %v4560_v52 = vor.u32 %v6634_v38, %v4559_v35  ;;  %v6822_v62 = vld [vmem:[%s10686_s2 + $0x5f4] sm:$0xf0]  ;;  %v5136_v35 = vor.u32 %v6778_v28, %v5135_v27  ;;  %v5263_v38 = vld [vmem:[%s10686_s2 + $0x588] sm:$0xf]  ;;  %v6632_v27 = vld [vmem:[%s10686_s2 + $0xc] sm:$0xf] }
  0x72   :  { %1448 = vmatpush.bf16.msrb.mxu1 %v4624_v58  ;;  %v5184_v58 = vor.u32 %v6790_v40, %v5183_v39  ;;  %v6810_v39 = vld [vmem:[%s10686_s2 + $0x594] sm:$0xf0]  ;;  %v5119_v40 = vld [vmem:[%s10686_s2 + $0x468] sm:$0xf]  ;;  %v4561_v28 = vld [vmem:[%s10686_s2 + $0x18] sm:$0xf0] }
  0x73   :  { %1461 = vmatpush.bf16.msra.mxu3 %v4768_v53  ;;  %v6666_v53 = vld [vmem:[%s10686_s2 + $0x114] sm:$0xf0]  ;;  %v5264_v46 = vor.u32 %v6810_v39, %v5263_v38  ;;  %v5103_v56 = vld [vmem:[%s10686_s2 + $0x448] sm:$0xf]  ;;  %v5057_v33 = vld [vmem:[%s10686_s2 + $0x3f8] sm:$0xf0]  ;;  %v4564_v39 = vor.u32 %v6632_v27, %v4561_v28 }
  0x74   :  { %1489 = vmatpush.bf16.msra.mxu2 %v5024_v49  ;;  %v5327_v49 = vld [vmem:[%s10686_s2 + $0x608] sm:$0xf]  ;;  %v4688_v5 = vor.u32 %v6666_v53, %v4687_v43  ;;  %v6680_v43 = vld [vmem:[%s10686_s2 + $0x18c] sm:$0xf]  ;;  %v6806_v53 = vld [vmem:[%s10686_s2 + $0x574] sm:$0xf0] }
  0x75   :  { %1477 = vmatpush.bf16.msrb.mxu0 %v4864_v11  ;;  %v5328_v2 = vor.u32 %v6826_v51, %v5327_v49  ;;  %v4756_v51 = vor.u32 %v6680_v43, %v4753_v44  ;;  %v6720_v38 = vld [vmem:[%s10686_s2 + $0x2cc] sm:$0xf]  ;;  %v4689_v43 = vld [vmem:[%s10686_s2 + $0x118] sm:$0xf0] }
  0x76   :  { %1449 = vmatpush.bf16.msrb.mxu1 %v4608_v7  ;;  %5334 = vmatmul.msk.bf16.vlgmr.msrb.gmra.mxu3 %vm1245_vm0, %v7645_v50  ;;  %v5312_v7 = vor.u32 %v6822_v62, %v5311_v61  ;;  %v4993_v27 = vld [vmem:[%s10686_s2 + $0x378] sm:$0xf0]  ;;  %v6772_v28 = vld [vmem:[%s10686_s2 + $0x46c] sm:$0xf] }
  0x77   :  { %1462 = vmatpush.bf16.msra.mxu3 %v4752_v4  ;;  %v4801_v4 = vld [vmem:[%s10686_s2 + $0x1f8] sm:$0xf0] }
  0x78   :  { %1490 = vmatpush.bf16.msra.mxu2 %v5008_v1  ;;  %v6786_v1 = vld [vmem:[%s10686_s2 + $0x4d4] sm:$0xf0]  ;;  %v4804_v12 = vor.u32 %v6692_v3, %v4801_v4  ;;  %v5231_v3 = vld [vmem:[%s10686_s2 + $0x548] sm:$0xf] }
  0x79   :  { %1478 = vmatpush.bf16.msrb.mxu0 %v4848_v23  ;;  %v5168_v11 = vor.u32 %v6786_v1, %v5167_v63  ;;  %v5152_v23 = vor.u32 %v6782_v16, %v5151_v15  ;;  %v6640_v63 = vld [vmem:[%s10686_s2 + $0x4c] sm:$0xf]  ;;  %v5104_v1 = vor.u32 %v6770_v57, %v5103_v56  ;;  %v6802_v4 = vld [vmem:[%s10686_s2 + $0x554] sm:$0xf0]  ;;  %v5215_v16 = vld [vmem:[%s10686_s2 + $0x528] sm:$0xf] }
  0x7a   :  { %1450 = vmatpush.bf16.msrb.mxu1 %v4592_v20  ;;  %v6784_v56 = vld [vmem:[%s10686_s2 + $0x4cc] sm:$0xf]  ;;  %v5169_v57 = vld [vmem:[%s10686_s2 + $0x4d8] sm:$0xf0] }
  0x7b   :  { %1463 = vmatpush.bf16.msra.mxu3 %v4736_v17  ;;  %v6688_v17 = vld [vmem:[%s10686_s2 + $0x1cc] sm:$0xf] }
  0x7c   :  { %1491 = vmatpush.bf16.msra.mxu2 %v4992_v14  ;;  %v6818_v14 = vld [vmem:[%s10686_s2 + $0x5d4] sm:$0xf0]  ;;  %v4788_v24 = vor.u32 %v6688_v17, %v4785_v18  ;;  %v5071_v18 = vld [vmem:[%s10686_s2 + $0x408] sm:$0xf] }
  0x7d   :  { %1479 = vmatpush.bf16.msrb.mxu0 %v4832_v36  ;;  %v5296_v20 = vor.u32 %v6818_v14, %v5295_v13  ;;  %v4577_v13 = vld [vmem:[%s10686_s2 + $0x38] sm:$0xf0]  ;;  %v6798_v17 = vld [vmem:[%s10686_s2 + $0x534] sm:$0xf0] }
  0x7e   :  { %1451 = vmatpush.bf16.msrb.mxu1 %v4576_v32 }
  0x7f   :  { %1464 = vmatpush.bf16.msra.mxu3 %v4720_v29  ;;  %v6684_v29 = vld [vmem:[%s10686_s2 + $0x1ac] sm:$0xf] }
  0x80   :  { %1492 = vmatpush.bf16.msra.mxu2 %v4976_v26  ;;  %v6814_v26 = vld [vmem:[%s10686_s2 + $0x5b4] sm:$0xf0]  ;;  %v4772_v36 = vor.u32 %v6684_v29, %v4769_v30 }
  0x81   :  { %1480 = vmatpush.bf16.msrb.mxu0 %v4816_v59  ;;  %v5280_v32 = vor.u32 %v6814_v26, %v5279_v25  ;;  %v4737_v59 = vld [vmem:[%s10686_s2 + $0x178] sm:$0xf0]  ;;  %v5216_v25 = vor.u32 %v6798_v17, %v5215_v16  ;;  %v5199_v26 = vld [vmem:[%s10686_s2 + $0x508] sm:$0xf]  ;;  %v6776_v17 = vld [vmem:[%s10686_s2 + $0x48c] sm:$0xf] }
  0x82   :  { %1452 = vmatpush.bf16.msrb.mxu1 %v4560_v52  ;;  %v5247_v52 = vld [vmem:[%s10686_s2 + $0x568] sm:$0xf] }
  0x83   :  { %1465 = vmatpush.bf16.msra.mxu3 %v4704_v47  ;;  %v6644_v47 = vld [vmem:[%s10686_s2 + $0x6c] sm:$0xf]  ;;  %v5248_v62 = vor.u32 %v6806_v53, %v5247_v52  ;;  %v5041_v53 = vld [vmem:[%s10686_s2 + $0x3d8] sm:$0xf0] }
  0x84   :  { %1493 = vmatpush.bf16.msra.mxu2 %v4960_v41  ;;  %1481 = vmatmul.bf16.vlgmr.msrb.gmra.mxu0 %v7516_v54  ;;  %v6774_v41 = vld [vmem:[%s10686_s2 + $0x474] sm:$0xf0]  ;;  %v4612_v61 = vor.u32 %v6644_v47, %v4609_v48 }
  0x85   :  { %1536 = vmatpush.bf16.msra.mxu0 %v5328_v2  ;;  %1453 = vmatmul.bf16.vlgmr.msrb.gmra.mxu1 %v7518_v55  ;;  %v5120_v49 = vor.u32 %v6774_v41, %v5119_v40  ;;  %v4913_v40 = vld [vmem:[%s10686_s2 + $0x2d8] sm:$0xf0]  ;;  %v6664_v41 = vld [vmem:[%s10686_s2 + $0x10c] sm:$0xf] }
  0x86   :  { %1501 = vmatpush.bf16.msra.mxu1 %v5184_v58  ;;  %v6676_v58 = vld [vmem:[%s10686_s2 + $0x16c] sm:$0xf]  ;;  %v4692_v52 = vor.u32 %v6664_v41, %v4689_v43  ;;  %v5105_v43 = vld [vmem:[%s10686_s2 + $0x458] sm:$0xf0] }
  0x87   :  { %1466 = vmatpush.bf16.msra.mxu3 %v4688_v5  ;;  %v4740_v2 = vor.u32 %v6676_v58, %v4737_v59  ;;  %v5087_v5 = vld [vmem:[%s10686_s2 + $0x428] sm:$0xf]  ;;  %v6716_v59 = vld [vmem:[%s10686_s2 + $0x2ac] sm:$0xf] }
  0x88   :  { %1494 = vmatpush.bf16.msra.mxu2 %v4944_v0  ;;  %v4593_v0 = vld [vmem:[%s10686_s2 + $0x58] sm:$0xf0]  ;;  %v6768_v41 = vld [vmem:[%s10686_s2 + $0x44c] sm:$0xf] }
  0x89   :  { %1557 = vmatpush.bf16.msrb.mxu0 %v4804_v12  ;;  %v4596_v10 = vor.u32 %v6640_v63, %v4593_v0  ;;  %v6636_v12 = vld [vmem:[%s10686_s2 + $0x2c] sm:$0xf]  ;;  %v5297_v63 = vld [vmem:[%s10686_s2 + $0x5d8] sm:$0xf0] }
  0x8a   :  { %1502 = vmatpush.bf16.msra.mxu1 %v5168_v11  ;;  %1467 = vmatmul.bf16.vlgmr.msra.gmra.mxu3 %v7554_v8  ;;  %v5232_v11 = vor.u32 %v6802_v4, %v5231_v3  ;;  %v4580_v22 = vor.u32 %v6636_v12, %v4577_v13  ;;  %v5025_v4 = vld [vmem:[%s10686_s2 + $0x3b8] sm:$0xf0] }
  0x8b   :  { %1515 = vmatpush.bf16.msrb.mxu3 %v5312_v7  ;;  %1495 = vmatmul.bf16.vlgmr.msra.gmra.mxu2 %v7529_v60  ;;  %v6672_v7 = vld [vmem:[%s10686_s2 + $0x14c] sm:$0xf]  ;;  %v5281_v12 = vld [vmem:[%s10686_s2 + $0x5b8] sm:$0xf0] }
  0x8c   :  { %1543 = vmatpush.bf16.msrb.mxu2 %v4676_v6  ;;  %v6766_v6 = vld [vmem:[%s10686_s2 + $0x434] sm:$0xf0]  ;;  %v4724_v15 = vor.u32 %v6672_v7, %v4721_v9  ;;  %v6712_v9 = vld [vmem:[%s10686_s2 + $0x28c] sm:$0xf] }
  0x8d   :  { %1558 = vmatpush.bf16.msrb.mxu0 %v4788_v24  ;;  %v5088_v14 = vor.u32 %v6766_v6, %v5087_v5  ;;  %v4929_v24 = vld [vmem:[%s10686_s2 + $0x2f8] sm:$0xf0]  ;;  %v6780_v5 = vld [vmem:[%s10686_s2 + $0x4ac] sm:$0xf] }
  0x8e   :  { %1503 = vmatpush.bf16.msra.mxu1 %v5152_v23  ;;  %v6724_v23 = vld [vmem:[%s10686_s2 + $0x2ec] sm:$0xf]  ;;  %v5153_v6 = vld [vmem:[%s10686_s2 + $0x4b8] sm:$0xf0] }
  0x8f   :  { %1516 = vmatpush.bf16.msrb.mxu3 %v5296_v20  ;;  %v6668_v20 = vld [vmem:[%s10686_s2 + $0x12c] sm:$0xf]  ;;  %v4932_v34 = vor.u32 %v6724_v23, %v4929_v24  ;;  %v5265_v23 = vld [vmem:[%s10686_s2 + $0x598] sm:$0xf0] }
  0x90   :  { %1544 = vmatpush.bf16.msrb.mxu2 %v4660_v19  ;;  %v6762_v19 = vld [vmem:[%s10686_s2 + $0x414] sm:$0xf0]  ;;  %v4708_v30 = vor.u32 %v6668_v20, %v4705_v21  ;;  %v6708_v20 = vld [vmem:[%s10686_s2 + $0x26c] sm:$0xf]  ;;  %v4865_v21 = vld [vmem:[%s10686_s2 + $0x278] sm:$0xf0] }
  0x91   :  { %1559 = vmatpush.bf16.msrb.mxu0 %v4772_v36  ;;  %v5072_v29 = vor.u32 %v6762_v19, %v5071_v18  ;;  %v5185_v36 = vld [vmem:[%s10686_s2 + $0x4f8] sm:$0xf0] }
  0x92   :  { %1504 = vmatpush.bf16.msra.mxu1 %v5136_v35  ;;  %v6788_v35 = vld [vmem:[%s10686_s2 + $0x4ec] sm:$0xf]  ;;  %v5137_v18 = vld [vmem:[%s10686_s2 + $0x498] sm:$0xf0] }
  0x93   :  { %1517 = vmatpush.bf16.msrb.mxu3 %v5280_v32  ;;  %v6756_v32 = vld [vmem:[%s10686_s2 + $0x3ec] sm:$0xf]  ;;  %v5188_v48 = vor.u32 %v6788_v35, %v5185_v36  ;;  %v5140_v24 = vor.u32 %v6776_v17, %v5137_v18  ;;  %v8532_v17 = vld [vmem:[%s10689_s3] sm:$0xf] }
  0x94   :  { %1545 = vmatpush.bf16.msrb.mxu2 %v4644_v31  ;;  %5335 = vmatmul.msk.bf16.vlgmr.msra.gmra.mxu0 %vm1245_vm0, %v7645_v50  ;;  %v6794_v31 = vld [vmem:[%s10686_s2 + $0x514] sm:$0xf0]  ;;  %v5060_v47 = vor.u32 %v6756_v32, %v5057_v33  ;;  %v4849_v32 = vld [vmem:[%s10686_s2 + $0x258] sm:$0xf0]  ;;  %v6804_v33 = vld [vmem:[%s10686_s2 + $0x56c] sm:$0xf] }
  0x95   :  { %1560 = vmatpush.bf16.msrb.mxu0 %v4756_v51  ;;  %v5200_v44 = vor.u32 %v6794_v31, %v5199_v26  ;;  %v4916_v51 = vor.u32 %v6720_v38, %v4913_v40  ;;  %v4868_v26 = vor.u32 %v6708_v20, %v4865_v21  ;;  %v6704_v31 = vld [vmem:[%s10686_s2 + $0x24c] sm:$0xf]  ;;  %v4977_v40 = vld [vmem:[%s10686_s2 + $0x358] sm:$0xf0] }
  0x96   :  { %1505 = vmatpush.bf16.msra.mxu1 %v5120_v49  ;;  %v6752_v49 = vld [vmem:[%s10686_s2 + $0x3cc] sm:$0xf] }
  0x97   :  { %1518 = vmatpush.bf16.msrb.mxu3 %v5264_v46  ;;  %v5313_v46 = vld [vmem:[%s10686_s2 + $0x5f8] sm:$0xf0]  ;;  %v5044_v0 = vor.u32 %v6752_v49, %v5041_v53  ;;  %v6736_v38 = vld [vmem:[%s10686_s2 + $0x34c] sm:$0xf] }
  0x98   :  { %1546 = vmatpush.bf16.msrb.mxu2 %v4628_v45  ;;  %v6820_v45 = vld [vmem:[%s10686_s2 + $0x5ec] sm:$0xf]  ;;  %v4980_v49 = vor.u32 %v6736_v38, %v4977_v40  ;;  %v6838_v38 = vld [vmem:[%s10688_s4 + $0x54] sm:$0xf0] }
  0x99   :  { %1561 = vmatpush.bf16.msrb.mxu0 %v4740_v2  ;;  %v5316_v58 = vor.u32 %v6820_v45, %v5313_v46  ;;  %v6748_v2 = vld [vmem:[%s10686_s2 + $0x3ac] sm:$0xf]  ;;  %v4833_v46 = vld [vmem:[%s10686_s2 + $0x238] sm:$0xf0] }
  0x9a   :  { %1506 = vmatpush.bf16.msra.mxu1 %v5104_v1  ;;  %v5172_v1 = vor.u32 %v6784_v56, %v5169_v57  ;;  %v5028_v13 = vor.u32 %v6748_v2, %v5025_v4  ;;  %v6700_v45 = vld [vmem:[%s10686_s2 + $0x22c] sm:$0xf]  ;;  %v4961_v57 = vld [vmem:[%s10686_s2 + $0x338] sm:$0xf0] }
  0x9b   :  { %1519 = vmatpush.bf16.msrb.mxu3 %v5248_v62  ;;  %v6816_v62 = vld [vmem:[%s10686_s2 + $0x5cc] sm:$0xf]  ;;  %v4836_v56 = vor.u32 %v6700_v45, %v4833_v46  ;;  %v5217_v2 = vld [vmem:[%s10686_s2 + $0x538] sm:$0xf0] }
  0x9c   :  { %1547 = vmatpush.bf16.msrb.mxu2 %v4612_v61  ;;  %v4897_v61 = vld [vmem:[%s10686_s2 + $0x2b8] sm:$0xf0]  ;;  %v5300_v7 = vor.u32 %v6816_v62, %v5297_v63  ;;  %v6696_v63 = vld [vmem:[%s10686_s2 + $0x20c] sm:$0xf] }
  0x9d   :  { %1562 = vmatpush.bf16.msrb.mxu0 %v4724_v15  ;;  %v4900_v3 = vor.u32 %v6716_v59, %v4897_v61  ;;  %v6744_v15 = vld [vmem:[%s10686_s2 + $0x38c] sm:$0xf]  ;;  %v5089_v59 = vld [vmem:[%s10686_s2 + $0x438] sm:$0xf0] }
  0x9e   :  { %1507 = vmatpush.bf16.msra.mxu1 %v5088_v14  ;;  %v5156_v14 = vor.u32 %v6780_v5, %v5153_v6  ;;  %v5329_v4 = vld [vmem:[%s10686_s2 + $0x618] sm:$0xf0]  ;;  %v6792_v18 = vld [vmem:[%s10686_s2 + $0x50c] sm:$0xf] }
  0x9f   :  { %1520 = vmatpush.bf16.msrb.mxu3 %v5232_v11  ;;  %v6812_v11 = vld [vmem:[%s10686_s2 + $0x5ac] sm:$0xf] }
  0xa0   :  { %1548 = vmatpush.bf16.msrb.mxu2 %v4596_v10  ;;  %v4881_v10 = vld [vmem:[%s10686_s2 + $0x298] sm:$0xf0]  ;;  %v5284_v19 = vor.u32 %v6812_v11, %v5281_v12  ;;  %v6760_v12 = vld [vmem:[%s10686_s2 + $0x40c] sm:$0xf] }
  0xa1   :  { %1563 = vmatpush.bf16.msrb.mxu0 %v4708_v30  ;;  %v4884_v16 = vor.u32 %v6712_v9, %v4881_v10  ;;  %v6728_v10 = vld [vmem:[%s10686_s2 + $0x30c] sm:$0xf]  ;;  %v4945_v11 = vld [vmem:[%s10686_s2 + $0x318] sm:$0xf0] }
  0xa2   :  { %1508 = vmatpush.bf16.msra.mxu1 %v5072_v29  ;;  %v5121_v29 = vld [vmem:[%s10686_s2 + $0x478] sm:$0xf0]  ;;  %v4948_v20 = vor.u32 %v6728_v10, %v4945_v11 }
  0xa3   :  { %1521 = vmatpush.bf16.msrb.mxu3 %v5216_v25  ;;  %v6740_v25 = vld [vmem:[%s10686_s2 + $0x36c] sm:$0xf]  ;;  %v5124_v36 = vor.u32 %v6772_v28, %v5121_v29 }
  0xa4   :  { %1549 = vmatpush.bf16.msrb.mxu2 %v4580_v22  ;;  %v6808_v22 = vld [vmem:[%s10686_s2 + $0x58c] sm:$0xf]  ;;  %v4996_v35 = vor.u32 %v6740_v25, %v4993_v27  ;;  %v1258_v53 = vpop.f32.mrf.mxu0  ;;  %v6840_v27 = vld [vmem:[%s10688_s4 + $0x64] sm:$0xf0] }
  0xa5   :  { %1509 = vmatmul.bf16.vlgmr.msra.gmra.mxu1 %v7742_v37  ;;  %1564 = vmatpush.bf16.msrb.mxu0 %v4692_v52  ;;  %v5268_v30 = vor.u32 %v6808_v22, %v5265_v23  ;;  %v6732_v52 = vld [vmem:[%s10686_s2 + $0x32c] sm:$0xf]  ;;  %v5459_v23 = vld [vmem:[%s10688_s4 + $0xf0] sm:$0xf] }
  0xa6   :  { %1571 = vmatpush.bf16.msrb.mxu1 %v4932_v34  ;;  %v5249_v34 = vld [vmem:[%s10686_s2 + $0x578] sm:$0xf0]  ;;  %v4964_v5 = vor.u32 %v6732_v52, %v4961_v57  ;;  %v6852_v52 = vld [vmem:[%s10688_s4 + $0xc4] sm:$0xf0]  ;;  %v5363_v57 = vld [vmem:[%s10688_s4 + $0x30] sm:$0xf] }
  0xa7   :  { %1522 = vmatpush.bf16.msrb.mxu3 %v5200_v44  ;;  %v5252_v44 = vor.u32 %v6804_v33, %v5249_v34  ;;  %v5451_v33 = vld [vmem:[%s10688_s4 + $0xe0] sm:$0xf]  ;;  %v6856_v34 = vld [vmem:[%s10688_s4 + $0xe4] sm:$0xf0] }
  0xa8   :  { %1550 = vmatpush.bf16.msrb.mxu2 %v4564_v39  ;;  %1565 = vmatmul.bf16.vlgmr.msrb.gmra.mxu0 %v7554_v8  ;;  %v4852_v39 = vor.u32 %v6704_v31, %v4849_v32  ;;  %v8489_v61 = vpop.f32.mrf.mxu1 }
  0xa9   :  { %1613 = vmatpush.bf16.msra.mxu0 %v5316_v58  ;;  %v6764_v58 = vld [vmem:[%s10686_s2 + $0x42c] sm:$0xf] }
  0xaa   :  { %1572 = vmatpush.bf16.msrb.mxu1 %v4916_v51  ;;  %1523 = vmatmul.bf16.vlgmr.msrb.gmra.mxu3 %v7753_v42  ;;  %v5108_v51 = vor.u32 %v6768_v41, %v5105_v43  ;;  %v5092_v6 = vor.u32 %v6764_v58, %v5089_v59  ;;  %v5443_v43 = vld [vmem:[%s10688_s4 + $0xd0] sm:$0xf]  ;;  %v6834_v58 = vld [vmem:[%s10688_s4 + $0x34] sm:$0xf0] }
  0xab   :  { %1585 = vmatpush.bf16.msra.mxu3 %v5060_v47  ;;  %1551 = vmatmul.bf16.vlgmr.msrb.gmra.mxu2 %v7518_v55  ;;  %v5009_v55 = vld [vmem:[%s10686_s2 + $0x398] sm:$0xf0]  ;;  %v6800_v47 = vld [vmem:[%s10686_s2 + $0x54c] sm:$0xf]  ;;  %v1300_v31 = vpop.f32.mrf.mxu3 }
  0xac   :  { %1599 = vmatpush.bf16.msra.mxu2 %v5188_v48  ;;  %v5012_v8 = vor.u32 %v6744_v15, %v5009_v55  ;;  %v5233_v48 = vld [vmem:[%s10686_s2 + $0x558] sm:$0xf0]  ;;  %v5395_v15 = vld [vmem:[%s10688_s4 + $0x70] sm:$0xf]  ;;  %v1260_v29 = vpop.f32.mrf.mxu0 }
  0xad   :  { %1614 = vmatpush.bf16.msra.mxu0 %v5300_v7  ;;  %v5236_v62 = vor.u32 %v6800_v47, %v5233_v48  ;;  %v8509_v7 = vpop.f32.mrf.mxu2 }
  0xae   :  { %1573 = vmatpush.bf16.msrb.mxu1 %v4900_v3  ;;  %v6824_v3 = vld [vmem:[%s10686_s2 + $0x60c] sm:$0xf] }
  0xaf   :  { %1586 = vmatpush.bf16.msra.mxu3 %v5044_v0  ;;  %v4817_v0 = vld [vmem:[%s10686_s2 + $0x218] sm:$0xf0]  ;;  %v5332_v55 = vor.u32 %v6824_v3, %v5329_v4  ;;  %v5355_v4 = vld [vmem:[%s10688_s4 + $0x20] sm:$0xf] }
  0xb0   :  { %1600 = vmatpush.bf16.msra.mxu2 %v5172_v1  ;;  %v6796_v1 = vld [vmem:[%s10686_s2 + $0x52c] sm:$0xf]  ;;  %v4820_v9 = vor.u32 %v6696_v63, %v4817_v0  ;;  %v5364_v63 = vor.u32 %v6834_v58, %v5363_v57  ;;  %v5427_v0 = vld [vmem:[%s10688_s4 + $0xb0] sm:$0xf] }
  0xb1   :  { %1615 = vmatpush.bf16.msra.mxu0 %v5284_v19  ;;  %v5201_v19 = vld [vmem:[%s10686_s2 + $0x518] sm:$0xf0] }
  0xb2   :  { %1574 = vmatpush.bf16.msrb.mxu1 %v4884_v16  ;;  %v6842_v16 = vld [vmem:[%s10688_s4 + $0x74] sm:$0xf0]  ;;  %v5204_v25 = vor.u32 %v6792_v18, %v5201_v19 }
  0xb3   :  { %1587 = vmatpush.bf16.msra.mxu3 %v5028_v13  ;;  %v5220_v13 = vor.u32 %v6796_v1, %v5217_v2  ;;  %v5396_v22 = vor.u32 %v6842_v16, %v5395_v15  ;;  %v6850_v1 = vld [vmem:[%s10688_s4 + $0xb4] sm:$0xf0]  ;;  %v5347_v16 = vld [vmem:[%s10688_s4 + $0x10] sm:$0xf] }
  0xb4   :  { %1601 = vmatpush.bf16.msra.mxu2 %v5156_v14  ;;  %v5073_v14 = vld [vmem:[%s10686_s2 + $0x418] sm:$0xf0] }
  0xb5   :  { %1616 = vmatpush.bf16.msra.mxu0 %v5268_v30  ;;  %v5076_v21 = vor.u32 %v6760_v12, %v5073_v14  ;;  %v1274_v30 = vpop.f32.mrf.mxu1  ;;  %v1288_v40 = vpop.f32.mrf.mxu2  ;;  %v6848_v14 = vld [vmem:[%s10688_s4 + $0xa4] sm:$0xf0] }
  0xb6   :  { %1575 = vmatpush.bf16.msrb.mxu1 %v4868_v26  ;;  %v5387_v26 = vld [vmem:[%s10688_s4 + $0x60] sm:$0xf] }
  0xb7   :  { %1588 = vmatpush.bf16.msra.mxu3 %v5012_v8  ;;  %v6858_v8 = vld [vmem:[%s10688_s4 + $0xf4] sm:$0xf0]  ;;  %v5388_v32 = vor.u32 %v6840_v27, %v5387_v26  ;;  %v6841_v26 = vld [vmem:[%s10688_s4 + $0x74] sm:$0xf]  ;;  %v5397_v27 = vld [vmem:[%s10688_s4 + $0x78] sm:$0xf0] }
  0xb8   :  { %1602 = vmatpush.bf16.msra.mxu2 %v5140_v24  ;;  %v257_v24 = vperm.slane %v8532_v17, 0  ;;  %v5460_v28 = vor.u32 %v6858_v8, %v5459_v23  ;;  %v5339_v8 = vld [vmem:[%s10688_s4] sm:$0xf] }
  0xb9   :  { %1617 = vmatpush.bf16.msra.mxu0 %v5252_v44  ;;  %v6854_v44 = vld [vmem:[%s10688_s4 + $0xd4] sm:$0xf0] }
  0xba   :  { %1576 = vmatpush.bf16.msrb.mxu1 %v4852_v39  ;;  %v5452_v39 = vor.u32 %v6856_v34, %v5451_v33  ;;  %v5400_v34 = vor.u32 %v6841_v26, %v5397_v27  ;;  %v5413_v26 = vld [vmem:[%s10688_s4 + $0x98] sm:$0xf0] }
  0xbb   :  { %1589 = vmatpush.bf16.msra.mxu3 %v4996_v35  ;;  %v1259_v35 = vadd.f32 %v1258_v53, %v257_v24 }
  0xbc   :  { %1603 = vmatpush.bf16.msra.mxu2 %v5124_v36  ;;  %v1261_v36 = vadd.f32 %v1260_v29, %v257_v24  ;;  %v6828_v24 = vld [vmem:[%s10688_s4 + $0x4] sm:$0xf0] }
  0xbd   :  { %1618 = vmatpush.bf16.msra.mxu0 %v5236_v62  ;;  %v1273_v45 = vadd.f32 %v8489_v61, %v1259_v35  ;;  %v1302_v61 = vpop.f32.mrf.mxu3  ;;  %v1342_v62 = vpop.f32.mrf.mxu2  ;;  %v5340_v29 = vor.u32 %v6828_v24, %v5339_v8 }
  0xbe   :  { %1577 = vmatpush.bf16.msrb.mxu1 %v4836_v56  ;;  %v1275_v46 = vadd.f32 %v1274_v30, %v1261_v36  ;;  %v5403_v30 = vld [vmem:[%s10688_s4 + $0x80] sm:$0xf]  ;;  %v6857_v36 = vld [vmem:[%s10688_s4 + $0xf4] sm:$0xf] }
  0xbf   :  { %1590 = vmatpush.bf16.msra.mxu3 %v4980_v49  ;;  %v1287_v53 = vadd.f32 %v8509_v7, %v1273_v45  ;;  %v6855_v45 = vld [vmem:[%s10688_s4 + $0xe4] sm:$0xf] }
  0xc0   :  { %1604 = vmatpush.bf16.msra.mxu2 %v5108_v51  ;;  %v5435_v51 = vld [vmem:[%s10688_s4 + $0xc0] sm:$0xf]  ;;  %v1289_v56 = vadd.f32 %v1288_v40, %v1275_v46  ;;  %v5453_v46 = vld [vmem:[%s10688_s4 + $0xe8] sm:$0xf0] }
  0xc1   :  { %1619 = vmatpush.bf16.msra.mxu0 %v5220_v13  ;;  %v1314_v47 = vpop.f32.mrf.mxu0  ;;  %v5436_v59 = vor.u32 %v6852_v52, %v5435_v51  ;;  %v1301_v2 = vadd.f32 %v1300_v31, %v1287_v53  ;;  %v5419_v13 = vld [vmem:[%s10688_s4 + $0xa0] sm:$0xf]  ;;  %v6844_v31 = vld [vmem:[%s10688_s4 + $0x84] sm:$0xf0]  ;;  %v6835_v51 = vld [vmem:[%s10688_s4 + $0x44] sm:$0xf] }
  0xc2   :  { %1578 = vmatpush.bf16.msrb.mxu1 %v4820_v9  ;;  %v1328_v48 = vpop.f32.mrf.mxu1  ;;  %v1303_v3 = vadd.f32 %v1302_v61, %v1289_v56  ;;  %v5404_v35 = vor.u32 %v6844_v31, %v5403_v30  ;;  %v5373_v52 = vld [vmem:[%s10688_s4 + $0x48] sm:$0xf0] }
  0xc3   :  { %1591 = vmatpush.bf16.msra.mxu3 %v4964_v5  ;;  %v6832_v5 = vld [vmem:[%s10688_s4 + $0x24] sm:$0xf0]  ;;  %v1315_v9 = vadd.f32 %v1314_v47, %v1301_v2  ;;  %v5376_v58 = vor.u32 %v6835_v51, %v5373_v52  ;;  %v5437_v61 = vld [vmem:[%s10688_s4 + $0xc8] sm:$0xf0]  ;;  %v6849_v2 = vld [vmem:[%s10688_s4 + $0xb4] sm:$0xf] }
  0xc4   :  { %1605 = vmatpush.bf16.msra.mxu2 %v5092_v6  ;;  %v5428_v6 = vor.u32 %v6850_v1, %v5427_v0  ;;  %v5356_v12 = vor.u32 %v6832_v5, %v5355_v4  ;;  %v6831_v4 = vld [vmem:[%s10688_s4 + $0x24] sm:$0xf]  ;;  %v5357_v5 = vld [vmem:[%s10688_s4 + $0x28] sm:$0xf0]  ;;  %v6866_v51 = vld [vmem:[%s10688_s4 + $0x134] sm:$0xf0] }
  0xc5   :  { %1579 = vmatmul.bf16.vlgmr.msrb.gmra.mxu1 %v7516_v54  ;;  %1620 = vmatpush.bf16.msra.mxu0 %v5204_v25  ;;  %v5379_v54 = vld [vmem:[%s10688_s4 + $0x50] sm:$0xf]  ;;  %v1329_v18 = vadd.f32 %v1328_v48, %v1315_v9  ;;  %v1344_v19 = vpop.f32.mrf.mxu2  ;;  %v6853_v48 = vld [vmem:[%s10688_s4 + $0xd4] sm:$0xf] }
  0xc6   :  { %1634 = vmatpush.bf16.msra.mxu1 %v5332_v55  ;;  %v5380_v41 = vor.u32 %v6838_v38, %v5379_v54  ;;  %v5420_v55 = vor.u32 %v6848_v14, %v5419_v13  ;;  %v5461_v54 = vld [vmem:[%s10688_s4 + $0xf8] sm:$0xf0]  ;;  %v6839_v38 = vld [vmem:[%s10688_s4 + $0x64] sm:$0xf] }
  0xc7   :  { %1592 = vmatpush.bf16.msra.mxu3 %v4948_v20  ;;  %v5464_v40 = vor.u32 %v6857_v36, %v5461_v54 }
  0xc8   :  { %1606 = vmatpush.bf16.msra.mxu2 %v5076_v21  ;;  %1621 = vmatmul.bf16.vlgmr.msra.gmra.mxu0 %v7753_v42  ;;  %v5444_v42 = vor.u32 %v6854_v44, %v5443_v43  ;;  %v5411_v21 = vld [vmem:[%s10688_s4 + $0x90] sm:$0xf] }
  0xc9   :  { %v1316_v7 = vpop.f32.mrf.mxu0  ;;  %v8645_v33 = vpop.f32.mrf.mxu3 }
  0xca   :  { %2057 = vmatpush.bf16.msrb.mxu1 %v5460_v28  ;;  %1593 = vmatmul.bf16.vlgmr.msra.gmra.mxu3 %v7529_v60  ;;  %v5371_v60 = vld [vmem:[%s10688_s4 + $0x40] sm:$0xf]  ;;  %v1317_v10 = vadd.f32 %v1316_v7, %v1303_v3  ;;  %v1330_v11 = vpop.f32.mrf.mxu1  ;;  %v1343_v28 = vadd.f32 %v1342_v62, %v1329_v18  ;;  %v6833_v62 = vld [vmem:[%s10688_s4 + $0x34] sm:$0xf]  ;;  %v5429_v3 = vld [vmem:[%s10688_s4 + $0xb8] sm:$0xf0] }
  0xcb   :  { %2043 = vmatpush.bf16.msrb.mxu3 %v5396_v22  ;;  %1607 = vmatmul.bf16.vlgmr.msra.gmra.mxu2 %v7742_v37  ;;  %v6836_v37 = vld [vmem:[%s10688_s4 + $0x44] sm:$0xf0]  ;;  %v6846_v22 = vld [vmem:[%s10688_s4 + $0x94] sm:$0xf0]  ;;  %v5349_v18 = vld [vmem:[%s10688_s4 + $0x18] sm:$0xf0] }
  0xcc   :  { %v5372_v49 = vor.u32 %v6836_v37, %v5371_v60  ;;  %v1331_v15 = vadd.f32 %v1330_v11, %v1317_v10  ;;  %v5412_v25 = vor.u32 %v6846_v22, %v5411_v21  ;;  %v6837_v60 = vld [vmem:[%s10688_s4 + $0x54] sm:$0xf]  ;;  %v5381_v37 = vld [vmem:[%s10688_s4 + $0x58] sm:$0xf0]  ;;  %v5523_v10 = vld [vmem:[%s10688_s4 + $0x170] sm:$0xf] }
  0xcd   :  { %v5384_v47 = vor.u32 %v6837_v60, %v5381_v37  ;;  %v6874_v11 = vld [vmem:[%s10688_s4 + $0x174] sm:$0xf0]  ;;  %v5515_v21 = vld [vmem:[%s10688_s4 + $0x160] sm:$0xf]  ;;  %v6872_v22 = vld [vmem:[%s10688_s4 + $0x164] sm:$0xf0] }
  0xce   :  { %2058 = vmatpush.bf16.msrb.mxu1 %v5452_v39  ;;  %v1345_v23 = vadd.f32 %v1344_v19, %v1331_v15  ;;  %v5389_v39 = vld [vmem:[%s10688_s4 + $0x68] sm:$0xf0]  ;;  %v1370_v56 = vpop.f32.mrf.mxu2  ;;  %v5524_v13 = vor.u32 %v6874_v11, %v5523_v10  ;;  %v5360_v15 = vor.u32 %v6831_v4, %v5357_v5  ;;  %v5516_v8 = vor.u32 %v6872_v22, %v5515_v21  ;;  %v6868_v60 = vld [vmem:[%s10688_s4 + $0x144] sm:$0xf0]  ;;  %v5467_v10 = vld [vmem:[%s10688_s4 + $0x100] sm:$0xf] }
  0xcf   :  { %2044 = vmatpush.bf16.msrb.mxu3 %v5388_v32  ;;  %v5392_v44 = vor.u32 %v6839_v38, %v5389_v39  ;;  %v6843_v39 = vld [vmem:[%s10688_s4 + $0x84] sm:$0xf]  ;;  %v6860_v11 = vld [vmem:[%s10688_s4 + $0x104] sm:$0xf0]  ;;  %v6890_v21 = vld [vmem:[%s10688_s4 + $0x1f4] sm:$0xf0] }
  0xd0   :  { %v1645_v32 = vmax.f32 %v1345_v23, 0.0  ;;  %2071 = vmatpush.bf16.msrb.mxu2 %v5524_v13  ;;  %v5468_v13 = vor.u32 %v6860_v11, %v5467_v10 }
  0xd1   :  { %v1358_v57 = vpop.f32.mrf.mxu3 }
  0xd2   :  { %2059 = vmatpush.bf16.msrb.mxu1 %v5444_v42  ;;  %v5456_v42 = vor.u32 %v6855_v45, %v5453_v46  ;;  %v5499_v46 = vld [vmem:[%s10688_s4 + $0x140] sm:$0xf] }
  0xd3   :  { %2045 = vmatpush.bf16.msrb.mxu3 %v5380_v41  ;;  %v1641_v41 = vmax.f32 %v1343_v28, 0.0  ;;  %v6827_v28 = vld [vmem:[%s10688_s4 + $0x4] sm:$0xf] }
  0xd4   :  { %2072 = vmatpush.bf16.msrb.mxu2 %v5516_v8  ;;  %v6869_v8 = vld [vmem:[%s10688_s4 + $0x154] sm:$0xf] }
  0xd5   :  { %5336 = vmatmul.msk.bf16.vlgmr.msra.gmra.mxu1 %vm1245_vm0, %v7645_v50  ;;  %v6830_v50 = vld [vmem:[%s10688_s4 + $0x14] sm:$0xf0]  ;;  %v8659_v43 = vpack.c.bf16 %v1645_v32, %v1641_v41  ;;  %v5507_v32 = vld [vmem:[%s10688_s4 + $0x150] sm:$0xf] }
  0xd6   :  { %2060 = vmatpush.bf16.msrb.mxu1 %v5436_v59  ;;  %v5348_v20 = vor.u32 %v6830_v50, %v5347_v16  ;;  %v6851_v59 = vld [vmem:[%s10688_s4 + $0xc4] sm:$0xf]  ;;  %v1372_v14 = vpop.f32.mrf.mxu2  ;;  %v5421_v50 = vld [vmem:[%s10688_s4 + $0xa8] sm:$0xf0] }
  0xd7   :  { %2046 = vmatpush.bf16.msrb.mxu3 %v5372_v49  ;;  %v5445_v49 = vld [vmem:[%s10688_s4 + $0xd8] sm:$0xf0]  ;;  %v5440_v0 = vor.u32 %v6851_v59, %v5437_v61  ;;  %v6847_v16 = vld [vmem:[%s10688_s4 + $0xa4] sm:$0xf]  ;;  %v5483_v61 = vld [vmem:[%s10688_s4 + $0x120] sm:$0xf] }
  0xd8   :  { %v5448_v53 = vor.u32 %v6853_v48, %v5445_v49  ;;  %v5424_v19 = vor.u32 %v6847_v16, %v5421_v50  ;;  %v5491_v49 = vld [vmem:[%s10688_s4 + $0x130] sm:$0xf]  ;;  %v6871_v50 = vld [vmem:[%s10688_s4 + $0x164] sm:$0xf] }
  0xda   :  { %2061 = vmatpush.bf16.msrb.mxu1 %v5428_v6  ;;  %v5432_v6 = vor.u32 %v6849_v2, %v5429_v3 }
  0xdb   :  { %2047 = vmatpush.bf16.msrb.mxu3 %v5364_v63  ;;  %v5365_v63 = vld [vmem:[%s10688_s4 + $0x38] sm:$0xf0] }
  0xdc   :  { %v5368_v1 = vor.u32 %v6833_v62, %v5365_v63  ;;  %v6864_v62 = vld [vmem:[%s10688_s4 + $0x124] sm:$0xf0] }
  0xde   :  { %2062 = vmatpush.bf16.msrb.mxu1 %v5420_v55  ;;  %v6829_v55 = vld [vmem:[%s10688_s4 + $0x14] sm:$0xf] }
  0xdf   :  { %2048 = vmatpush.bf16.msrb.mxu3 %v5356_v12  ;;  %v258_v12 = vperm.slane %v8532_v17, 1  ;;  %v5352_v24 = vor.u32 %v6829_v55, %v5349_v18  ;;  %v5517_v55 = vld [vmem:[%s10688_s4 + $0x168] sm:$0xf0] }
  0xe1   :  { %v1384_v7 = vpop.f32.mrf.mxu0  ;;  %v1357_v23 = vadd.f32 %v8645_v33, %v258_v12  ;;  %v1359_v27 = vadd.f32 %v1358_v57, %v258_v12  ;;  %v6870_v33 = vld [vmem:[%s10688_s4 + $0x154] sm:$0xf0] }
  0xe2   :  { %2063 = vmatpush.bf16.msrb.mxu1 %v5412_v25  ;;  %v6845_v25 = vld [vmem:[%s10688_s4 + $0x94] sm:$0xf] }
  0xe3   :  { %2049 = vmatpush.bf16.msrb.mxu3 %v5348_v20  ;;  %v1398_v20 = vpop.f32.mrf.mxu1  ;;  %v5416_v30 = vor.u32 %v6845_v25, %v5413_v26  ;;  %v1373_v41 = vadd.f32 %v1372_v14, %v1359_v27  ;;  %v6873_v14 = vld [vmem:[%s10688_s4 + $0x174] sm:$0xf]  ;;  %v5579_v26 = vld [vmem:[%s10688_s4 + $0x1e0] sm:$0xf]  ;;  %v6888_v27 = vld [vmem:[%s10688_s4 + $0x1e4] sm:$0xf0] }
  0xe6   :  { %2064 = vmatpush.bf16.msrb.mxu1 %v5404_v35  ;;  %v5508_v35 = vor.u32 %v6870_v33, %v5507_v32  ;;  %v5571_v32 = vld [vmem:[%s10688_s4 + $0x1d0] sm:$0xf]  ;;  %v6886_v33 = vld [vmem:[%s10688_s4 + $0x1d4] sm:$0xf0] }
  0xe7   :  { %2050 = vmatpush.bf16.msrb.mxu3 %v5340_v29  ;;  %v5341_v29 = vld [vmem:[%s10688_s4 + $0x8] sm:$0xf0] }
  0xe8   :  { %v5344_v38 = vor.u32 %v6827_v28, %v5341_v29  ;;  %2073 = vmatpush.bf16.msrb.mxu2 %v5508_v35  ;;  %v5580_v28 = vor.u32 %v6888_v27, %v5579_v26  ;;  %v6867_v29 = vld [vmem:[%s10688_s4 + $0x144] sm:$0xf]  ;;  %v5572_v35 = vor.u32 %v6886_v33, %v5571_v32  ;;  %v5573_v32 = vld [vmem:[%s10688_s4 + $0x1d8] sm:$0xf0] }
  0xe9   :  { %v1412_v9 = vpop.f32.mrf.mxu3  ;;  %v1386_v36 = vpop.f32.mrf.mxu0 }
  0xea   :  { %2113 = vmatpush.bf16.msra.mxu1 %v5464_v40  ;;  %2051 = vmatmul.bf16.vlgmr.msrb.gmra.mxu3 %v8659_v43  ;;  %v5405_v40 = vld [vmem:[%s10688_s4 + $0x88] sm:$0xf0]  ;;  %v1387_v37 = vadd.f32 %v1386_v36, %v1373_v41  ;;  %v5563_v41 = vld [vmem:[%s10688_s4 + $0x1c0] sm:$0xf] }
  0xeb   :  { %2099 = vmatpush.bf16.msra.mxu3 %v5400_v34  ;;  %v1371_v34 = vadd.f32 %v1370_v56, %v1357_v23  ;;  %v5408_v45 = vor.u32 %v6843_v39, %v5405_v40  ;;  %v259_v39 = vperm.slane %v8532_v17, 2 }
  0xee   :  { %2114 = vmatpush.bf16.msra.mxu1 %v5456_v42  ;;  %v1426_v54 = vpop.f32.mrf.mxu2  ;;  %v5500_v42 = vor.u32 %v6868_v60, %v5499_v46  ;;  %v6863_v60 = vld [vmem:[%s10688_s4 + $0x124] sm:$0xf] }
  0xef   :  { %2100 = vmatpush.bf16.msra.mxu3 %v5392_v44  ;;  %v1385_v44 = vadd.f32 %v1384_v7, %v1371_v34 }
  0xf0   :  { %2074 = vmatpush.bf16.msrb.mxu2 %v5500_v42 }
  0xf1   :  { %v1414_v31 = vpop.f32.mrf.mxu3  ;;  %v1399_v48 = vadd.f32 %v1398_v20, %v1385_v44  ;;  %v5587_v20 = vld [vmem:[%s10688_s4 + $0x1f0] sm:$0xf]  ;;  %v6884_v44 = vld [vmem:[%s10688_s4 + $0x1c4] sm:$0xf0] }
  0xf2   :  { %2115 = vmatpush.bf16.msra.mxu1 %v5448_v53  ;;  %v5492_v53 = vor.u32 %v6866_v51, %v5491_v49  ;;  %v5588_v22 = vor.u32 %v6890_v21, %v5587_v20  ;;  %v5564_v46 = vor.u32 %v6884_v44, %v5563_v41  ;;  %v6882_v49 = vld [vmem:[%s10688_s4 + $0x1b4] sm:$0xf0] }
  0xf3   :  { %2101 = vmatpush.bf16.msra.mxu3 %v5384_v47  ;;  %v1400_v47 = vpop.f32.mrf.mxu1  ;;  %v1413_v56 = vadd.f32 %v1412_v9, %v1399_v48  ;;  %v5555_v48 = vld [vmem:[%s10688_s4 + $0x1b0] sm:$0xf] }
  0xf4   :  { %v1401_v57 = vadd.f32 %v1400_v47, %v1387_v37  ;;  %2075 = vmatpush.bf16.msrb.mxu2 %v5492_v53  ;;  %2085 = vmatpush.bf16.msrb.mxu0 %v5588_v22  ;;  %v5485_v37 = vld [vmem:[%s10688_s4 + $0x128] sm:$0xf0]  ;;  %v5556_v51 = vor.u32 %v6882_v49, %v5555_v48 }
  0xf5   :  { %v1427_v63 = vadd.f32 %v1426_v54, %v1413_v56  ;;  %v6865_v54 = vld [vmem:[%s10688_s4 + $0x134] sm:$0xf]  ;;  %v5488_v47 = vor.u32 %v6863_v60, %v5485_v37  ;;  %v5557_v60 = vld [vmem:[%s10688_s4 + $0x1b8] sm:$0xf0] }
  0xf6   :  { %2116 = vmatpush.bf16.msra.mxu1 %v5440_v0  ;;  %v1428_v59 = vpop.f32.mrf.mxu2  ;;  %v5484_v0 = vor.u32 %v6864_v62, %v5483_v61 }
  0xf7   :  { %2102 = vmatpush.bf16.msra.mxu3 %v5376_v58  ;;  %v1415_v58 = vadd.f32 %v1414_v31, %v1401_v57  ;;  %v6861_v57 = vld [vmem:[%s10688_s4 + $0x114] sm:$0xf] }
  0xf8   :  { %2076 = vmatpush.bf16.msrb.mxu2 %v5484_v0  ;;  %2086 = vmatpush.bf16.msrb.mxu0 %v5580_v28  ;;  %v6880_v0 = vld [vmem:[%s10688_s4 + $0x1a4] sm:$0xf0] }
  0xf9   :  { %v1440_v52 = vpop.f32.mrf.mxu3  ;;  %v1429_v2 = vadd.f32 %v1428_v59, %v1415_v58  ;;  %v5477_v58 = vld [vmem:[%s10688_s4 + $0x118] sm:$0xf0] }
  0xfa   :  { %2117 = vmatpush.bf16.msra.mxu1 %v5432_v6  ;;  %v1441_v3 = vadd.f32 %v1440_v52, %v1427_v63  ;;  %v5480_v62 = vor.u32 %v6861_v57, %v5477_v58  ;;  %v5547_v63 = vld [vmem:[%s10688_s4 + $0x1a0] sm:$0xf]  ;;  %v5541_v57 = vld [vmem:[%s10688_s4 + $0x198] sm:$0xf0] }
  0xfb   :  { %2103 = vmatpush.bf16.msra.mxu3 %v5368_v1  ;;  %v5475_v1 = vld [vmem:[%s10688_s4 + $0x110] sm:$0xf] }
  0xfc   :  { %v1642_v7 = vmax.f32 %v1441_v3, 0.0  ;;  %2087 = vmatpush.bf16.msrb.mxu0 %v5572_v35  ;;  %v5469_v3 = vld [vmem:[%s10688_s4 + $0x108] sm:$0xf0] }
  0xfe   :  { %2118 = vmatpush.bf16.msra.mxu1 %v5424_v19  ;;  %v5520_v19 = vor.u32 %v6871_v50, %v5517_v55 }
  0xff   :  { %2104 = vmatpush.bf16.msra.mxu3 %v5360_v15  ;;  %v5525_v15 = vld [vmem:[%s10688_s4 + $0x178] sm:$0xf0] }
 0x100   :  { %v5528_v16 = vor.u32 %v6873_v14, %v5525_v15  ;;  %2088 = vmatpush.bf16.msrb.mxu0 %v5564_v46  ;;  %v5531_v15 = vld [vmem:[%s10688_s4 + $0x180] sm:$0xf]  ;;  %v6881_v46 = vld [vmem:[%s10688_s4 + $0x1b4] sm:$0xf] }
 0x101   :  { %v1442_v5 = vpop.f32.mrf.mxu3  ;;  %v1482_v18 = vpop.f32.mrf.mxu0  ;;  %v5560_v37 = vor.u32 %v6881_v46, %v5557_v60  ;;  %v5675_v60 = vld [vmem:[%s10690_s6 + $0xa0] sm:$0xf] }
 0x102   :  { %2119 = vmatpush.bf16.msra.mxu1 %v5416_v30  ;;  %v1443_v6 = vadd.f32 %v1442_v5, %v1429_v2  ;;  %v1454_v23 = vpop.f32.mrf.mxu1  ;;  %v5501_v30 = vld [vmem:[%s10688_s4 + $0x148] sm:$0xf0]  ;;  %v6859_v2 = vld [vmem:[%s10688_s4 + $0x104] sm:$0xf] }
 0x103   :  { %2105 = vmatpush.bf16.msra.mxu3 %v5352_v24  ;;  %v5509_v24 = vld [vmem:[%s10688_s4 + $0x158] sm:$0xf0]  ;;  %v5504_v31 = vor.u32 %v6867_v29, %v5501_v30  ;;  %v1455_v42 = vadd.f32 %v1454_v23, %v259_v39 }
 0x104   :  { %v1646_v9 = vmax.f32 %v1443_v6, 0.0  ;;  %v5512_v25 = vor.u32 %v6869_v8, %v5509_v24  ;;  %2089 = vmatpush.bf16.msrb.mxu0 %v5556_v51  ;;  %v5472_v6 = vor.u32 %v6859_v2, %v5469_v3  ;;  %v6887_v24 = vld [vmem:[%s10688_s4 + $0x1e4] sm:$0xf] }
 0x106   :  { %2120 = vmatpush.bf16.msra.mxu1 %v5408_v45  ;;  %v1650_v12 = vpack.c.bf16 %v1646_v9, %v1642_v7  ;;  %v5539_v7 = vld [vmem:[%s10688_s4 + $0x190] sm:$0xf]  ;;  %v6878_v9 = vld [vmem:[%s10688_s4 + $0x194] sm:$0xf0] }
 0x107   :  { %2106 = vmatpush.bf16.msra.mxu3 %v5344_v38  ;;  %v5493_v38 = vld [vmem:[%s10688_s4 + $0x138] sm:$0xf0]  ;;  %v5540_v10 = vor.u32 %v6878_v9, %v5539_v7 }
 0x108   :  { %2065 = vmatmul.bf16.vlgmr.msrb.gmra.mxu1 %v1650_v12  ;;  %v5496_v40 = vor.u32 %v6865_v54, %v5493_v38 }
 0x109   :  { %v1484_v36 = vpop.f32.mrf.mxu0 }
 0x10a   :  { %2107 = vmatmul.bf16.vlgmr.msra.gmra.mxu3 %v8659_v43  ;;  %v6862_v43 = vld [vmem:[%s10688_s4 + $0x114] sm:$0xf0]  ;;  %v1456_v45 = vpop.f32.mrf.mxu1 }
 0x10b   :  { %v5476_v4 = vor.u32 %v6862_v43, %v5475_v1  ;;  %v1457_v61 = vadd.f32 %v1456_v45, %v259_v39  ;;  %v5548_v43 = vor.u32 %v6880_v0, %v5547_v63  ;;  %v6883_v39 = vld [vmem:[%s10688_s4 + $0x1c4] sm:$0xf]  ;;  %v260_v45 = vperm.slane %v8532_v17, 3 }
 0x10d   :  { %2077 = vmatpush.bf16.msrb.mxu2 %v5476_v4  ;;  %v1468_v34 = vpop.f32.mrf.mxu3  ;;  %2090 = vmatpush.bf16.msrb.mxu0 %v5548_v43 }
 0x10e   :  { %v1496_v53 = vpop.f32.mrf.mxu2  ;;  %v1469_v59 = vadd.f32 %v1468_v34, %v1455_v42  ;;  %v6879_v42 = vld [vmem:[%s10688_s4 + $0x1a4] sm:$0xf] }
 0x110   :  { %v1483_v4 = vadd.f32 %v1482_v18, %v1469_v59  ;;  %v6889_v18 = vld [vmem:[%s10688_s4 + $0x1f4] sm:$0xf]  ;;  %v6875_v59 = vld [vmem:[%s10688_s4 + $0x184] sm:$0xf] }
 0x111   :  { %2078 = vmatpush.bf16.msrb.mxu2 %v5468_v13  ;;  %v1538_v52 = vpop.f32.mrf.mxu0  ;;  %2091 = vmatpush.bf16.msrb.mxu0 %v5540_v10 }
 0x115   :  { %2127 = vmatpush.bf16.msra.mxu2 %v5528_v16  ;;  %v1470_v56 = vpop.f32.mrf.mxu3  ;;  %v6876_v16 = vld [vmem:[%s10688_s4 + $0x184] sm:$0xf0] }
 0x116   :  { %v1471_v5 = vadd.f32 %v1470_v56, %v1457_v61  ;;  %v1498_v50 = vpop.f32.mrf.mxu2  ;;  %v5532_v55 = vor.u32 %v6876_v16, %v5531_v15  ;;  %v6877_v56 = vld [vmem:[%s10688_s4 + $0x194] sm:$0xf]  ;;  %v5533_v61 = vld [vmem:[%s10688_s4 + $0x188] sm:$0xf0] }
 0x117   :  { %v5544_v58 = vor.u32 %v6877_v56, %v5541_v57  ;;  %v5685_v56 = vld [vmem:[%s10690_s6 + $0xb8] sm:$0xf0] }
 0x118   :  { %2121 = vmatmul.bf16.vlgmr.msra.gmra.mxu1 %v1650_v12  ;;  %v1497_v12 = vadd.f32 %v1496_v53, %v1483_v4  ;;  %v1485_v13 = vadd.f32 %v1484_v36, %v1471_v5  ;;  %2092 = vmatpush.bf16.msrb.mxu0 %v5532_v55 }
 0x119   :  { %2128 = vmatpush.bf16.msra.mxu2 %v5520_v19  ;;  %v1540_v14 = vpop.f32.mrf.mxu0  ;;  %v5589_v19 = vld [vmem:[%s10688_s4 + $0x1f8] sm:$0xf0] }
 0x11a   :  { %v5592_v21 = vor.u32 %v6889_v18, %v5589_v19  ;;  %v1499_v23 = vadd.f32 %v1498_v50, %v1485_v13 }
 0x11c   :  { %2141 = vmatpush.bf16.msra.mxu0 %v5592_v21 }
 0x11d   :  { %2129 = vmatpush.bf16.msra.mxu2 %v5512_v25  ;;  %v5581_v25 = vld [vmem:[%s10688_s4 + $0x1e8] sm:$0xf0] }
 0x11e   :  { %v5584_v27 = vor.u32 %v6887_v24, %v5581_v25  ;;  %v5709_v25 = vld [vmem:[%s10690_s6 + $0xf0] sm:$0xf0] }
 0x120   :  { %2142 = vmatpush.bf16.msra.mxu0 %v5584_v27  ;;  %v6922_v27 = vld [vmem:[%s10690_s6 + $0xf4] sm:$0xf0] }
 0x121   :  { %2130 = vmatpush.bf16.msra.mxu2 %v5504_v31  ;;  %v6885_v31 = vld [vmem:[%s10688_s4 + $0x1d4] sm:$0xf] }
 0x122   :  { %v1510_v1 = vpop.f32.mrf.mxu1  ;;  %v5576_v35 = vor.u32 %v6885_v31, %v5573_v32  ;;  %v5717_v31 = vld [vmem:[%s10690_s6 + $0xf8] sm:$0xf0] }
 0x123   :  { %v1511_v20 = vadd.f32 %v1510_v1, %v1497_v12  ;;  %v5536_v1 = vor.u32 %v6875_v59, %v5533_v61  ;;  %v6909_v59 = vld [vmem:[%s10690_s6 + $0x8c] sm:$0xf0] }
 0x124   :  { %2143 = vmatpush.bf16.msra.mxu0 %v5576_v35  ;;  %v6915_v35 = vld [vmem:[%s10690_s6 + $0xc4] sm:$0xf] }
 0x125   :  { %2131 = vmatpush.bf16.msra.mxu2 %v5496_v40  ;;  %v1566_v34 = vpop.f32.mrf.mxu0  ;;  %v5565_v40 = vld [vmem:[%s10688_s4 + $0x1c8] sm:$0xf0] }
 0x126   :  { %v5568_v44 = vor.u32 %v6883_v39, %v5565_v40  ;;  %v6918_v39 = vld [vmem:[%s10690_s6 + $0xd4] sm:$0xf0] }
 0x128   :  { %2144 = vmatpush.bf16.msra.mxu0 %v5568_v44  ;;  %v6916_v44 = vld [vmem:[%s10690_s6 + $0xcc] sm:$0xf] }
 0x129   :  { %2132 = vmatpush.bf16.msra.mxu2 %v5488_v47  ;;  %v5549_v47 = vld [vmem:[%s10688_s4 + $0x1a8] sm:$0xf0] }
 0x12a   :  { %v1512_v22 = vpop.f32.mrf.mxu1  ;;  %v5552_v51 = vor.u32 %v6879_v42, %v5549_v47  ;;  %v6911_v42 = vld [vmem:[%s10690_s6 + $0xa4] sm:$0xf] }
 0x12b   :  { %v1513_v26 = vadd.f32 %v1512_v22, %v1499_v23  ;;  %v5707_v22 = vld [vmem:[%s10690_s6 + $0xe0] sm:$0xf]  ;;  %v6921_v23 = vld [vmem:[%s10690_s6 + $0xec] sm:$0xf0] }
 0x12c   :  { %2145 = vmatpush.bf16.msra.mxu0 %v5560_v37  ;;  %v5708_v24 = vor.u32 %v6921_v23, %v5707_v22  ;;  %v6913_v37 = vld [vmem:[%s10690_s6 + $0xac] sm:$0xf0]  ;;  %v5629_v22 = vld [vmem:[%s10690_s6 + $0x50] sm:$0xf0]  ;;  %v5635_v23 = vld [vmem:[%s10690_s6 + $0x48] sm:$0xf] }
 0x12d   :  { %2133 = vmatpush.bf16.msra.mxu2 %v5480_v62  ;;  %v1524_v11 = vpop.f32.mrf.mxu3  ;;  %v1568_v49 = vpop.f32.mrf.mxu0  ;;  %v5676_v47 = vor.u32 %v6913_v37, %v5675_v60  ;;  %v5595_v37 = vld [vmem:[%s10690_s6] sm:$0xf] }
 0x12e   :  { %v1525_v8 = vadd.f32 %v1524_v11, %v1511_v20  ;;  %v1552_v36 = vpop.f32.mrf.mxu2  ;;  %2370 = vmatpush.bf16.msrb.mxu3 %v5708_v24  ;;  %v6902_v24 = vld [vmem:[%s10690_s6 + $0x54] sm:$0xf0] }
 0x12f   :  { %v1553_v48 = vadd.f32 %v1552_v36, %v260_v45 }
 0x130   :  { %v1539_v29 = vadd.f32 %v1538_v52, %v1525_v8  ;;  %2146 = vmatpush.bf16.msra.mxu0 %v5552_v51  ;;  %v6919_v8 = vld [vmem:[%s10690_s6 + $0xe4] sm:$0xf] }
 0x131   :  { %2134 = vmatpush.bf16.msra.mxu2 %v5472_v6  ;;  %v1567_v53 = vadd.f32 %v1566_v34, %v1553_v48  ;;  %v6917_v34 = vld [vmem:[%s10690_s6 + $0xcc] sm:$0xf0]  ;;  %v5683_v48 = vld [vmem:[%s10690_s6 + $0xa8] sm:$0xf] }
 0x132   :  { %v1643_v54 = vmax.f32 %v1539_v29, 0.0 }
 0x134   :  { %2147 = vmatpush.bf16.msra.mxu0 %v5544_v58  ;;  %v5659_v58 = vld [vmem:[%s10690_s6 + $0x80] sm:$0xf] }
 0x135   :  { %v1526_v28 = vpop.f32.mrf.mxu3  ;;  %v5660_v61 = vor.u32 %v6909_v59, %v5659_v58 }
 0x136   :  { %v1527_v30 = vadd.f32 %v1526_v28, %v1513_v26  ;;  %v1554_v52 = vpop.f32.mrf.mxu2  ;;  %v5715_v26 = vld [vmem:[%s10690_s6 + $0xe8] sm:$0xf]  ;;  %v5712_v28 = vor.u32 %v6919_v8, %v5709_v25  ;;  %v6900_v25 = vld [vmem:[%s10690_s6 + $0x4c] sm:$0xf] }
 0x137   :  { %v1555_v43 = vadd.f32 %v1554_v52, %v260_v45  ;;  %v5716_v29 = vor.u32 %v6922_v27, %v5715_v26  ;;  %v5701_v45 = vld [vmem:[%s10690_s6 + $0xd8] sm:$0xf0]  ;;  %v9084_v27 = vld [vmem:[%s10691_s5] sm:$0x3] }
 0x138   :  { %v1541_v33 = vadd.f32 %v1540_v14, %v1527_v30  ;;  %2148 = vmatpush.bf16.msra.mxu0 %v5536_v1  ;;  %v6920_v30 = vld [vmem:[%s10690_s6 + $0xec] sm:$0xf]  ;;  %2384 = vmatpush.bf16.msrb.mxu1 %v5712_v28  ;;  %v5704_v46 = vor.u32 %v6916_v44, %v5701_v45  ;;  %v5637_v26 = vld [vmem:[%s10690_s6 + $0x58] sm:$0xf0]  ;;  %v5636_v28 = vor.u32 %v6902_v24, %v5635_v23  ;;  %v1719_v45 = vperm.slane %v9084_v27, 0 }
 0x139   :  { %v1569_v5 = vadd.f32 %v1568_v49, %v1555_v43  ;;  %v5720_v32 = vor.u32 %v6920_v30, %v5717_v31  ;;  %v6914_v49 = vld [vmem:[%s10690_s6 + $0xb4] sm:$0xf0]  ;;  %v5611_v30 = vld [vmem:[%s10690_s6 + $0x20] sm:$0xf]  ;;  %v6897_v31 = vld [vmem:[%s10690_s6 + $0x2c] sm:$0xf0] }
 0x13a   :  { %v1647_v38 = vmax.f32 %v1541_v33, 0.0  ;;  %v5691_v33 = vld [vmem:[%s10690_s6 + $0xc0] sm:$0xf]  ;;  %v5684_v52 = vor.u32 %v6914_v49, %v5683_v48  ;;  %v6910_v43 = vld [vmem:[%s10690_s6 + $0x94] sm:$0xf0] }
 0x13b   :  { %v5692_v36 = vor.u32 %v6917_v34, %v5691_v33  ;;  %v5621_v44 = vld [vmem:[%s10690_s6 + $0x38] sm:$0xf0]  ;;  %v5597_v48 = vld [vmem:[%s10690_s6 + $0x10] sm:$0xf0]  ;;  %v5603_v49 = vld [vmem:[%s10690_s6 + $0x8] sm:$0xf] }
 0x13c   :  { %v1651_v41 = vpack.c.bf16 %v1647_v38, %v1643_v54  ;;  %v5693_v54 = vld [vmem:[%s10690_s6 + $0xd0] sm:$0xf0]  ;;  %v5699_v38 = vld [vmem:[%s10690_s6 + $0xc8] sm:$0xf]  ;;  %v6535_v23 = vld [vmem:[%s10692_s8 + $0x658] sm:$0xf] }
 0x13d   :  { %v5696_v40 = vor.u32 %v6915_v35, %v5693_v54  ;;  %2371 = vmatpush.bf16.msrb.mxu3 %v5692_v36  ;;  %v5612_v35 = vor.u32 %v6897_v31, %v5611_v30  ;;  %v5613_v36 = vld [vmem:[%s10690_s6 + $0x30] sm:$0xf0]  ;;  %v5619_v54 = vld [vmem:[%s10690_s6 + $0x28] sm:$0xf]  ;;  %v5891_v24 = vld [vmem:[%s10692_s8 + $0x150] sm:$0xf] }
 0x13e   :  { %2079 = vmatmul.bf16.vlgmr.msrb.gmra.mxu2 %v1651_v41  ;;  %v6339_v30 = vld [vmem:[%s10692_s8 + $0x4d0] sm:$0xf]  ;;  %v7080_v31 = vld [vmem:[%s10692_s8 + $0x4e8] sm:$0xf0] }
 0x13f   :  { %2398 = vmatpush.bf16.msrb.mxu2 %v5716_v29  ;;  %2385 = vmatpush.bf16.msrb.mxu1 %v5696_v40  ;;  %v5640_v29 = vor.u32 %v6900_v25, %v5637_v26  ;;  %v6968_v25 = vld [vmem:[%s10692_s8 + $0x168] sm:$0xf0] }
 0x141   :  { %2372 = vmatpush.bf16.msrb.mxu3 %v5676_v47  ;;  %v6891_v47 = vld [vmem:[%s10690_s6 + $0x4] sm:$0xf] }
 0x142   :  { %v1580_v17 = vpop.f32.mrf.mxu1 }
 0x143   :  { %v1581_v63 = vadd.f32 %v1580_v17, %v1567_v53  ;;  %v5677_v17 = vld [vmem:[%s10690_s6 + $0xb0] sm:$0xf0]  ;;  %v6912_v53 = vld [vmem:[%s10690_s6 + $0xac] sm:$0xf] }
 0x144   :  { %v5680_v51 = vor.u32 %v6911_v42, %v5677_v17  ;;  %v5688_v57 = vor.u32 %v6912_v53, %v5685_v56  ;;  %v6893_v42 = vld [vmem:[%s10690_s6 + $0xc] sm:$0xf0]  ;;  %v6892_v56 = vld [vmem:[%s10690_s6 + $0xc] sm:$0xf] }
 0x145   :  { %v1622_v3 = vpop.f32.mrf.mxu0  ;;  %2373 = vmatpush.bf16.msrb.mxu3 %v5660_v61  ;;  %v5596_v17 = vor.u32 %v6893_v42, %v5595_v37 }
 0x146   :  { %2386 = vmatpush.bf16.msrb.mxu1 %v5680_v51  ;;  %v6894_v51 = vld [vmem:[%s10690_s6 + $0x14] sm:$0xf0] }
 0x147   :  { %v5604_v53 = vor.u32 %v6894_v51, %v5603_v49 }
 0x14a   :  { %v1582_v62 = vpop.f32.mrf.mxu1 }
 0x14b   :  { %v1583_v7 = vadd.f32 %v1582_v62, %v1569_v5  ;;  %v6907_v62 = vld [vmem:[%s10690_s6 + $0x84] sm:$0xf] }
 0x14d   :  { %v1594_v0 = vpop.f32.mrf.mxu3  ;;  %v1624_v15 = vpop.f32.mrf.mxu0 }
 0x14e   :  { %v1608_v2 = vpop.f32.mrf.mxu2  ;;  %v1595_v4 = vadd.f32 %v1594_v0, %v1581_v63  ;;  %2135 = vmatmul.bf16.vlgmr.msra.gmra.mxu2 %v1651_v41  ;;  %v5700_v41 = vor.u32 %v6918_v39, %v5699_v38  ;;  %v5661_v63 = vld [vmem:[%s10690_s6 + $0x90] sm:$0xf0]  ;;  %v5667_v0 = vld [vmem:[%s10690_s6 + $0x88] sm:$0xf]  ;;  %v6898_v38 = vld [vmem:[%s10690_s6 + $0x34] sm:$0xf0] }
 0x14f   :  { %v5664_v1 = vor.u32 %v6907_v62, %v5661_v63  ;;  %v5620_v40 = vor.u32 %v6898_v38, %v5619_v54  ;;  %v6143_v62 = vld [vmem:[%s10692_s8 + $0x348] sm:$0xf]  ;;  %v7031_v63 = vld [vmem:[%s10692_s8 + $0x360] sm:$0xf0] }
 0x150   :  { %v1609_v6 = vadd.f32 %v1608_v2, %v1595_v4  ;;  %2399 = vmatpush.bf16.msrb.mxu2 %v5700_v41  ;;  %v6908_v2 = vld [vmem:[%s10690_s6 + $0x8c] sm:$0xf]  ;;  %v5668_v4 = vor.u32 %v6910_v43, %v5667_v0  ;;  %v6591_v0 = vld [vmem:[%s10692_s8 + $0x6c8] sm:$0xf] }
 0x151   :  { %2387 = vmatpush.bf16.msrb.mxu1 %v5664_v1  ;;  %v6896_v41 = vld [vmem:[%s10690_s6 + $0x2c] sm:$0xf] }
 0x152   :  { %v1636_v9 = vpop.f32.mrf.mxu1  ;;  %v1623_v12 = vadd.f32 %v1622_v3, %v1609_v6  ;;  %v5669_v3 = vld [vmem:[%s10690_s6 + $0x98] sm:$0xf0]  ;;  %v5643_v6 = vld [vmem:[%s10690_s6 + $0x60] sm:$0xf]  ;;  %v5624_v60 = vor.u32 %v6896_v41, %v5621_v44  ;;  %v5863_v41 = vld [vmem:[%s10692_s8 + $0x118] sm:$0xf] }
 0x153   :  { %v5672_v5 = vor.u32 %v6908_v2, %v5669_v3  ;;  %v6144_v2 = vor.u32 %v7031_v63, %v6143_v62  ;;  %v7143_v3 = vld [vmem:[%s10692_s8 + $0x6e0] sm:$0xf0]  ;;  %v7066_v62 = vld [vmem:[%s10692_s8 + $0x478] sm:$0xf0] }
 0x154   :  { %v1637_v50 = vadd.f32 %v1636_v9, %v1623_v12  ;;  %2400 = vmatpush.bf16.msrb.mxu2 %v5684_v52  ;;  %v6903_v9 = vld [vmem:[%s10690_s6 + $0x64] sm:$0xf]  ;;  %v5651_v12 = vld [vmem:[%s10690_s6 + $0x68] sm:$0xf]  ;;  %v5600_v52 = vor.u32 %v6891_v47, %v5597_v48 }
 0x155   :  { %v1596_v10 = vpop.f32.mrf.mxu3 }
 0x156   :  { %v1597_v11 = vadd.f32 %v1596_v10, %v1583_v7  ;;  %v1610_v13 = vpop.f32.mrf.mxu2  ;;  %v1644_v19 = vmax.f32 %v1637_v50, 0.0  ;;  %v6905_v7 = vld [vmem:[%s10690_s6 + $0x6c] sm:$0xf0]  ;;  %v5653_v50 = vld [vmem:[%s10690_s6 + $0x78] sm:$0xf0] }
 0x157   :  { %v5644_v10 = vor.u32 %v6905_v7, %v5643_v6  ;;  %v6592_v7 = vor.u32 %v7143_v3, %v6591_v0 }
 0x158   :  { %v1611_v14 = vadd.f32 %v1610_v13, %v1597_v11  ;;  %2401 = vmatpush.bf16.msrb.mxu2 %v5668_v4  ;;  %v5645_v11 = vld [vmem:[%s10690_s6 + $0x70] sm:$0xf0]  ;;  %v6906_v13 = vld [vmem:[%s10690_s6 + $0x74] sm:$0xf0]  ;;  %v6115_v4 = vld [vmem:[%s10692_s8 + $0x310] sm:$0xf] }
 0x159   :  { %2374 = vmatpush.bf16.msrb.mxu3 %v5644_v10  ;;  %v7136_v10 = vld [vmem:[%s10692_s8 + $0x6a8] sm:$0xf0] }
 0x15a   :  { %v1625_v16 = vadd.f32 %v1624_v15, %v1611_v14  ;;  %v1638_v55 = vpop.f32.mrf.mxu1  ;;  %v5648_v14 = vor.u32 %v6903_v9, %v5645_v11  ;;  %v5652_v15 = vor.u32 %v6906_v13, %v5651_v12  ;;  %v6563_v9 = vld [vmem:[%s10692_s8 + $0x690] sm:$0xf]  ;;  %v5919_v11 = vld [vmem:[%s10692_s8 + $0x188] sm:$0xf] }
 0x15c   :  { %v1639_v18 = vadd.f32 %v1638_v55, %v1625_v16  ;;  %v6904_v16 = vld [vmem:[%s10690_s6 + $0x6c] sm:$0xf]  ;;  %2388 = vmatpush.bf16.msrb.mxu1 %v5648_v14  ;;  %2402 = vmatpush.bf16.msrb.mxu2 %v5652_v15  ;;  %v6975_v15 = vld [vmem:[%s10692_s8 + $0x1a0] sm:$0xf0] }
 0x15d   :  { %v5656_v55 = vor.u32 %v6904_v16, %v5653_v50  ;;  %v6367_v16 = vld [vmem:[%s10692_s8 + $0x508] sm:$0xf]  ;;  %v7087_v50 = vld [vmem:[%s10692_s8 + $0x520] sm:$0xf0] }
 0x15e   :  { %v1648_v20 = vmax.f32 %v1639_v18, 0.0  ;;  %v5627_v18 = vld [vmem:[%s10690_s6 + $0x40] sm:$0xf] }
 0x160   :  { %v1652_v21 = vpack.c.bf16 %v1648_v20, %v1644_v19  ;;  %v6901_v19 = vld [vmem:[%s10690_s6 + $0x4c] sm:$0xf0]  ;;  %v6899_v20 = vld [vmem:[%s10690_s6 + $0x44] sm:$0xf]  ;;  %2403 = vmatpush.bf16.msrb.mxu2 %v5636_v28 }
 0x161   :  { %v5632_v8 = vor.u32 %v6899_v20, %v5629_v22  ;;  %v6368_v20 = vor.u32 %v7087_v50, %v6367_v16  ;;  %v7017_v22 = vld [vmem:[%s10692_s8 + $0x2f0] sm:$0xf0]  ;;  %v6451_v16 = vld [vmem:[%s10692_s8 + $0x5b0] sm:$0xf]  ;;  %v7108_v50 = vld [vmem:[%s10692_s8 + $0x5c8] sm:$0xf0] }
 0x162   :  { %2093 = vmatmul.bf16.vlgmr.msrb.gmra.mxu0 %v1652_v21 }
 0x163   :  { %2412 = vmatpush.bf16.msrb.mxu0 %v5720_v32  ;;  %2389 = vmatpush.bf16.msrb.mxu1 %v5632_v8  ;;  %v6895_v32 = vld [vmem:[%s10690_s6 + $0x24] sm:$0xf]  ;;  %v7129_v8 = vld [vmem:[%s10692_s8 + $0x670] sm:$0xf0] }
 0x164   :  { %v5616_v39 = vor.u32 %v6895_v32, %v5613_v36  ;;  %2404 = vmatpush.bf16.msrb.mxu2 %v5620_v40  ;;  %v1720_v32 = vperm.slane %v9084_v27, 1  ;;  %v7010_v36 = vld [vmem:[%s10692_s8 + $0x2b8] sm:$0xf0]  ;;  %v6536_v38 = vor.u32 %v7129_v8, %v6535_v23 }
 0x165   :  { %v7122_v40 = vld [vmem:[%s10692_s8 + $0x638] sm:$0xf0] }
 0x167   :  { %2413 = vmatpush.bf16.msrb.mxu0 %v5704_v46  ;;  %2390 = vmatpush.bf16.msrb.mxu1 %v5616_v39  ;;  %v6507_v39 = vld [vmem:[%s10692_s8 + $0x620] sm:$0xf] }
 0x168   :  { %2405 = vmatpush.bf16.msrb.mxu2 %v5604_v53  ;;  %v5835_v53 = vld [vmem:[%s10692_s8 + $0xe0] sm:$0xf] }
 0x16b   :  { %2414 = vmatpush.bf16.msrb.mxu0 %v5688_v57  ;;  %v5605_v57 = vld [vmem:[%s10690_s6 + $0x18] sm:$0xf0]  ;;  %2391 = vmatpush.bf16.msrb.mxu1 %v5600_v52  ;;  %v6031_v52 = vld [vmem:[%s10692_s8 + $0x268] sm:$0xf] }
 0x16c   :  { %v5608_v58 = vor.u32 %v6892_v56, %v5605_v57  ;;  %3890 = vmatpush.bf16.msra.mxu2 %v6368_v20  ;;  %v6954_v56 = vld [vmem:[%s10692_s8 + $0xf8] sm:$0xf0] }
 0x16d   :  { %v2052_v33 = vpop.f32.mrf.mxu3  ;;  %v5836_v3 = vor.u32 %v6954_v56, %v5835_v53  ;;  %v7094_v53 = vld [vmem:[%s10692_s8 + $0x558] sm:$0xf0] }
 0x16e   :  { %v2053_v59 = vadd.f32 %v2052_v33, %v1719_v45 }
 0x16f   :  { %2415 = vmatpush.bf16.msrb.mxu0 %v5672_v5  ;;  %v7024_v5 = vld [vmem:[%s10692_s8 + $0x328] sm:$0xf0]  ;;  %3876 = vmatpush.bf16.msra.mxu1 %v6144_v2 }
 0x170   :  { %v6116_v14 = vor.u32 %v7024_v5, %v6115_v4  ;;  %v5807_v5 = vld [vmem:[%s10692_s8 + $0xa8] sm:$0xf] }
 0x172   :  { %2149 = vmatmul.bf16.vlgmr.msra.gmra.mxu0 %v1652_v21  ;;  %v5628_v21 = vor.u32 %v6901_v19, %v5627_v18  ;;  %v6564_v18 = vor.u32 %v7136_v10, %v6563_v9  ;;  %v5920_v19 = vor.u32 %v6975_v15, %v5919_v11  ;;  %v6255_v9 = vld [vmem:[%s10692_s8 + $0x428] sm:$0xf]  ;;  %v7059_v10 = vld [vmem:[%s10692_s8 + $0x440] sm:$0xf0]  ;;  %v6996_v15 = vld [vmem:[%s10692_s8 + $0x248] sm:$0xf0] }
 0x173   :  { %2416 = vmatpush.bf16.msrb.mxu0 %v5656_v55  ;;  %3877 = vmatpush.bf16.msra.mxu1 %v6116_v14  ;;  %v6003_v14 = vld [vmem:[%s10692_s8 + $0x230] sm:$0xf]  ;;  %v6256_v20 = vor.u32 %v7059_v10, %v6255_v9 }
 0x174   :  { %2375 = vmatpush.bf16.msrb.mxu3 %v5628_v21  ;;  %v6087_v21 = vld [vmem:[%s10692_s8 + $0x2d8] sm:$0xf]  ;;  %v6004_v8 = vor.u32 %v6996_v15, %v6003_v14 }
 0x175   :  { %v2054_v1 = vpop.f32.mrf.mxu3  ;;  %v6088_v33 = vor.u32 %v7017_v22, %v6087_v21  ;;  %v5779_v21 = vld [vmem:[%s10692_s8 + $0x70] sm:$0xf] }
 0x176   :  { %v2055_v26 = vadd.f32 %v2054_v1, %v1719_v45  ;;  %v6961_v45 = vld [vmem:[%s10692_s8 + $0x130] sm:$0xf0]  ;;  %v6479_v1 = vld [vmem:[%s10692_s8 + $0x5e8] sm:$0xf] }
 0x177   :  { %2417 = vmatpush.bf16.msrb.mxu0 %v5640_v29  ;;  %v5892_v29 = vor.u32 %v6968_v25, %v5891_v24  ;;  %v5864_v47 = vor.u32 %v6961_v45, %v5863_v41  ;;  %3878 = vmatpush.bf16.msra.mxu1 %v6088_v33  ;;  %v6940_v24 = vld [vmem:[%s10692_s8 + $0x88] sm:$0xf0]  ;;  %v6227_v25 = vld [vmem:[%s10692_s8 + $0x3f0] sm:$0xf]  ;;  %v5975_v33 = vld [vmem:[%s10692_s8 + $0x1f8] sm:$0xf] }
 0x178   :  { %2376 = vmatpush.bf16.msrb.mxu3 %v5612_v35  ;;  %v6059_v35 = vld [vmem:[%s10692_s8 + $0x2a0] sm:$0xf] }
 0x179   :  { %v6060_v51 = vor.u32 %v7010_v36, %v6059_v35  ;;  %v6423_v36 = vld [vmem:[%s10692_s8 + $0x578] sm:$0xf] }
 0x17b   :  { %2418 = vmatpush.bf16.msrb.mxu0 %v5624_v60  ;;  %v7073_v60 = vld [vmem:[%s10692_s8 + $0x4b0] sm:$0xf0]  ;;  %3879 = vmatpush.bf16.msra.mxu1 %v6060_v51  ;;  %v6982_v51 = vld [vmem:[%s10692_s8 + $0x1d8] sm:$0xf0] }
 0x17c   :  { %2377 = vmatpush.bf16.msrb.mxu3 %v5596_v17 }
 0x17f   :  { %2419 = vmatpush.bf16.msrb.mxu0 %v5608_v58  ;;  %v6508_v58 = vor.u32 %v7122_v40, %v6507_v39  ;;  %v2162_v39 = vld [vmem:[%s10694_s1 + $0x8] sm:$0xff]  ;;  %v5780_v40 = vor.u32 %v6940_v24, %v5779_v21  ;;  %v5893_v24 = vld [vmem:[%s10692_s8 + $0x16c] sm:$0xf0] }
 0x180   :  { %3862 = vmatpush.bf16.msra.mxu3 %v5920_v19 }
 0x183   :  { %3904 = vmatpush.bf16.msra.mxu0 %v6592_v7  ;;  %v6947_v7 = vld [vmem:[%s10692_s8 + $0xc0] sm:$0xf0] }
 0x184   :  { %3863 = vmatpush.bf16.msra.mxu3 %v5892_v29  ;;  %v5808_v19 = vor.u32 %v6947_v7, %v5807_v5  ;;  %v2161_v29 = vld [vmem:[%s10694_s1] sm:$0xff] }
 0x185   :  { %v2066_v34 = vpop.f32.mrf.mxu1 }
 0x186   :  { %v2067_v61 = vadd.f32 %v2066_v34, %v2053_v59  ;;  %v6340_v34 = vor.u32 %v7080_v31, %v6339_v30  ;;  %v7003_v59 = vld [vmem:[%s10692_s8 + $0x280] sm:$0xf0]  ;;  %v6452_v31 = vor.u32 %v7108_v50, %v6451_v16  ;;  %v7021_v16 = vld [vmem:[%s10692_s8 + $0x314] sm:$0xf]  ;;  %v6117_v50 = vld [vmem:[%s10692_s8 + $0x32c] sm:$0xf0] }
 0x187   :  { %3905 = vmatpush.bf16.msra.mxu0 %v6564_v18 }
 0x188   :  { %3891 = vmatpush.bf16.msra.mxu2 %v6340_v34  ;;  %3864 = vmatpush.bf16.msra.mxu3 %v5864_v47  ;;  %v6989_v34 = vld [vmem:[%s10692_s8 + $0x210] sm:$0xf0] }
 0x189   :  { %v5976_v27 = vor.u32 %v6989_v34, %v5975_v33  ;;  %v7126_v33 = vld [vmem:[%s10692_s8 + $0x65c] sm:$0xf]  ;;  %v6537_v34 = vld [vmem:[%s10692_s8 + $0x674] sm:$0xf0] }
 0x18b   :  { %3906 = vmatpush.bf16.msra.mxu0 %v6536_v38 }
 0x18c   :  { %3865 = vmatpush.bf16.msra.mxu3 %v5836_v3  ;;  %v5723_v3 = vld [vmem:[%s10692_s8] sm:$0xf] }
 0x18d   :  { %v2068_v43 = vpop.f32.mrf.mxu1  ;;  %v2108_v44 = vpop.f32.mrf.mxu3 }
 0x18e   :  { %v2069_v54 = vadd.f32 %v2068_v43, %v2055_v26  ;;  %v2109_v63 = vadd.f32 %v2108_v44, %v1720_v32  ;;  %v7115_v43 = vld [vmem:[%s10692_s8 + $0x600] sm:$0xf0]  ;;  %v7052_v26 = vld [vmem:[%s10692_s8 + $0x408] sm:$0xf0]  ;;  %v5751_v44 = vld [vmem:[%s10692_s8 + $0x38] sm:$0xf] }
 0x18f   :  { %3907 = vmatpush.bf16.msra.mxu0 %v6508_v58  ;;  %v6228_v41 = vor.u32 %v7052_v26, %v6227_v25  ;;  %v7028_v58 = vld [vmem:[%s10692_s8 + $0x34c] sm:$0xf]  ;;  %v7077_v25 = vld [vmem:[%s10692_s8 + $0x4d4] sm:$0xf]  ;;  %v6341_v26 = vld [vmem:[%s10692_s8 + $0x4ec] sm:$0xf0] }
 0x190   :  { %3866 = vmatpush.bf16.msra.mxu3 %v5808_v19  ;;  %v6565_v19 = vld [vmem:[%s10692_s8 + $0x6ac] sm:$0xf0] }
 0x194   :  { %3867 = vmatpush.bf16.msra.mxu3 %v5780_v40  ;;  %v6061_v40 = vld [vmem:[%s10692_s8 + $0x2bc] sm:$0xf0] }
 0x195   :  { %v2122_v48 = vpop.f32.mrf.mxu1  ;;  %v2110_v22 = vpop.f32.mrf.mxu3 }
 0x196   :  { %v2123_v11 = vadd.f32 %v2122_v48, %v2109_v63  ;;  %v2111_v38 = vadd.f32 %v2110_v22, %v1720_v32  ;;  %v6933_v32 = vld [vmem:[%s10692_s8 + $0x50] sm:$0xf0]  ;;  %v5947_v48 = vld [vmem:[%s10692_s8 + $0x1c0] sm:$0xf] }
 0x197   :  { %v5948_v9 = vor.u32 %v6982_v51, %v5947_v48  ;;  %v6033_v48 = vld [vmem:[%s10692_s8 + $0x284] sm:$0xf0]  ;;  %v7112_v51 = vld [vmem:[%s10692_s8 + $0x5ec] sm:$0xf] }
 0x19d   :  { %v2124_v35 = vpop.f32.mrf.mxu1 }
 0x19e   :  { %v2125_v47 = vadd.f32 %v2124_v35, %v2111_v38  ;;  %v6540_v38 = vor.u32 %v7126_v33, %v6537_v34  ;;  %v6201_v33 = vld [vmem:[%s10692_s8 + $0x3d4] sm:$0xf0] }
 0x1c1   :  { %v2080_v46 = vpop.f32.mrf.mxu2 }
 0x1c2   :  { %v2081_v6 = vadd.f32 %v2080_v46, %v2067_v61  ;;  %v6311_v46 = vld [vmem:[%s10692_s8 + $0x498] sm:$0xf]  ;;  %v6283_v61 = vld [vmem:[%s10692_s8 + $0x460] sm:$0xf] }
 0x1c3   :  { %v6312_v17 = vor.u32 %v7073_v60, %v6311_v46  ;;  %v6284_v4 = vor.u32 %v7066_v62, %v6283_v61  ;;  %v6199_v60 = vld [vmem:[%s10692_s8 + $0x3b8] sm:$0xf]  ;;  %v7140_v61 = vld [vmem:[%s10692_s8 + $0x6cc] sm:$0xf]  ;;  %v5752_v62 = vor.u32 %v6933_v32, %v5751_v44  ;;  %v6509_v44 = vld [vmem:[%s10692_s8 + $0x63c] sm:$0xf0] }
 0x1c4   :  { %v5865_v32 = vld [vmem:[%s10692_s8 + $0x134] sm:$0xf0] }
 0x1c5   :  { %3892 = vmatpush.bf16.msra.mxu2 %v6312_v17  ;;  %3868 = vmatpush.bf16.msra.mxu3 %v5752_v62  ;;  %v6285_v62 = vld [vmem:[%s10692_s8 + $0x47c] sm:$0xf0] }
 0x1c9   :  { %v2082_v12 = vpop.f32.mrf.mxu2  ;;  %3893 = vmatpush.bf16.msra.mxu2 %v6284_v4  ;;  %v6926_v4 = vld [vmem:[%s10692_s8 + $0x18] sm:$0xf0] }
 0x1ca   :  { %v2083_v37 = vadd.f32 %v2082_v12, %v2069_v54  ;;  %v7101_v54 = vld [vmem:[%s10692_s8 + $0x590] sm:$0xf0] }
 0x1cb   :  { %v6424_v17 = vor.u32 %v7101_v54, %v6423_v36  ;;  %v6344_v36 = vor.u32 %v7077_v25, %v6341_v26  ;;  %v6397_v25 = vld [vmem:[%s10692_s8 + $0x55c] sm:$0xf0] }
 0x1cd   :  { %3894 = vmatpush.bf16.msra.mxu2 %v6256_v20  ;;  %v5724_v20 = vor.u32 %v6926_v4, %v5723_v3  ;;  %v6453_v3 = vld [vmem:[%s10692_s8 + $0x5cc] sm:$0xf0] }
 0x1cf   :  { %3869 = vmatpush.bf16.msra.mxu3 %v5724_v20  ;;  %v6229_v20 = vld [vmem:[%s10692_s8 + $0x40c] sm:$0xf0] }
 0x1d1   :  { %v2136_v0 = vpop.f32.mrf.mxu2  ;;  %3895 = vmatpush.bf16.msra.mxu2 %v6228_v41  ;;  %v7119_v41 = vld [vmem:[%s10692_s8 + $0x624] sm:$0xf] }
 0x1d2   :  { %v2137_v18 = vadd.f32 %v2136_v0, %v2123_v11  ;;  %v5921_v11 = vld [vmem:[%s10692_s8 + $0x1a4] sm:$0xf0] }
 0x1d9   :  { %v2138_v45 = vpop.f32.mrf.mxu2 }
 0x1da   :  { %v2139_v56 = vadd.f32 %v2138_v45, %v2125_v47 }
 0x1df   :  { %v2094_v13 = vpop.f32.mrf.mxu0 }
 0x1e0   :  { %v9171_v55 = vadd.f32 %v2094_v13, %v2081_v6  ;;  %v6032_v6 = vor.u32 %v7003_v59, %v6031_v52  ;;  %v6480_v13 = vor.u32 %v7115_v43, %v6479_v1  ;;  %v6395_v52 = vld [vmem:[%s10692_s8 + $0x540] sm:$0xf]  ;;  %v6145_v59 = vld [vmem:[%s10692_s8 + $0x364] sm:$0xf0] }
 0x1e1   :  { %v6396_v10 = vor.u32 %v7094_v53, %v6395_v52  ;;  %v6148_v14 = vor.u32 %v7028_v58, %v6145_v59  ;;  %v6481_v52 = vld [vmem:[%s10692_s8 + $0x604] sm:$0xf0]  ;;  %v5837_v58 = vld [vmem:[%s10692_s8 + $0xfc] sm:$0xf0]  ;;  %v7063_v59 = vld [vmem:[%s10692_s8 + $0x464] sm:$0xf] }
 0x1e2   :  { %v2155_v28 = vmul.f32 0.5, %v9171_v55  ;;  %4537 = vst [vmem:[%s10693_s11] sm:$0xff] %v9171_v55  ;;  %3880 = vmatpush.bf16.msra.mxu1 %v6032_v6  ;;  %3908 = vmatpush.bf16.msra.mxu0 %v6480_v13  ;;  %v6972_v6 = vld [vmem:[%s10692_s8 + $0x18c] sm:$0xf]  ;;  %v6369_v13 = vld [vmem:[%s10692_s8 + $0x524] sm:$0xf0]  ;;  %v6484_v53 = vor.u32 %v7112_v51, %v6481_v52 }
 0x1e3   :  { %v5924_v22 = vor.u32 %v6972_v6, %v5921_v11  ;;  %v7056_v6 = vld [vmem:[%s10692_s8 + $0x42c] sm:$0xf]  ;;  %v5977_v11 = vld [vmem:[%s10692_s8 + $0x214] sm:$0xf0]  ;;  %v6151_v51 = vld [vmem:[%s10692_s8 + $0x350] sm:$0xf] }
 0x1e4   :  { %v2157_v42 = vmul.f32 1.442695, %v2155_v28  ;;  %v7032_v52 = vld [vmem:[%s10692_s8 + $0x368] sm:$0xf0] }
 0x1e6   :  { %7147 = vpow2.f32 %v2157_v42  ;;  %3881 = vmatpush.bf16.msra.mxu1 %v6004_v8  ;;  %3909 = vmatpush.bf16.msra.mxu0 %v6452_v31  ;;  %v6965_v8 = vld [vmem:[%s10692_s8 + $0x154] sm:$0xf]  ;;  %v6089_v31 = vld [vmem:[%s10692_s8 + $0x2f4] sm:$0xf0] }
 0x1e7   :  { %v2096_v49 = vpop.f32.mrf.mxu0  ;;  %v5896_v35 = vor.u32 %v6965_v8, %v5893_v24  ;;  %v7091_v8 = vld [vmem:[%s10692_s8 + $0x544] sm:$0xf] }
 0x1e8   :  { %v9236_v57 = vadd.f32 %v2096_v49, %v2083_v37  ;;  %v7045_v37 = vld [vmem:[%s10692_s8 + $0x3d0] sm:$0xf0]  ;;  %v6400_v26 = vor.u32 %v7091_v8, %v6397_v25  ;;  %v6543_v25 = vld [vmem:[%s10692_s8 + $0x660] sm:$0xf] }
 0x1e9   :  { %v6200_v63 = vor.u32 %v7045_v37, %v6199_v60  ;;  %v7070_v60 = vld [vmem:[%s10692_s8 + $0x49c] sm:$0xf] }
 0x1ea   :  { %v2156_v2 = vmul.f32 0.5, %v9236_v57  ;;  %4539 = vst [vmem:[%s10693_s11 + $0x10] sm:$0xff] %v9236_v57  ;;  %3882 = vmatpush.bf16.msra.mxu1 %v5976_v27  ;;  %3910 = vmatpush.bf16.msra.mxu0 %v6424_v17  ;;  %v6958_v27 = vld [vmem:[%s10692_s8 + $0x11c] sm:$0xf]  ;;  %v7000_v17 = vld [vmem:[%s10692_s8 + $0x26c] sm:$0xf] }
 0x1eb   :  { %3896 = vmatpush.bf16.msra.mxu2 %v6200_v63  ;;  %v5868_v37 = vor.u32 %v6958_v27, %v5865_v32  ;;  %v6288_v63 = vor.u32 %v7063_v59, %v6285_v62  ;;  %v7144_v59 = vld [vmem:[%s10692_s8 + $0x6e8] sm:$0xf0] }
 0x1ec   :  { %v2159_v12 = vmul.f32 1.442695, %v2156_v2  ;;  %v7148_v28 = vpop.eup %7147  ;;  %v6593_v2 = vld [vmem:[%s10692_s8 + $0x6e4] sm:$0xf0] }
 0x1ed   :  { %v2163_v46 = vmul.f32 %v7148_v28, %v2161_v29  ;;  %v6596_v15 = vor.u32 %v7140_v61, %v6593_v2  ;;  %v6120_v28 = vor.u32 %v7021_v16, %v6117_v50  ;;  %v7105_v2 = vld [vmem:[%s10692_s8 + $0x5b4] sm:$0xf]  ;;  %v5781_v50 = vld [vmem:[%s10692_s8 + $0x8c] sm:$0xf0] }
 0x1ee   :  { %7149 = vpow2.f32 %v2159_v12  ;;  %v7084_v12 = vld [vmem:[%s10692_s8 + $0x50c] sm:$0xf]  ;;  %3883 = vmatpush.bf16.msra.mxu1 %v5948_v9  ;;  %3911 = vmatpush.bf16.msra.mxu0 %v6396_v10  ;;  %v6456_v4 = vor.u32 %v7105_v2, %v6453_v3  ;;  %v6986_v10 = vld [vmem:[%s10692_s8 + $0x1fc] sm:$0xf]  ;;  %v6937_v16 = vld [vmem:[%s10692_s8 + $0x74] sm:$0xf] }
 0x1ef   :  { %v2150_v23 = vpop.f32.mrf.mxu0  ;;  %v2165_v0 = vadd.f32 %v2163_v46, %v9171_v55  ;;  %v6171_v55 = vld [vmem:[%s10692_s8 + $0x380] sm:$0xf]  ;;  %v6512_v46 = vor.u32 %v7119_v41, %v6509_v44 }
 0x1f0   :  { %v2151_v30 = vadd.f32 %v2150_v23, %v2137_v18  ;;  %v7133_v18 = vld [vmem:[%s10692_s8 + $0x694] sm:$0xf]  ;;  %v6372_v23 = vor.u32 %v7084_v12, %v6369_v13  ;;  %v7098_v12 = vld [vmem:[%s10692_s8 + $0x57c] sm:$0xf]  ;;  %v5980_v13 = vor.u32 %v6986_v10, %v5977_v11  ;;  %v2200_v41 = vld [vmem:[%s10695_s7] sm:$0xf] }
 0x1f1   :  { %v6568_v29 = vor.u32 %v7133_v18, %v6565_v19  ;;  %v7049_v18 = vld [vmem:[%s10692_s8 + $0x3f4] sm:$0xf]  ;;  %v5784_v19 = vor.u32 %v6937_v16, %v5781_v50  ;;  %v2205_v27 = vperm.slane %v2200_v41, 3  ;;  %v6375_v16 = vld [vmem:[%s10692_s8 + $0x510] sm:$0xf] }
 0x1f2   :  { %4538 = vst [vmem:[%s10693_s11 + $0x8] sm:$0xff] %v2151_v30  ;;  %v7014_v30 = vld [vmem:[%s10692_s8 + $0x2dc] sm:$0xf]  ;;  %v7088_v50 = vld [vmem:[%s10692_s8 + $0x528] sm:$0xf0] }
 0x1f3   :  { %v6092_v54 = vor.u32 %v7014_v30, %v6089_v31  ;;  %v7042_v30 = vld [vmem:[%s10692_s8 + $0x3bc] sm:$0xf] }
 0x1f4   :  { %v7150_v42 = vpop.eup %7149  ;;  %v6204_v34 = vor.u32 %v7042_v30, %v6201_v33  ;;  %v5899_v30 = vld [vmem:[%s10692_s8 + $0x158] sm:$0xf] }
 0x1f5   :  { %v2164_v49 = vmul.f32 %v7150_v42, %v2162_v39  ;;  %v7007_v39 = vld [vmem:[%s10692_s8 + $0x2a4] sm:$0xf]  ;;  %v6313_v42 = vld [vmem:[%s10692_s8 + $0x4b4] sm:$0xf0] }
 0x1f6   :  { %v6064_v45 = vor.u32 %v7007_v39, %v6061_v40  ;;  %v6316_v47 = vor.u32 %v7070_v60, %v6313_v42  ;;  %v6173_v39 = vld [vmem:[%s10692_s8 + $0x39c] sm:$0xf0] }
 0x1f7   :  { %v2166_v1 = vadd.f32 %v2164_v49, %v9236_v57  ;;  %v2152_v43 = vpop.f32.mrf.mxu0  ;;  %v7038_v57 = vld [vmem:[%s10692_s8 + $0x398] sm:$0xf0]  ;;  %v6036_v49 = vor.u32 %v7000_v17, %v6033_v48  ;;  %v2202_v17 = vperm.slane %v2200_v41, 0 }
 0x1f8   :  { %v2153_v5 = vadd.f32 %v2152_v43, %v2139_v56  ;;  %v6172_v21 = vor.u32 %v7038_v57, %v6171_v55  ;;  %v6951_v56 = vld [vmem:[%s10692_s8 + $0xe4] sm:$0xf]  ;;  %v5809_v55 = vld [vmem:[%s10692_s8 + $0xc4] sm:$0xf0] }
 0x1f9   :  { %v2167_v7 = vpack.c.bf16 %v2166_v1, %v2165_v0  ;;  %v5840_v61 = vor.u32 %v6951_v56, %v5837_v58  ;;  %v6993_v0 = vld [vmem:[%s10692_s8 + $0x234] sm:$0xf]  ;;  %v6005_v1 = vld [vmem:[%s10692_s8 + $0x24c] sm:$0xf0] }
 0x1fa   :  { %4540 = vst [vmem:[%s10693_s11 + $0x18] sm:$0xff] %v2153_v5  ;;  %3897 = vmatpush.bf16.msra.mxu2 %v6172_v21  ;;  %v6008_v43 = vor.u32 %v6993_v0, %v6005_v1  ;;  %v6944_v5 = vld [vmem:[%s10692_s8 + $0xac] sm:$0xf]  ;;  %v6232_v21 = vor.u32 %v7049_v18, %v6229_v20  ;;  %v6599_v58 = vld [vmem:[%s10692_s8 + $0x6d0] sm:$0xf]  ;;  %v6152_v1 = vor.u32 %v7032_v52, %v6151_v51 }
 0x1fb   :  { %2378 = vmatmul.bf16.vlgmr.msrb.gmra.mxu3 %v2167_v7  ;;  %2392 = vmatmul.bf16.vlgmr.msrb.gmra.mxu1 %v2167_v7  ;;  %v5812_v57 = vor.u32 %v6944_v5, %v5809_v55  ;;  %v6600_v3 = vor.u32 %v7144_v59, %v6599_v58  ;;  %v7025_v5 = vld [vmem:[%s10692_s8 + $0x330] sm:$0xf0]  ;;  %v7116_v51 = vld [vmem:[%s10692_s8 + $0x608] sm:$0xf0]  ;;  %v6291_v59 = vld [vmem:[%s10692_s8 + $0x468] sm:$0xf] }
 0x1fc   :  { %2406 = vmatmul.bf16.vlgmr.msrb.gmra.mxu2 %v2167_v7  ;;  %2420 = vmatmul.bf16.vlgmr.msrb.gmra.mxu0 %v2167_v7  ;;  %v6257_v7 = vld [vmem:[%s10692_s8 + $0x444] sm:$0xf0] }
 0x1fd   :  { %3932 = vmatpush.bf16.msrb.mxu1 %v6148_v14  ;;  %3960 = vmatpush.bf16.msrb.mxu0 %v6596_v15  ;;  %v6260_v9 = vor.u32 %v7056_v6, %v6257_v7  ;;  %v6425_v14 = vld [vmem:[%s10692_s8 + $0x594] sm:$0xf0] }
 0x1fe   :  { %3918 = vmatpush.bf16.msrb.mxu3 %v5924_v22  ;;  %3946 = vmatpush.bf16.msrb.mxu2 %v6372_v23  ;;  %v6428_v15 = vor.u32 %v7098_v12, %v6425_v14  ;;  %v6979_v22 = vld [vmem:[%s10692_s8 + $0x1c4] sm:$0xf]  ;;  %v5949_v23 = vld [vmem:[%s10692_s8 + $0x1dc] sm:$0xf0]  ;;  %v6571_v7 = vld [vmem:[%s10692_s8 + $0x698] sm:$0xf] }
 0x1ff   :  { %v5952_v24 = vor.u32 %v6979_v22, %v5949_v23  ;;  %v5927_v12 = vld [vmem:[%s10692_s8 + $0x190] sm:$0xf]  ;;  %v7018_v22 = vld [vmem:[%s10692_s8 + $0x2f8] sm:$0xf0] }
 0x201   :  { %3933 = vmatpush.bf16.msrb.mxu1 %v6120_v28  ;;  %3961 = vmatpush.bf16.msrb.mxu0 %v6568_v29  ;;  %v6930_v28 = vld [vmem:[%s10692_s8 + $0x3c] sm:$0xf]  ;;  %v5753_v29 = vld [vmem:[%s10692_s8 + $0x54] sm:$0xf0] }
 0x202   :  { %3919 = vmatpush.bf16.msrb.mxu3 %v5896_v35  ;;  %3947 = vmatpush.bf16.msrb.mxu2 %v6344_v36  ;;  %v5756_v31 = vor.u32 %v6930_v28, %v5753_v29  ;;  %v6923_v35 = vld [vmem:[%s10692_s8 + $0x4] sm:$0xf]  ;;  %v5725_v36 = vld [vmem:[%s10692_s8 + $0x1c] sm:$0xf0]  ;;  %v6376_v29 = vor.u32 %v7088_v50, %v6375_v16  ;;  %v5787_v50 = vld [vmem:[%s10692_s8 + $0x78] sm:$0xf] }
 0x205   :  { %3934 = vmatpush.bf16.msrb.mxu1 %v6092_v54  ;;  %3962 = vmatpush.bf16.msrb.mxu0 %v6540_v38  ;;  %v5728_v54 = vor.u32 %v6923_v35, %v5725_v36  ;;  %v7035_v38 = vld [vmem:[%s10692_s8 + $0x384] sm:$0xf]  ;;  %v6347_v35 = vld [vmem:[%s10692_s8 + $0x4d8] sm:$0xf]  ;;  %v7081_v36 = vld [vmem:[%s10692_s8 + $0x4f0] sm:$0xf0] }
 0x206   :  { %3920 = vmatpush.bf16.msrb.mxu3 %v5868_v37  ;;  %3948 = vmatpush.bf16.msrb.mxu2 %v6316_v47  ;;  %v6176_v40 = vor.u32 %v7035_v38, %v6173_v39  ;;  %v6067_v38 = vld [vmem:[%s10692_s8 + $0x2a8] sm:$0xf]  ;;  %v7011_v39 = vld [vmem:[%s10692_s8 + $0x2c0] sm:$0xf0] }
 0x209   :  { %3935 = vmatpush.bf16.msrb.mxu1 %v6064_v45  ;;  %3963 = vmatpush.bf16.msrb.mxu0 %v6512_v46  ;;  %v2203_v46 = vperm.slane %v2200_v41, 1 }
 0x20a   :  { %3921 = vmatpush.bf16.msrb.mxu3 %v5840_v61  ;;  %3949 = vmatpush.bf16.msrb.mxu2 %v6288_v63 }
 0x20d   :  { %3936 = vmatpush.bf16.msrb.mxu1 %v6036_v49  ;;  %3964 = vmatpush.bf16.msrb.mxu0 %v6484_v53  ;;  %v2204_v53 = vperm.slane %v2200_v41, 2  ;;  %v6515_v41 = vld [vmem:[%s10692_s8 + $0x628] sm:$0xf] }
 0x20e   :  { %3922 = vmatpush.bf16.msrb.mxu3 %v5812_v57  ;;  %3950 = vmatpush.bf16.msrb.mxu2 %v6260_v9  ;;  %v7137_v9 = vld [vmem:[%s10692_s8 + $0x6b0] sm:$0xf0] }
 0x20f   :  { %v6572_v20 = vor.u32 %v7137_v9, %v6571_v7  ;;  %v6263_v7 = vld [vmem:[%s10692_s8 + $0x430] sm:$0xf]  ;;  %v7060_v9 = vld [vmem:[%s10692_s8 + $0x448] sm:$0xf0] }
 0x210   :  { %v6264_v16 = vor.u32 %v7060_v9, %v6263_v7  ;;  %v7078_v7 = vld [vmem:[%s10692_s8 + $0x4dc] sm:$0xf]  ;;  %v6349_v9 = vld [vmem:[%s10692_s8 + $0x4f4] sm:$0xf0] }
 0x211   :  { %3937 = vmatpush.bf16.msrb.mxu1 %v6008_v43  ;;  %3965 = vmatpush.bf16.msrb.mxu0 %v6456_v4  ;;  %v6123_v4 = vld [vmem:[%s10692_s8 + $0x318] sm:$0xf] }
 0x212   :  { %3923 = vmatpush.bf16.msrb.mxu3 %v5784_v19  ;;  %3951 = vmatpush.bf16.msrb.mxu2 %v6232_v21  ;;  %v6095_v21 = vld [vmem:[%s10692_s8 + $0x2e0] sm:$0xf] }
 0x215   :  { %3938 = vmatpush.bf16.msrb.mxu1 %v5980_v13  ;;  %3966 = vmatpush.bf16.msrb.mxu0 %v6428_v15  ;;  %v6976_v13 = vld [vmem:[%s10692_s8 + $0x1a8] sm:$0xf0]  ;;  %v6124_v15 = vor.u32 %v7025_v5, %v6123_v4  ;;  %v5815_v5 = vld [vmem:[%s10692_s8 + $0xb0] sm:$0xf] }
 0x216   :  { %3924 = vmatpush.bf16.msrb.mxu3 %v5756_v31  ;;  %3952 = vmatpush.bf16.msrb.mxu2 %v6204_v34  ;;  %v6969_v31 = vld [vmem:[%s10692_s8 + $0x170] sm:$0xf0]  ;;  %v6096_v34 = vor.u32 %v7018_v22, %v6095_v21  ;;  %v5955_v22 = vld [vmem:[%s10692_s8 + $0x1c8] sm:$0xf] }
 0x217   :  { %v7053_v21 = vld [vmem:[%s10692_s8 + $0x410] sm:$0xf0] }
 0x219   :  { %3939 = vmatpush.bf16.msrb.mxu1 %v5952_v24  ;;  %3967 = vmatpush.bf16.msrb.mxu0 %v6400_v26  ;;  %v5928_v24 = vor.u32 %v6976_v13, %v5927_v12  ;;  %v7130_v26 = vld [vmem:[%s10692_s8 + $0x678] sm:$0xf0] }
 0x21a   :  { %3925 = vmatpush.bf16.msrb.mxu3 %v5728_v54  ;;  %3953 = vmatpush.bf16.msrb.mxu2 %v6176_v40  ;;  %v6544_v54 = vor.u32 %v7130_v26, %v6543_v25  ;;  %v5900_v40 = vor.u32 %v6969_v31, %v5899_v30  ;;  %v6990_v12 = vld [vmem:[%s10692_s8 + $0x218] sm:$0xf0]  ;;  %v7095_v25 = vld [vmem:[%s10692_s8 + $0x560] sm:$0xf0]  ;;  %v6153_v30 = vld [vmem:[%s10692_s8 + $0x36c] sm:$0xf0] }
 0x21b   :  { %v7141_v31 = vld [vmem:[%s10692_s8 + $0x6d4] sm:$0xf] }
 0x278   :  { %v2393_v44 = vpop.f32.mrf.mxu1 }
 0x279   :  { %v2421_v45 = vpop.f32.mrf.mxu0  ;;  %v2394_v60 = vadd.f32 %v2393_v44, %v2203_v46  ;;  %v7123_v44 = vld [vmem:[%s10692_s8 + $0x640] sm:$0xf0] }
 0x27a   :  { %v2422_v42 = vadd.f32 %v2421_v45, %v2205_v27  ;;  %v6348_v45 = vor.u32 %v7081_v36, %v6347_v35  ;;  %v6601_v35 = vld [vmem:[%s10692_s8 + $0x6ec] sm:$0xf0]  ;;  %v5759_v36 = vld [vmem:[%s10692_s8 + $0x40] sm:$0xf] }
 0x27b   :  { %v2427_v61 = vmax.f32 %v2394_v60, 0.0  ;;  %v6319_v60 = vld [vmem:[%s10692_s8 + $0x4a0] sm:$0xf] }
 0x27c   :  { %v2429_v63 = vmax.f32 %v2422_v42, 0.0  ;;  %v6516_v42 = vor.u32 %v7123_v44, %v6515_v41 }
 0x27e   :  { %v2379_v32 = vpop.f32.mrf.mxu3 }
 0x27f   :  { %v2407_v37 = vpop.f32.mrf.mxu2  ;;  %v2380_v43 = vadd.f32 %v2379_v32, %v2202_v17  ;;  %v6068_v32 = vor.u32 %v7011_v39, %v6067_v38  ;;  %v6207_v39 = vld [vmem:[%s10692_s8 + $0x3c0] sm:$0xf] }
 0x280   :  { %v2395_v47 = vpop.f32.mrf.mxu1  ;;  %v2408_v55 = vadd.f32 %v2407_v37, %v2204_v53  ;;  %v7074_v37 = vld [vmem:[%s10692_s8 + $0x4b8] sm:$0xf0] }
 0x281   :  { %v2396_v48 = vadd.f32 %v2395_v47, %v2203_v46  ;;  %v2423_v49 = vpop.f32.mrf.mxu0  ;;  %v2426_v18 = vmax.f32 %v2380_v43, 0.0  ;;  %v5871_v46 = vld [vmem:[%s10692_s8 + $0x120] sm:$0xf]  ;;  %v6039_v47 = vld [vmem:[%s10692_s8 + $0x270] sm:$0xf]  ;;  %v6320_v52 = vor.u32 %v7074_v37, %v6319_v60 }
 0x282   :  { %v2424_v56 = vadd.f32 %v2423_v49, %v2205_v27  ;;  %v2428_v23 = vmax.f32 %v2408_v55, 0.0  ;;  %v6962_v27 = vld [vmem:[%s10692_s8 + $0x138] sm:$0xf0]  ;;  %v6487_v49 = vld [vmem:[%s10692_s8 + $0x5f0] sm:$0xf] }
 0x283   :  { %v2431_v62 = vmax.f32 %v2396_v48, 0.0  ;;  %v5872_v48 = vor.u32 %v6962_v27, %v5871_v46  ;;  %v6459_v43 = vld [vmem:[%s10692_s8 + $0x5b8] sm:$0xf]  ;;  %v6948_v55 = vld [vmem:[%s10692_s8 + $0xc8] sm:$0xf0]  ;;  %v6604_v46 = vor.u32 %v7141_v31, %v6601_v35 }
 0x284   :  { %v2433_v0 = vmax.f32 %v2424_v56, 0.0  ;;  %v6955_v56 = vld [vmem:[%s10692_s8 + $0x100] sm:$0xf0]  ;;  %v5816_v13 = vor.u32 %v6948_v55, %v5815_v5  ;;  %v7134_v60 = vld [vmem:[%s10692_s8 + $0x69c] sm:$0xf] }
 0x285   :  { %v9567_v2 = vpack.c.bf16 %v2431_v62, %v2427_v61  ;;  %v7067_v61 = vld [vmem:[%s10692_s8 + $0x480] sm:$0xf0]  ;;  %v6488_v62 = vor.u32 %v7116_v51, %v6487_v49  ;;  %v6573_v37 = vld [vmem:[%s10692_s8 + $0x6b4] sm:$0xf0]  ;;  %v6973_v51 = vld [vmem:[%s10692_s8 + $0x194] sm:$0xf] }
 0x286   :  { %v9575_v57 = vpack.c.bf16 %v2433_v0, %v2429_v63  ;;  %v2381_v6 = vpop.f32.mrf.mxu3  ;;  %v6011_v63 = vld [vmem:[%s10692_s8 + $0x238] sm:$0xf]  ;;  %v6997_v0 = vld [vmem:[%s10692_s8 + $0x250] sm:$0xf0]  ;;  %v6292_v4 = vor.u32 %v7067_v61, %v6291_v59  ;;  %v7039_v49 = vld [vmem:[%s10692_s8 + $0x3a0] sm:$0xf0]  ;;  %v6576_v59 = vor.u32 %v7134_v60, %v6573_v37 }
 0x287   :  { %v2382_v10 = vadd.f32 %v2381_v6, %v2202_v17  ;;  %v2409_v11 = vpop.f32.mrf.mxu2  ;;  %3884 = vmatmul.bf16.vlgmr.msra.gmra.mxu1 %v9567_v2  ;;  %v7004_v17 = vld [vmem:[%s10692_s8 + $0x288] sm:$0xf0]  ;;  %v6012_v6 = vor.u32 %v6997_v0, %v6011_v63  ;;  %v6097_v63 = vld [vmem:[%s10692_s8 + $0x2fc] sm:$0xf0]  ;;  %v6966_v5 = vld [vmem:[%s10692_s8 + $0x15c] sm:$0xf] }
 0x288   :  { %v2410_v14 = vadd.f32 %v2409_v11, %v2204_v53  ;;  %3912 = vmatmul.bf16.vlgmr.msra.gmra.mxu0 %v9575_v57  ;;  %3988 = vmatpush.bf16.msra.mxu1 %v6152_v1  ;;  %v5843_v53 = vld [vmem:[%s10692_s8 + $0xe8] sm:$0xf]  ;;  %v6040_v58 = vor.u32 %v7004_v17, %v6039_v47  ;;  %v5983_v11 = vld [vmem:[%s10692_s8 + $0x200] sm:$0xf]  ;;  %v6927_v17 = vld [vmem:[%s10692_s8 + $0x20] sm:$0xf0] }
 0x289   :  { %v2430_v19 = vmax.f32 %v2382_v10, 0.0  ;;  %4016 = vmatpush.bf16.msra.mxu0 %v6600_v3  ;;  %v5844_v1 = vor.u32 %v6955_v56, %v5843_v53  ;;  %v7109_v3 = vld [vmem:[%s10692_s8 + $0x5d0] sm:$0xf0]  ;;  %v5731_v47 = vld [vmem:[%s10692_s8 + $0x8] sm:$0xf] }
 0x28a   :  { %v2432_v8 = vmax.f32 %v2410_v14, 0.0  ;;  %v6460_v10 = vor.u32 %v7109_v3, %v6459_v43  ;;  %v6431_v14 = vld [vmem:[%s10692_s8 + $0x580] sm:$0xf]  ;;  %v7085_v56 = vld [vmem:[%s10692_s8 + $0x514] sm:$0xf]  ;;  %v5732_v61 = vor.u32 %v6927_v17, %v5731_v47 }
 0x28b   :  { %v9609_v28 = vpack.c.bf16 %v2430_v19, %v2426_v18  ;;  %v6941_v18 = vld [vmem:[%s10692_s8 + $0x90] sm:$0xf0]  ;;  %v5984_v19 = vor.u32 %v6990_v12, %v5983_v11  ;;  %v7127_v43 = vld [vmem:[%s10692_s8 + $0x664] sm:$0xf]  ;;  %v6545_v3 = vld [vmem:[%s10692_s8 + $0x67c] sm:$0xf0] }
 0x28c   :  { %v9617_v33 = vpack.c.bf16 %v2432_v8, %v2428_v23  ;;  %3989 = vmatpush.bf16.msra.mxu1 %v6124_v15  ;;  %v7102_v15 = vld [vmem:[%s10692_s8 + $0x598] sm:$0xf0]  ;;  %v6983_v8 = vld [vmem:[%s10692_s8 + $0x1e0] sm:$0xf0]  ;;  %v5788_v26 = vor.u32 %v6941_v18, %v5787_v50  ;;  %v5901_v55 = vld [vmem:[%s10692_s8 + $0x174] sm:$0xf0] }
 0x28d   :  { %4017 = vmatpush.bf16.msra.mxu0 %v6572_v20  ;;  %3870 = vmatmul.bf16.vlgmr.msra.gmra.mxu3 %v9609_v28  ;;  %v6235_v20 = vld [vmem:[%s10692_s8 + $0x3f8] sm:$0xf]  ;;  %v6432_v23 = vor.u32 %v7102_v15, %v6431_v14  ;;  %v5956_v38 = vor.u32 %v6983_v8, %v5955_v22  ;;  %v7008_v11 = vld [vmem:[%s10692_s8 + $0x2ac] sm:$0xf]  ;;  %v6069_v12 = vld [vmem:[%s10692_s8 + $0x2c4] sm:$0xf0] }
 0x28e   :  { %3898 = vmatmul.bf16.vlgmr.msra.gmra.mxu2 %v9617_v33  ;;  %3974 = vmatpush.bf16.msra.mxu3 %v5928_v24  ;;  %v6403_v24 = vld [vmem:[%s10692_s8 + $0x548] sm:$0xf]  ;;  %v7120_v14 = vld [vmem:[%s10692_s8 + $0x62c] sm:$0xf]  ;;  %v6959_v50 = vld [vmem:[%s10692_s8 + $0x124] sm:$0xf] }
 0x28f   :  { %4002 = vmatpush.bf16.msra.mxu2 %v6376_v29  ;;  %v7029_v29 = vld [vmem:[%s10692_s8 + $0x354] sm:$0xf]  ;;  %v6404_v41 = vor.u32 %v7095_v25, %v6403_v24  ;;  %v6517_v15 = vld [vmem:[%s10692_s8 + $0x644] sm:$0xf0]  ;;  %v5873_v18 = vld [vmem:[%s10692_s8 + $0x13c] sm:$0xf0] }
 0x290   :  { %3990 = vmatpush.bf16.msra.mxu1 %v6096_v34  ;;  %v6236_v34 = vor.u32 %v7053_v21, %v6235_v20  ;;  %v6156_v44 = vor.u32 %v7029_v29, %v6153_v30  ;;  %v7071_v20 = vld [vmem:[%s10692_s8 + $0x4a4] sm:$0xf]  ;;  %v6321_v21 = vld [vmem:[%s10692_s8 + $0x4bc] sm:$0xf0]  ;;  %v6520_v22 = vor.u32 %v7120_v14, %v6517_v15  ;;  %v6041_v8 = vld [vmem:[%s10692_s8 + $0x28c] sm:$0xf0]  ;;  %v5876_v24 = vor.u32 %v6959_v50, %v5873_v18 }
 0x291   :  { %4018 = vmatpush.bf16.msra.mxu0 %v6544_v54  ;;  %v6934_v54 = vld [vmem:[%s10692_s8 + $0x58] sm:$0xf0]  ;;  %v7113_v25 = vld [vmem:[%s10692_s8 + $0x5f4] sm:$0xf]  ;;  %v6324_v29 = vor.u32 %v7071_v20, %v6321_v21  ;;  %v6952_v30 = vld [vmem:[%s10692_s8 + $0xec] sm:$0xf] }
 0x292   :  { %3975 = vmatpush.bf16.msra.mxu3 %v5900_v40  ;;  %v7046_v40 = vld [vmem:[%s10692_s8 + $0x3d8] sm:$0xf0]  ;;  %v5760_v27 = vor.u32 %v6934_v54, %v5759_v36  ;;  %v5845_v31 = vld [vmem:[%s10692_s8 + $0x104] sm:$0xf0]  ;;  %v7064_v35 = vld [vmem:[%s10692_s8 + $0x46c] sm:$0xf] }
 0x293   :  { %4003 = vmatpush.bf16.msra.mxu2 %v6348_v45  ;;  %v7022_v45 = vld [vmem:[%s10692_s8 + $0x31c] sm:$0xf]  ;;  %v6293_v36 = vld [vmem:[%s10692_s8 + $0x484] sm:$0xf0]  ;;  %v7057_v60 = vld [vmem:[%s10692_s8 + $0x434] sm:$0xf] }
 0x294   :  { %3991 = vmatpush.bf16.msra.mxu1 %v6068_v32  ;;  %v6125_v32 = vld [vmem:[%s10692_s8 + $0x334] sm:$0xf0]  ;;  %v6265_v37 = vld [vmem:[%s10692_s8 + $0x44c] sm:$0xf0]  ;;  %v6987_v47 = vld [vmem:[%s10692_s8 + $0x204] sm:$0xf] }
 0x295   :  { %4019 = vmatpush.bf16.msra.mxu0 %v6516_v42  ;;  %v6208_v42 = vor.u32 %v7046_v40, %v6207_v39  ;;  %v6128_v53 = vor.u32 %v7022_v45, %v6125_v32  ;;  %v6013_v39 = vld [vmem:[%s10692_s8 + $0x254] sm:$0xf0]  ;;  %v5848_v40 = vor.u32 %v6952_v30, %v5845_v31  ;;  %v6296_v45 = vor.u32 %v7064_v35, %v6293_v36  ;;  %v5985_v17 = vld [vmem:[%s10692_s8 + $0x21c] sm:$0xf0]  ;;  %v7138_v21 = vld [vmem:[%s10692_s8 + $0x6b8] sm:$0xf0] }
 0x296   :  { %3976 = vmatpush.bf16.msra.mxu3 %v5872_v48  ;;  %v6179_v48 = vld [vmem:[%s10692_s8 + $0x388] sm:$0xf]  ;;  %v6579_v20 = vld [vmem:[%s10692_s8 + $0x6a0] sm:$0xf]  ;;  %v6383_v31 = vld [vmem:[%s10692_s8 + $0x518] sm:$0xf] }
 0x297   :  { %4004 = vmatpush.bf16.msra.mxu2 %v6320_v52  ;;  %3940 = vmatmul.bf16.vlgmr.msrb.gmra.mxu1 %v9567_v2  ;;  %v5929_v52 = vld [vmem:[%s10692_s8 + $0x1ac] sm:$0xf0]  ;;  %v6180_v0 = vor.u32 %v7039_v49, %v6179_v48  ;;  %v7099_v49 = vld [vmem:[%s10692_s8 + $0x584] sm:$0xf]  ;;  %v6580_v35 = vor.u32 %v7138_v21, %v6579_v20  ;;  %v6271_v20 = vld [vmem:[%s10692_s8 + $0x438] sm:$0xf] }
 0x298   :  { %3968 = vmatmul.bf16.vlgmr.msrb.gmra.mxu0 %v9575_v57  ;;  %3992 = vmatpush.bf16.msra.mxu1 %v6040_v58  ;;  %v6377_v58 = vld [vmem:[%s10692_s8 + $0x52c] sm:$0xf0]  ;;  %v7061_v21 = vld [vmem:[%s10692_s8 + $0x450] sm:$0xf0] }
 0x299   :  { %4020 = vmatpush.bf16.msra.mxu0 %v6488_v62  ;;  %v7015_v62 = vld [vmem:[%s10692_s8 + $0x2e4] sm:$0xf] }
 0x29a   :  { %3977 = vmatpush.bf16.msra.mxu3 %v5844_v1  ;;  %v5932_v1 = vor.u32 %v6973_v51, %v5929_v52  ;;  %v6433_v51 = vld [vmem:[%s10692_s8 + $0x59c] sm:$0xf0]  ;;  %v6268_v52 = vor.u32 %v7057_v60, %v6265_v37  ;;  %v7082_v37 = vld [vmem:[%s10692_s8 + $0x4f8] sm:$0xf0] }
 0x29b   :  { %4005 = vmatpush.bf16.msra.mxu2 %v6292_v4  ;;  %v6380_v4 = vor.u32 %v7085_v56, %v6377_v58  ;;  %v5789_v56 = vld [vmem:[%s10692_s8 + $0x94] sm:$0xf0]  ;;  %v5988_v58 = vor.u32 %v6987_v47, %v5985_v17  ;;  %v6355_v60 = vld [vmem:[%s10692_s8 + $0x4e0] sm:$0xf]  ;;  %v6075_v47 = vld [vmem:[%s10692_s8 + $0x2b0] sm:$0xf] }
 0x29c   :  { %3993 = vmatpush.bf16.msra.mxu1 %v6012_v6  ;;  %v6100_v6 = vor.u32 %v7015_v62, %v6097_v63  ;;  %v6980_v62 = vld [vmem:[%s10692_s8 + $0x1cc] sm:$0xf]  ;;  %v6436_v63 = vor.u32 %v7099_v49, %v6433_v51  ;;  %v6523_v49 = vld [vmem:[%s10692_s8 + $0x630] sm:$0xf] }
 0x29d   :  { %4021 = vmatpush.bf16.msra.mxu0 %v6460_v10  ;;  %3926 = vmatmul.bf16.vlgmr.msrb.gmra.mxu3 %v9609_v28  ;;  %v6548_v10 = vor.u32 %v7127_v43, %v6545_v3  ;;  %v6405_v43 = vld [vmem:[%s10692_s8 + $0x564] sm:$0xf0]  ;;  %v7012_v17 = vld [vmem:[%s10692_s8 + $0x2c8] sm:$0xf0] }
 0x29e   :  { %3954 = vmatmul.bf16.vlgmr.msrb.gmra.mxu2 %v9617_v33  ;;  %3978 = vmatpush.bf16.msra.mxu3 %v5816_v13  ;;  %v5904_v13 = vor.u32 %v6966_v5, %v5901_v55  ;;  %v7033_v5 = vld [vmem:[%s10692_s8 + $0x370] sm:$0xf0]  ;;  %v6607_v55 = vld [vmem:[%s10692_s8 + $0x6d8] sm:$0xf]  ;;  %v7124_v51 = vld [vmem:[%s10692_s8 + $0x648] sm:$0xf0] }
 0x29f   :  { %4006 = vmatpush.bf16.msra.mxu2 %v6264_v16  ;;  %v6352_v16 = vor.u32 %v7078_v7, %v6349_v9  ;;  %v7145_v7 = vld [vmem:[%s10692_s8 + $0x6f0] sm:$0xf0]  ;;  %v6931_v9 = vld [vmem:[%s10692_s8 + $0x44] sm:$0xf] }
 0x2a0   :  { %3994 = vmatpush.bf16.msra.mxu1 %v5984_v19  ;;  %v6072_v19 = vor.u32 %v7008_v11, %v6069_v12  ;;  %v7043_v12 = vld [vmem:[%s10692_s8 + $0x3c4] sm:$0xf]  ;;  %v6608_v50 = vor.u32 %v7145_v7, %v6607_v55  ;;  %v6956_v55 = vld [vmem:[%s10692_s8 + $0x108] sm:$0xf0]  ;;  %v6299_v7 = vld [vmem:[%s10692_s8 + $0x470] sm:$0xf] }
 0x2a1   :  { %4022 = vmatpush.bf16.msra.mxu0 %v6432_v23  ;;  %v7001_v23 = vld [vmem:[%s10692_s8 + $0x274] sm:$0xf] }
 0x2a2   :  { %3979 = vmatpush.bf16.msra.mxu3 %v5788_v26  ;;  %v6489_v26 = vld [vmem:[%s10692_s8 + $0x60c] sm:$0xf0] }
 0x2a3   :  { %4007 = vmatpush.bf16.msra.mxu2 %v6236_v34  ;;  %v6044_v34 = vor.u32 %v7001_v23, %v6041_v8  ;;  %v6492_v54 = vor.u32 %v7113_v25, %v6489_v26  ;;  %v6924_v23 = vld [vmem:[%s10692_s8 + $0xc] sm:$0xf]  ;;  %v5733_v8 = vld [vmem:[%s10692_s8 + $0x24] sm:$0xf0]  ;;  %v5935_v26 = vld [vmem:[%s10692_s8 + $0x198] sm:$0xf] }
 0x2a4   :  { %3995 = vmatpush.bf16.msra.mxu1 %v5956_v38  ;;  %v6994_v38 = vld [vmem:[%s10692_s8 + $0x23c] sm:$0xf]  ;;  %v6181_v25 = vld [vmem:[%s10692_s8 + $0x3a4] sm:$0xf0]  ;;  %v5736_v36 = vor.u32 %v6924_v23, %v5733_v8  ;;  %v6991_v8 = vld [vmem:[%s10692_s8 + $0x220] sm:$0xf0] }
 0x2a5   :  { %4023 = vmatpush.bf16.msra.mxu0 %v6404_v41  ;;  %v7106_v41 = vld [vmem:[%s10692_s8 + $0x5bc] sm:$0xf]  ;;  %v6016_v32 = vor.u32 %v6994_v38, %v6013_v39  ;;  %v7019_v38 = vld [vmem:[%s10692_s8 + $0x300] sm:$0xf0]  ;;  %v5991_v23 = vld [vmem:[%s10692_s8 + $0x208] sm:$0xf] }
 0x2a6   :  { %3980 = vmatpush.bf16.msra.mxu3 %v5760_v27  ;;  %v5817_v27 = vld [vmem:[%s10692_s8 + $0xcc] sm:$0xf0] }
 0x2a7   :  { %4008 = vmatpush.bf16.msra.mxu2 %v6208_v42  ;;  %3996 = vmatmul.bf16.vlgmr.msra.gmra.mxu1 %v9567_v2 }
 0x2a8   :  { %4044 = vmatpush.bf16.msrb.mxu1 %v6156_v44  ;;  %4024 = vmatmul.bf16.vlgmr.msra.gmra.mxu0 %v9575_v57  ;;  %v6461_v44 = vld [vmem:[%s10692_s8 + $0x5d4] sm:$0xf0] }
 0x2a9   :  { %4072 = vmatpush.bf16.msrb.mxu0 %v6604_v46  ;;  %v6945_v46 = vld [vmem:[%s10692_s8 + $0xb4] sm:$0xf]  ;;  %v6464_v42 = vor.u32 %v7106_v41, %v6461_v44  ;;  %v6551_v41 = vld [vmem:[%s10692_s8 + $0x668] sm:$0xf]  ;;  %v7131_v44 = vld [vmem:[%s10692_s8 + $0x680] sm:$0xf0] }
 0x2aa   :  { %3981 = vmatpush.bf16.msra.mxu3 %v5732_v61  ;;  %v5820_v48 = vor.u32 %v6945_v46, %v5817_v27  ;;  %v6237_v61 = vld [vmem:[%s10692_s8 + $0x414] sm:$0xf0]  ;;  %v5907_v46 = vld [vmem:[%s10692_s8 + $0x160] sm:$0xf]  ;;  %v6970_v27 = vld [vmem:[%s10692_s8 + $0x178] sm:$0xf0] }
 0x2ab   :  { %4009 = vmatpush.bf16.msra.mxu2 %v6180_v0  ;;  %v5957_v0 = vld [vmem:[%s10692_s8 + $0x1e4] sm:$0xf0] }
 0x2ac   :  { %4045 = vmatpush.bf16.msrb.mxu1 %v6128_v53  ;;  %v6938_v53 = vld [vmem:[%s10692_s8 + $0x7c] sm:$0xf]  ;;  %v5960_v11 = vor.u32 %v6980_v62, %v5957_v0  ;;  %v6524_v62 = vor.u32 %v7124_v51, %v6523_v49  ;;  %v7005_v0 = vld [vmem:[%s10692_s8 + $0x290] sm:$0xf0] }
 0x2ad   :  { %4073 = vmatpush.bf16.msrb.mxu0 %v6576_v59  ;;  %3982 = vmatmul.bf16.vlgmr.msra.gmra.mxu3 %v9609_v28  ;;  %v7050_v59 = vld [vmem:[%s10692_s8 + $0x3fc] sm:$0xf]  ;;  %v5792_v3 = vor.u32 %v6938_v53, %v5789_v56  ;;  %v5879_v53 = vld [vmem:[%s10692_s8 + $0x128] sm:$0xf]  ;;  %v6963_v56 = vld [vmem:[%s10692_s8 + $0x140] sm:$0xf0] }
 0x2ae   :  { %4030 = vmatpush.bf16.msrb.mxu3 %v5932_v1  ;;  %4010 = vmatmul.bf16.vlgmr.msra.gmra.mxu2 %v9617_v33  ;;  %v7092_v1 = vld [vmem:[%s10692_s8 + $0x54c] sm:$0xf] }
 0x2af   :  { %4058 = vmatpush.bf16.msrb.mxu2 %v6380_v4  ;;  %v6159_v4 = vld [vmem:[%s10692_s8 + $0x358] sm:$0xf]  ;;  %v6408_v14 = vor.u32 %v7092_v1, %v6405_v43  ;;  %v5880_v1 = vor.u32 %v6963_v56, %v5879_v53 }
 0x2b0   :  { %4046 = vmatpush.bf16.msrb.mxu1 %v6100_v6  ;;  %v6240_v6 = vor.u32 %v7050_v59, %v6237_v61  ;;  %v6160_v15 = vor.u32 %v7033_v5, %v6159_v4  ;;  %v6327_v59 = vld [vmem:[%s10692_s8 + $0x4a8] sm:$0xf]  ;;  %v7075_v61 = vld [vmem:[%s10692_s8 + $0x4c0] sm:$0xf0]  ;;  %v6495_v43 = vld [vmem:[%s10692_s8 + $0x5f8] sm:$0xf] }
 0x2b1   :  { %4074 = vmatpush.bf16.msrb.mxu0 %v6548_v10  ;;  %v5761_v10 = vld [vmem:[%s10692_s8 + $0x5c] sm:$0xf0]  ;;  %v6328_v4 = vor.u32 %v7075_v61, %v6327_v59  ;;  %v5851_v5 = vld [vmem:[%s10692_s8 + $0xf0] sm:$0xf]  ;;  %v7135_v59 = vld [vmem:[%s10692_s8 + $0x6a4] sm:$0xf] }
 0x2b2   :  { %4031 = vmatpush.bf16.msrb.mxu3 %v5904_v13  ;;  %v6209_v13 = vld [vmem:[%s10692_s8 + $0x3dc] sm:$0xf0]  ;;  %v5764_v18 = vor.u32 %v6931_v9, %v5761_v10  ;;  %v7068_v9 = vld [vmem:[%s10692_s8 + $0x488] sm:$0xf0] }
 0x2b3   :  { %4059 = vmatpush.bf16.msrb.mxu2 %v6352_v16  ;;  %v6131_v16 = vld [vmem:[%s10692_s8 + $0x320] sm:$0xf] }
 0x2b4   :  { %4047 = vmatpush.bf16.msrb.mxu1 %v6072_v19  ;;  %v7026_v19 = vld [vmem:[%s10692_s8 + $0x338] sm:$0xf0]  ;;  %v6581_v61 = vld [vmem:[%s10692_s8 + $0x6bc] sm:$0xf0] }
 0x2b5   :  { %4075 = vmatpush.bf16.msrb.mxu0 %v6520_v22  ;;  %v6212_v22 = vor.u32 %v7043_v12, %v6209_v13  ;;  %v6132_v30 = vor.u32 %v7026_v19, %v6131_v16  ;;  %v6998_v12 = vld [vmem:[%s10692_s8 + $0x258] sm:$0xf0]  ;;  %v5852_v13 = vor.u32 %v6956_v55, %v5851_v5  ;;  %v6300_v16 = vor.u32 %v7068_v9, %v6299_v7 }
 0x2b6   :  { %4032 = vmatpush.bf16.msrb.mxu3 %v5876_v24  ;;  %v7036_v24 = vld [vmem:[%s10692_s8 + $0x38c] sm:$0xf]  ;;  %v7086_v55 = vld [vmem:[%s10692_s8 + $0x51c] sm:$0xf]  ;;  %v6584_v7 = vor.u32 %v7135_v59, %v6581_v61  ;;  %v6273_v61 = vld [vmem:[%s10692_s8 + $0x454] sm:$0xf0] }
 0x2b7   :  { %4060 = vmatpush.bf16.msrb.mxu2 %v6324_v29  ;;  %v6977_v29 = vld [vmem:[%s10692_s8 + $0x1b0] sm:$0xf0]  ;;  %v6184_v39 = vor.u32 %v7036_v24, %v6181_v25  ;;  %v6439_v25 = vld [vmem:[%s10692_s8 + $0x588] sm:$0xf]  ;;  %v7058_v59 = vld [vmem:[%s10692_s8 + $0x43c] sm:$0xf] }
 0x2b8   :  { %4048 = vmatpush.bf16.msrb.mxu1 %v6044_v34  ;;  %v7089_v34 = vld [vmem:[%s10692_s8 + $0x530] sm:$0xf0] }
 0x2b9   :  { %4076 = vmatpush.bf16.msrb.mxu0 %v6492_v54  ;;  %v6103_v54 = vld [vmem:[%s10692_s8 + $0x2e8] sm:$0xf] }
 0x2ba   :  { %4033 = vmatpush.bf16.msrb.mxu3 %v5848_v40  ;;  %v5936_v40 = vor.u32 %v6977_v29, %v5935_v26  ;;  %v7103_v26 = vld [vmem:[%s10692_s8 + $0x5a0] sm:$0xf0]  ;;  %v6272_v29 = vor.u32 %v7061_v21, %v6271_v20  ;;  %v6357_v21 = vld [vmem:[%s10692_s8 + $0x4fc] sm:$0xf0] }
 0x2bb   :  { %4061 = vmatpush.bf16.msrb.mxu2 %v6296_v45  ;;  %v6384_v45 = vor.u32 %v7089_v34, %v6383_v31  ;;  %v6942_v31 = vld [vmem:[%s10692_s8 + $0x98] sm:$0xf0]  ;;  %v5992_v34 = vor.u32 %v6991_v8, %v5991_v23  ;;  %v7079_v20 = vld [vmem:[%s10692_s8 + $0x4e4] sm:$0xf]  ;;  %v7009_v23 = vld [vmem:[%s10692_s8 + $0x2b4] sm:$0xf] }
 0x2bc   :  { %4049 = vmatpush.bf16.msrb.mxu1 %v6016_v32  ;;  %v6104_v32 = vor.u32 %v7019_v38, %v6103_v54  ;;  %v5963_v54 = vld [vmem:[%s10692_s8 + $0x1d0] sm:$0xf]  ;;  %v6440_v38 = vor.u32 %v7103_v26, %v6439_v25  ;;  %v7121_v25 = vld [vmem:[%s10692_s8 + $0x634] sm:$0xf] }
 0x2bd   :  { %4077 = vmatpush.bf16.msrb.mxu0 %v6464_v42  ;;  %v6552_v42 = vor.u32 %v7131_v44, %v6551_v41  ;;  %v7096_v41 = vld [vmem:[%s10692_s8 + $0x568] sm:$0xf0]  ;;  %v6077_v8 = vld [vmem:[%s10692_s8 + $0x2cc] sm:$0xf0] }
 0x2be   :  { %4034 = vmatpush.bf16.msrb.mxu3 %v5820_v48  ;;  %v5908_v48 = vor.u32 %v6970_v27, %v5907_v46  ;;  %v6161_v46 = vld [vmem:[%s10692_s8 + $0x374] sm:$0xf0]  ;;  %v7142_v27 = vld [vmem:[%s10692_s8 + $0x6dc] sm:$0xf]  ;;  %v6525_v26 = vld [vmem:[%s10692_s8 + $0x64c] sm:$0xf0] }
 0x2bf   :  { %4062 = vmatpush.bf16.msrb.mxu2 %v6268_v52  ;;  %v6356_v52 = vor.u32 %v7082_v37, %v6355_v60  ;;  %v6609_v60 = vld [vmem:[%s10692_s8 + $0x6f4] sm:$0xf0]  ;;  %v5767_v37 = vld [vmem:[%s10692_s8 + $0x48] sm:$0xf] }
 0x2c0   :  { %4050 = vmatpush.bf16.msrb.mxu1 %v5988_v58  ;;  %v6076_v58 = vor.u32 %v7012_v17, %v6075_v47  ;;  %v6215_v17 = vld [vmem:[%s10692_s8 + $0x3c8] sm:$0xf]  ;;  %v6612_v53 = vor.u32 %v7142_v27, %v6609_v60  ;;  %v5853_v27 = vld [vmem:[%s10692_s8 + $0x10c] sm:$0xf0]  ;;  %v7065_v60 = vld [vmem:[%s10692_s8 + $0x474] sm:$0xf] }
 0x2c1   :  { %4078 = vmatpush.bf16.msrb.mxu0 %v6436_v63  ;;  %v6047_v63 = vld [vmem:[%s10692_s8 + $0x278] sm:$0xf] }
 0x2c2   :  { %4035 = vmatpush.bf16.msrb.mxu3 %v5792_v3  ;;  %v7117_v3 = vld [vmem:[%s10692_s8 + $0x610] sm:$0xf0] }
 0x2c3   :  { %4063 = vmatpush.bf16.msrb.mxu2 %v6240_v6  ;;  %v6048_v6 = vor.u32 %v7005_v0, %v6047_v63  ;;  %v6496_v10 = vor.u32 %v7117_v3, %v6495_v43  ;;  %v5739_v63 = vld [vmem:[%s10692_s8 + $0x10] sm:$0xf]  ;;  %v6928_v0 = vld [vmem:[%s10692_s8 + $0x28] sm:$0xf0]  ;;  %v6974_v3 = vld [vmem:[%s10692_s8 + $0x19c] sm:$0xf] }
 0x2c4   :  { %4051 = vmatpush.bf16.msrb.mxu1 %v5960_v11  ;;  %v6019_v11 = vld [vmem:[%s10692_s8 + $0x240] sm:$0xf]  ;;  %v7040_v43 = vld [vmem:[%s10692_s8 + $0x3a8] sm:$0xf0]  ;;  %v5740_v9 = vor.u32 %v6928_v0, %v5739_v63  ;;  %v5993_v0 = vld [vmem:[%s10692_s8 + $0x224] sm:$0xf0] }
 0x2c5   :  { %4079 = vmatpush.bf16.msrb.mxu0 %v6408_v14  ;;  %v6467_v14 = vld [vmem:[%s10692_s8 + $0x5c0] sm:$0xf]  ;;  %v6020_v19 = vor.u32 %v6998_v12, %v6019_v11  ;;  %v6105_v11 = vld [vmem:[%s10692_s8 + $0x304] sm:$0xf0]  ;;  %v6988_v63 = vld [vmem:[%s10692_s8 + $0x20c] sm:$0xf] }
 0x2c6   :  { %4036 = vmatpush.bf16.msrb.mxu3 %v5764_v18  ;;  %v6949_v18 = vld [vmem:[%s10692_s8 + $0xd0] sm:$0xf0] }
 0x2c7   :  { %4064 = vmatpush.bf16.msrb.mxu2 %v6212_v22  ;;  %4052 = vmatmul.bf16.vlgmr.msrb.gmra.mxu1 %v9567_v2 }
 0x2c8   :  { %4100 = vmatpush.bf16.msra.mxu1 %v6160_v15  ;;  %4080 = vmatmul.bf16.vlgmr.msrb.gmra.mxu0 %v9575_v57  ;;  %v7110_v15 = vld [vmem:[%s10692_s8 + $0x5d8] sm:$0xf0] }
 0x2c9   :  { %4128 = vmatpush.bf16.msra.mxu0 %v6608_v50  ;;  %v5823_v50 = vld [vmem:[%s10692_s8 + $0xb8] sm:$0xf]  ;;  %v6468_v22 = vor.u32 %v7110_v15, %v6467_v14  ;;  %v7128_v14 = vld [vmem:[%s10692_s8 + $0x66c] sm:$0xf]  ;;  %v6553_v15 = vld [vmem:[%s10692_s8 + $0x684] sm:$0xf0] }
 0x2ca   :  { %4037 = vmatpush.bf16.msrb.mxu3 %v5736_v36  ;;  %v5824_v24 = vor.u32 %v6949_v18, %v5823_v50  ;;  %v7054_v36 = vld [vmem:[%s10692_s8 + $0x418] sm:$0xf0]  ;;  %v6967_v50 = vld [vmem:[%s10692_s8 + $0x164] sm:$0xf]  ;;  %v5909_v18 = vld [vmem:[%s10692_s8 + $0x17c] sm:$0xf0] }
 0x2cb   :  { %4065 = vmatpush.bf16.msrb.mxu2 %v6184_v39  ;;  %v6984_v39 = vld [vmem:[%s10692_s8 + $0x1e8] sm:$0xf0] }
 0x2cc   :  { %4101 = vmatpush.bf16.msra.mxu1 %v6132_v30  ;;  %v5795_v30 = vld [vmem:[%s10692_s8 + $0x80] sm:$0xf]  ;;  %v5964_v47 = vor.u32 %v6984_v39, %v5963_v54  ;;  %v6528_v54 = vor.u32 %v7121_v25, %v6525_v26  ;;  %v6049_v39 = vld [vmem:[%s10692_s8 + $0x294] sm:$0xf0] }
 0x2cd   :  { %4129 = vmatpush.bf16.msra.mxu0 %v6580_v35  ;;  %4038 = vmatmul.bf16.vlgmr.msrb.gmra.mxu3 %v9609_v28  ;;  %v6243_v35 = vld [vmem:[%s10692_s8 + $0x400] sm:$0xf]  ;;  %v5796_v44 = vor.u32 %v6942_v31, %v5795_v30  ;;  %v6960_v30 = vld [vmem:[%s10692_s8 + $0x12c] sm:$0xf]  ;;  %v5881_v31 = vld [vmem:[%s10692_s8 + $0x144] sm:$0xf0] }
 0x2ce   :  { %4086 = vmatpush.bf16.msra.mxu3 %v5936_v40  ;;  %4066 = vmatmul.bf16.vlgmr.msrb.gmra.mxu2 %v9617_v33  ;;  %v6411_v40 = vld [vmem:[%s10692_s8 + $0x550] sm:$0xf] }
 0x2cf   :  { %4114 = vmatpush.bf16.msra.mxu2 %v6384_v45  ;;  %v7030_v45 = vld [vmem:[%s10692_s8 + $0x35c] sm:$0xf]  ;;  %v6412_v49 = vor.u32 %v7096_v41, %v6411_v40  ;;  %v5884_v40 = vor.u32 %v6960_v30, %v5881_v31 }
 0x2d0   :  { %4102 = vmatpush.bf16.msra.mxu1 %v6104_v32  ;;  %v6244_v32 = vor.u32 %v7054_v36, %v6243_v35  ;;  %v6164_v51 = vor.u32 %v7030_v45, %v6161_v46  ;;  %v7072_v35 = vld [vmem:[%s10692_s8 + $0x4ac] sm:$0xf]  ;;  %v6329_v36 = vld [vmem:[%s10692_s8 + $0x4c4] sm:$0xf0]  ;;  %v7114_v41 = vld [vmem:[%s10692_s8 + $0x5fc] sm:$0xf] }
 0x2d1   :  { %4130 = vmatpush.bf16.msra.mxu0 %v6552_v42  ;;  %v6935_v42 = vld [vmem:[%s10692_s8 + $0x60] sm:$0xf0]  ;;  %v6332_v45 = vor.u32 %v7072_v35, %v6329_v36  ;;  %v6953_v46 = vld [vmem:[%s10692_s8 + $0xf4] sm:$0xf]  ;;  %v6587_v35 = vld [vmem:[%s10692_s8 + $0x6a8] sm:$0xf] }
 0x2d2   :  { %4087 = vmatpush.bf16.msra.mxu3 %v5908_v48  ;;  %v7047_v48 = vld [vmem:[%s10692_s8 + $0x3e0] sm:$0xf0]  ;;  %v5768_v56 = vor.u32 %v6935_v42, %v5767_v37  ;;  %v6301_v37 = vld [vmem:[%s10692_s8 + $0x48c] sm:$0xf0] }
 0x2d3   :  { %4115 = vmatpush.bf16.msra.mxu2 %v6356_v52  ;;  %v7023_v52 = vld [vmem:[%s10692_s8 + $0x324] sm:$0xf] }
 0x2d4   :  { %4103 = vmatpush.bf16.msra.mxu1 %v6076_v58  ;;  %v6133_v58 = vld [vmem:[%s10692_s8 + $0x33c] sm:$0xf0]  ;;  %v7139_v36 = vld [vmem:[%s10692_s8 + $0x6c0] sm:$0xf0] }
 0x2d5   :  { %4131 = vmatpush.bf16.msra.mxu0 %v6524_v62  ;;  %v6216_v62 = vor.u32 %v7047_v48, %v6215_v17  ;;  %v6136_v5 = vor.u32 %v7023_v52, %v6133_v58  ;;  %v6021_v17 = vld [vmem:[%s10692_s8 + $0x25c] sm:$0xf0]  ;;  %v5856_v48 = vor.u32 %v6953_v46, %v5853_v27  ;;  %v6304_v52 = vor.u32 %v7065_v60, %v6301_v37 }
 0x2d6   :  { %4088 = vmatpush.bf16.msra.mxu3 %v5880_v1  ;;  %v6187_v1 = vld [vmem:[%s10692_s8 + $0x390] sm:$0xf]  ;;  %v6391_v27 = vld [vmem:[%s10692_s8 + $0x520] sm:$0xf]  ;;  %v6588_v60 = vor.u32 %v7139_v36, %v6587_v35 }
 0x2d7   :  { %4116 = vmatpush.bf16.msra.mxu2 %v6328_v4  ;;  %v5937_v4 = vld [vmem:[%s10692_s8 + $0x1b4] sm:$0xf0]  ;;  %v6188_v12 = vor.u32 %v7040_v43, %v6187_v1  ;;  %v7100_v43 = vld [vmem:[%s10692_s8 + $0x58c] sm:$0xf] }
 0x2d8   :  { %4104 = vmatpush.bf16.msra.mxu1 %v6048_v6  ;;  %v6385_v6 = vld [vmem:[%s10692_s8 + $0x534] sm:$0xf0] }
 0x2d9   :  { %4132 = vmatpush.bf16.msra.mxu0 %v6496_v10  ;;  %v7016_v10 = vld [vmem:[%s10692_s8 + $0x2ec] sm:$0xf] }
 0x2da   :  { %4089 = vmatpush.bf16.msra.mxu3 %v5852_v13  ;;  %v5940_v13 = vor.u32 %v6974_v3, %v5937_v4  ;;  %v6441_v3 = vld [vmem:[%s10692_s8 + $0x5a4] sm:$0xf0]  ;;  %v6276_v4 = vor.u32 %v7058_v59, %v6273_v61  ;;  %v7083_v61 = vld [vmem:[%s10692_s8 + $0x500] sm:$0xf0] }
 0x2db   :  { %4117 = vmatpush.bf16.msra.mxu2 %v6300_v16  ;;  %v6388_v16 = vor.u32 %v7086_v55, %v6385_v6  ;;  %v5797_v55 = vld [vmem:[%s10692_s8 + $0x9c] sm:$0xf0]  ;;  %v5996_v6 = vor.u32 %v6988_v63, %v5993_v0  ;;  %v6363_v59 = vld [vmem:[%s10692_s8 + $0x4e8] sm:$0xf]  ;;  %v6083_v63 = vld [vmem:[%s10692_s8 + $0x2b8] sm:$0xf] }
 0x2dc   :  { %4105 = vmatpush.bf16.msra.mxu1 %v6020_v19  ;;  %v6108_v19 = vor.u32 %v7016_v10, %v6105_v11  ;;  %v6981_v10 = vld [vmem:[%s10692_s8 + $0x1d4] sm:$0xf]  ;;  %v6444_v11 = vor.u32 %v7100_v43, %v6441_v3  ;;  %v6531_v43 = vld [vmem:[%s10692_s8 + $0x638] sm:$0xf] }
 0x2dd   :  { %4133 = vmatpush.bf16.msra.mxu0 %v6468_v22  ;;  %v6556_v22 = vor.u32 %v7128_v14, %v6553_v15  ;;  %v6413_v14 = vld [vmem:[%s10692_s8 + $0x56c] sm:$0xf0]  ;;  %v7013_v0 = vld [vmem:[%s10692_s8 + $0x2d0] sm:$0xf0] }
 0x2de   :  { %4090 = vmatpush.bf16.msra.mxu3 %v5824_v24  ;;  %v5912_v24 = vor.u32 %v6967_v50, %v5909_v18  ;;  %v7034_v50 = vld [vmem:[%s10692_s8 + $0x378] sm:$0xf0]  ;;  %v6615_v18 = vld [vmem:[%s10692_s8 + $0x6e0] sm:$0xf]  ;;  %v7125_v3 = vld [vmem:[%s10692_s8 + $0x650] sm:$0xf0] }
 0x2df   :  { %4118 = vmatpush.bf16.msra.mxu2 %v6272_v29  ;;  %v6360_v29 = vor.u32 %v7079_v20, %v6357_v21  ;;  %v7146_v20 = vld [vmem:[%s10692_s8 + $0x6f8] sm:$0xf0]  ;;  %v6932_v21 = vld [vmem:[%s10692_s8 + $0x4c] sm:$0xf] }
 0x2e0   :  { %4106 = vmatpush.bf16.msra.mxu1 %v5992_v34  ;;  %v6080_v34 = vor.u32 %v7009_v23, %v6077_v8  ;;  %v7044_v8 = vld [vmem:[%s10692_s8 + $0x3cc] sm:$0xf]  ;;  %v6616_v30 = vor.u32 %v7146_v20, %v6615_v18  ;;  %v6957_v18 = vld [vmem:[%s10692_s8 + $0x110] sm:$0xf0]  ;;  %v6307_v20 = vld [vmem:[%s10692_s8 + $0x478] sm:$0xf] }
 0x2e1   :  { %4134 = vmatpush.bf16.msra.mxu0 %v6440_v38  ;;  %v7002_v38 = vld [vmem:[%s10692_s8 + $0x27c] sm:$0xf] }
 0x2e2   :  { %4091 = vmatpush.bf16.msra.mxu3 %v5796_v44  ;;  %v6497_v44 = vld [vmem:[%s10692_s8 + $0x614] sm:$0xf0] }
 0x2e3   :  { %4119 = vmatpush.bf16.msra.mxu2 %v6244_v32  ;;  %v6052_v32 = vor.u32 %v7002_v38, %v6049_v39  ;;  %v6500_v42 = vor.u32 %v7114_v41, %v6497_v44  ;;  %v6925_v38 = vld [vmem:[%s10692_s8 + $0x14] sm:$0xf]  ;;  %v5741_v39 = vld [vmem:[%s10692_s8 + $0x2c] sm:$0xf0]  ;;  %v5943_v44 = vld [vmem:[%s10692_s8 + $0x1a0] sm:$0xf] }
 0x2e4   :  { %4107 = vmatpush.bf16.msra.mxu1 %v5964_v47  ;;  %v6995_v47 = vld [vmem:[%s10692_s8 + $0x244] sm:$0xf]  ;;  %v6189_v41 = vld [vmem:[%s10692_s8 + $0x3ac] sm:$0xf0]  ;;  %v5744_v37 = vor.u32 %v6925_v38, %v5741_v39  ;;  %v7062_v38 = vld [vmem:[%s10692_s8 + $0x458] sm:$0xf0] }
 0x2e5   :  { %4135 = vmatpush.bf16.msra.mxu0 %v6412_v49  ;;  %v7107_v49 = vld [vmem:[%s10692_s8 + $0x5c4] sm:$0xf]  ;;  %v6024_v58 = vor.u32 %v6995_v47, %v6021_v17  ;;  %v7020_v47 = vld [vmem:[%s10692_s8 + $0x308] sm:$0xf0] }
 0x2e6   :  { %4092 = vmatpush.bf16.msra.mxu3 %v5768_v56  ;;  %v5825_v56 = vld [vmem:[%s10692_s8 + $0xd4] sm:$0xf0] }
 0x2e7   :  { %4120 = vmatpush.bf16.msra.mxu2 %v6216_v62  ;;  %4108 = vmatmul.bf16.vlgmr.msra.gmra.mxu1 %v9567_v2 }
 0x2e8   :  { %4156 = vmatpush.bf16.msrb.mxu1 %v6164_v51  ;;  %4136 = vmatmul.bf16.vlgmr.msra.gmra.mxu0 %v9575_v57  ;;  %v6469_v51 = vld [vmem:[%s10692_s8 + $0x5dc] sm:$0xf0] }
 0x2e9   :  { %4184 = vmatpush.bf16.msrb.mxu0 %v6612_v53  ;;  %v6946_v53 = vld [vmem:[%s10692_s8 + $0xbc] sm:$0xf]  ;;  %v6472_v62 = vor.u32 %v7107_v49, %v6469_v51  ;;  %v6559_v49 = vld [vmem:[%s10692_s8 + $0x670] sm:$0xf]  ;;  %v7132_v51 = vld [vmem:[%s10692_s8 + $0x688] sm:$0xf0] }
 0x2ea   :  { %4093 = vmatpush.bf16.msra.mxu3 %v5740_v9  ;;  %v5828_v1 = vor.u32 %v6946_v53, %v5825_v56  ;;  %v6245_v9 = vld [vmem:[%s10692_s8 + $0x41c] sm:$0xf0]  ;;  %v5915_v53 = vld [vmem:[%s10692_s8 + $0x168] sm:$0xf]  ;;  %v6971_v56 = vld [vmem:[%s10692_s8 + $0x180] sm:$0xf0] }
 0x2eb   :  { %4121 = vmatpush.bf16.msra.mxu2 %v6188_v12  ;;  %v5965_v12 = vld [vmem:[%s10692_s8 + $0x1ec] sm:$0xf0] }
 0x2ec   :  { %4157 = vmatpush.bf16.msrb.mxu1 %v6136_v5  ;;  %v6939_v5 = vld [vmem:[%s10692_s8 + $0x84] sm:$0xf]  ;;  %v5968_v23 = vor.u32 %v6981_v10, %v5965_v12  ;;  %v6532_v10 = vor.u32 %v7125_v3, %v6531_v43  ;;  %v7006_v12 = vld [vmem:[%s10692_s8 + $0x298] sm:$0xf0]  ;;  %v6936_v43 = vld [vmem:[%s10692_s8 + $0x68] sm:$0xf0] }
 0x2ed   :  { %4185 = vmatpush.bf16.msrb.mxu0 %v6584_v7  ;;  %4094 = vmatmul.bf16.vlgmr.msra.gmra.mxu3 %v9609_v28  ;;  %v7051_v7 = vld [vmem:[%s10692_s8 + $0x404] sm:$0xf]  ;;  %v5800_v15 = vor.u32 %v6939_v5, %v5797_v55  ;;  %v5887_v5 = vld [vmem:[%s10692_s8 + $0x130] sm:$0xf]  ;;  %v6964_v55 = vld [vmem:[%s10692_s8 + $0x148] sm:$0xf0] }
 0x2ee   :  { %4142 = vmatpush.bf16.msrb.mxu3 %v5940_v13  ;;  %4122 = vmatmul.bf16.vlgmr.msra.gmra.mxu2 %v9617_v33  ;;  %v7093_v13 = vld [vmem:[%s10692_s8 + $0x554] sm:$0xf] }
 0x2ef   :  { %4170 = vmatpush.bf16.msrb.mxu2 %v6388_v16  ;;  %v6167_v16 = vld [vmem:[%s10692_s8 + $0x360] sm:$0xf]  ;;  %v6416_v25 = vor.u32 %v7093_v13, %v6413_v14  ;;  %v5888_v13 = vor.u32 %v6964_v55, %v5887_v5  ;;  %v7048_v5 = vld [vmem:[%s10692_s8 + $0x3e8] sm:$0xf0] }
 0x2f0   :  { %4158 = vmatpush.bf16.msrb.mxu1 %v6108_v19  ;;  %v6248_v19 = vor.u32 %v7051_v7, %v6245_v9  ;;  %v6168_v26 = vor.u32 %v7034_v50, %v6167_v16  ;;  %v6335_v7 = vld [vmem:[%s10692_s8 + $0x4b0] sm:$0xf]  ;;  %v7076_v9 = vld [vmem:[%s10692_s8 + $0x4c8] sm:$0xf0]  ;;  %v6503_v14 = vld [vmem:[%s10692_s8 + $0x600] sm:$0xf] }
 0x2f1   :  { %4186 = vmatpush.bf16.msrb.mxu0 %v6556_v22  ;;  %v5769_v22 = vld [vmem:[%s10692_s8 + $0x64] sm:$0xf0]  ;;  %v6336_v16 = vor.u32 %v7076_v9, %v6335_v7  ;;  %v5859_v50 = vld [vmem:[%s10692_s8 + $0xf8] sm:$0xf] }
 0x2f2   :  { %4143 = vmatpush.bf16.msrb.mxu3 %v5912_v24  ;;  %v6217_v24 = vld [vmem:[%s10692_s8 + $0x3e4] sm:$0xf0]  ;;  %v5772_v31 = vor.u32 %v6932_v21, %v5769_v22  ;;  %v7069_v21 = vld [vmem:[%s10692_s8 + $0x490] sm:$0xf0] }
 0x2f3   :  { %4171 = vmatpush.bf16.msrb.mxu2 %v6360_v29  ;;  %v6139_v29 = vld [vmem:[%s10692_s8 + $0x328] sm:$0xf] }
 0x2f4   :  { %4159 = vmatpush.bf16.msrb.mxu1 %v6080_v34  ;;  %v7027_v34 = vld [vmem:[%s10692_s8 + $0x340] sm:$0xf0] }
 0x2f5   :  { %4187 = vmatpush.bf16.msrb.mxu0 %v6528_v54  ;;  %v6220_v54 = vor.u32 %v7044_v8, %v6217_v24  ;;  %v6140_v46 = vor.u32 %v7027_v34, %v6139_v29  ;;  %v6999_v8 = vld [vmem:[%s10692_s8 + $0x260] sm:$0xf0]  ;;  %v5860_v24 = vor.u32 %v6957_v18, %v5859_v50  ;;  %v6950_v34 = vld [vmem:[%s10692_s8 + $0xd8] sm:$0xf0] }
 0x2f6   :  { %4144 = vmatpush.bf16.msrb.mxu3 %v5884_v40  ;;  %v7037_v40 = vld [vmem:[%s10692_s8 + $0x394] sm:$0xf]  ;;  %v10478_v29 = vld [vmem:[%s10696_s9] sm:$0x7f] }
 0x2f7   :  { %4172 = vmatpush.bf16.msrb.mxu2 %v6332_v45  ;;  %v6978_v45 = vld [vmem:[%s10692_s8 + $0x1b8] sm:$0xf0]  ;;  %v6192_v17 = vor.u32 %v7037_v40, %v6189_v41  ;;  %v2696_v40 = vperm.slane %v10478_v29, 0  ;;  %v5999_v41 = vld [vmem:[%s10692_s8 + $0x210] sm:$0xf] }
 0x2f8   :  { %4160 = vmatpush.bf16.msrb.mxu1 %v6052_v32  ;;  %v7090_v32 = vld [vmem:[%s10692_s8 + $0x538] sm:$0xf0] }
 0x2f9   :  { %4188 = vmatpush.bf16.msrb.mxu0 %v6500_v42  ;;  %v6111_v42 = vld [vmem:[%s10692_s8 + $0x2f0] sm:$0xf] }
 0x2fa   :  { %4145 = vmatpush.bf16.msrb.mxu3 %v5856_v48  ;;  %v5944_v48 = vor.u32 %v6978_v45, %v5943_v44  ;;  %v6992_v44 = vld [vmem:[%s10692_s8 + $0x228] sm:$0xf0] }
 0x2fb   :  { %4173 = vmatpush.bf16.msrb.mxu2 %v6304_v52  ;;  %v6392_v52 = vor.u32 %v7090_v32, %v6391_v27  ;;  %v7104_v27 = vld [vmem:[%s10692_s8 + $0x5a8] sm:$0xf0] }
 0x2fc   :  { %4161 = vmatpush.bf16.msrb.mxu1 %v6024_v58  ;;  %v6112_v58 = vor.u32 %v7020_v47, %v6111_v42 }
 0x2fd   :  { %4189 = vmatpush.bf16.msrb.mxu0 %v6472_v62  ;;  %v6560_v62 = vor.u32 %v7132_v51, %v6559_v49  ;;  %v7055_v49 = vld [vmem:[%s10692_s8 + $0x420] sm:$0xf0] }
 0x2fe   :  { %4146 = vmatpush.bf16.msrb.mxu3 %v5828_v1  ;;  %v5916_v1 = vor.u32 %v6971_v56, %v5915_v53  ;;  %v5971_v56 = vld [vmem:[%s10692_s8 + $0x1d8] sm:$0xf] }
 0x2ff   :  { %4174 = vmatpush.bf16.msrb.mxu2 %v6276_v4  ;;  %v6364_v4 = vor.u32 %v7083_v61, %v6363_v59  ;;  %v6419_v61 = vld [vmem:[%s10692_s8 + $0x558] sm:$0xf] }
 0x300   :  { %4162 = vmatpush.bf16.msrb.mxu1 %v5996_v6  ;;  %v6084_v6 = vor.u32 %v7013_v0, %v6083_v63 }
 0x301   :  { %4190 = vmatpush.bf16.msrb.mxu0 %v6444_v11  ;;  %v6055_v11 = vld [vmem:[%s10692_s8 + $0x280] sm:$0xf] }
 0x302   :  { %4147 = vmatpush.bf16.msrb.mxu3 %v5800_v15  ;;  %v7118_v15 = vld [vmem:[%s10692_s8 + $0x618] sm:$0xf0] }
 0x303   :  { %4175 = vmatpush.bf16.msrb.mxu2 %v6248_v19  ;;  %v6056_v19 = vor.u32 %v7006_v12, %v6055_v11  ;;  %v6504_v22 = vor.u32 %v7118_v15, %v6503_v14  ;;  %v5747_v12 = vld [vmem:[%s10692_s8 + $0x18] sm:$0xf] }
 0x304   :  { %4163 = vmatpush.bf16.msrb.mxu1 %v5968_v23  ;;  %v6027_v23 = vld [vmem:[%s10692_s8 + $0x248] sm:$0xf]  ;;  %v3885_v35 = vpop.f32.mrf.mxu1  ;;  %v6195_v15 = vld [vmem:[%s10692_s8 + $0x398] sm:$0xf] }
 0x305   :  { %4191 = vmatpush.bf16.msrb.mxu0 %v6416_v25  ;;  %v6475_v25 = vld [vmem:[%s10692_s8 + $0x5c8] sm:$0xf]  ;;  %v6028_v36 = vor.u32 %v6999_v8, %v6027_v23  ;;  %v3913_v42 = vpop.f32.mrf.mxu0 }
 0x306   :  { %4148 = vmatpush.bf16.msrb.mxu3 %v5772_v31  ;;  %v5831_v31 = vld [vmem:[%s10692_s8 + $0xc0] sm:$0xf] }
 0x307   :  { %4176 = vmatpush.bf16.msrb.mxu2 %v6220_v54  ;;  %4164 = vmatmul.bf16.vlgmr.msrb.gmra.mxu1 %v9567_v2  ;;  %v6279_v54 = vld [vmem:[%s10692_s8 + $0x440] sm:$0xf]  ;;  %v5832_v45 = vor.u32 %v6950_v34, %v5831_v31 }
 0x308   :  { %4212 = vmatpush.bf16.msra.mxu1 %v6168_v26  ;;  %4192 = vmatmul.bf16.vlgmr.msrb.gmra.mxu0 %v9575_v57  ;;  %v7111_v26 = vld [vmem:[%s10692_s8 + $0x5e0] sm:$0xf0]  ;;  %v6280_v32 = vor.u32 %v7062_v38, %v6279_v54 }
 0x309   :  { %4240 = vmatpush.bf16.msra.mxu0 %v6616_v30  ;;  %v6308_v30 = vor.u32 %v7069_v21, %v6307_v20  ;;  %v6476_v39 = vor.u32 %v7111_v26, %v6475_v25 }
 0x30a   :  { %4149 = vmatpush.bf16.msrb.mxu3 %v5744_v37  ;;  %v6943_v37 = vld [vmem:[%s10692_s8 + $0xa0] sm:$0xf0] }
 0x30b   :  { %4177 = vmatpush.bf16.msrb.mxu2 %v6192_v17  ;;  %v6000_v17 = vor.u32 %v6992_v44, %v5999_v41 }
 0x30c   :  { %4213 = vmatpush.bf16.msra.mxu1 %v6140_v46  ;;  %v6447_v46 = vld [vmem:[%s10692_s8 + $0x590] sm:$0xf]  ;;  %v3887_v7 = vpop.f32.mrf.mxu1 }
 0x30d   :  { %4241 = vmatpush.bf16.msra.mxu0 %v6588_v60  ;;  %4150 = vmatmul.bf16.vlgmr.msrb.gmra.mxu3 %v9609_v28  ;;  %v5803_v60 = vld [vmem:[%s10692_s8 + $0x88] sm:$0xf]  ;;  %v6448_v53 = vor.u32 %v7104_v27, %v6447_v46  ;;  %v3915_v20 = vpop.f32.mrf.mxu0 }
 0x30e   :  { %4198 = vmatpush.bf16.msra.mxu3 %v5944_v48  ;;  %4178 = vmatmul.bf16.vlgmr.msrb.gmra.mxu2 %v9617_v33  ;;  %v6251_v48 = vld [vmem:[%s10692_s8 + $0x408] sm:$0xf]  ;;  %v5804_v59 = vor.u32 %v6943_v37, %v5803_v60 }
 0x30f   :  { %4226 = vmatpush.bf16.msra.mxu2 %v6392_v52  ;;  %v6252_v0 = vor.u32 %v7055_v49, %v6251_v48 }
 0x310   :  { %4214 = vmatpush.bf16.msra.mxu1 %v6112_v58  ;;  %v3871_v47 = vpop.f32.mrf.mxu3  ;;  %v6985_v58 = vld [vmem:[%s10692_s8 + $0x1f0] sm:$0xf0] }
 0x311   :  { %4242 = vmatpush.bf16.msra.mxu0 %v6560_v62  ;;  %v3872_v51 = vadd.f32 %v3871_v47, %v2696_v40  ;;  %v3899_v52 = vpop.f32.mrf.mxu2  ;;  %v7097_v62 = vld [vmem:[%s10692_s8 + $0x570] sm:$0xf0]  ;;  %v5972_v3 = vor.u32 %v6985_v58, %v5971_v56 }
 0x312   :  { %4199 = vmatpush.bf16.msra.mxu3 %v5916_v1  ;;  %v5775_v1 = vld [vmem:[%s10692_s8 + $0x50] sm:$0xf] }
 0x313   :  { %4227 = vmatpush.bf16.msra.mxu2 %v6364_v4  ;;  %v3886_v63 = vadd.f32 %v3885_v35, %v3872_v51  ;;  %v6223_v4 = vld [vmem:[%s10692_s8 + $0x3d0] sm:$0xf]  ;;  %v5776_v9 = vor.u32 %v6936_v43, %v5775_v1  ;;  %v2698_v51 = vperm.slane %v10478_v29, 2 }
 0x314   :  { %4215 = vmatpush.bf16.msra.mxu1 %v6084_v6  ;;  %v6420_v6 = vor.u32 %v7097_v62, %v6419_v61  ;;  %v6224_v11 = vor.u32 %v7048_v5, %v6223_v4  ;;  %v3941_v26 = vpop.f32.mrf.mxu1 }
 0x315   :  { %4243 = vmatpush.bf16.msra.mxu0 %v6532_v10  ;;  %v3900_v55 = vadd.f32 %v3899_v52, %v3886_v63  ;;  %v3969_v54 = vpop.f32.mrf.mxu0 }
 0x316   :  { %4200 = vmatpush.bf16.msra.mxu3 %v5888_v13  ;;  %v6929_v13 = vld [vmem:[%s10692_s8 + $0x30] sm:$0xf0] }
 0x317   :  { %4228 = vmatpush.bf16.msra.mxu2 %v6336_v16  ;;  %v3914_v10 = vadd.f32 %v3913_v42, %v3900_v55  ;;  %v7041_v16 = vld [vmem:[%s10692_s8 + $0x3b0] sm:$0xf0]  ;;  %v5748_v21 = vor.u32 %v6929_v13, %v5747_v12 }
 0x318   :  { %4216 = vmatpush.bf16.msra.mxu1 %v6056_v19  ;;  %v3873_v14 = vpop.f32.mrf.mxu3  ;;  %v6196_v23 = vor.u32 %v7041_v16, %v6195_v15 }
 0x319   :  { %4244 = vmatpush.bf16.msra.mxu0 %v6504_v22  ;;  %v6617_v50 = vmul.f32 -1.442695, %v3914_v10  ;;  %v3874_v18 = vadd.f32 %v3873_v14, %v2696_v40  ;;  %v3901_v19 = vpop.f32.mrf.mxu2 }
 0x31a   :  { %4201 = vmatpush.bf16.msra.mxu3 %v5860_v24  ;;  %v2697_v24 = vperm.slane %v10478_v29, 1 }
 0x31b   :  { %4229 = vmatpush.bf16.msra.mxu2 %v6308_v30  ;;  %7151 = vpow2.f32 %v6617_v50  ;;  %v3888_v22 = vadd.f32 %v3887_v7, %v3874_v18 }
 0x31c   :  { %4217 = vmatpush.bf16.msra.mxu1 %v6028_v36  ;;  %v3943_v46 = vpop.f32.mrf.mxu1 }
 0x31d   :  { %4245 = vmatpush.bf16.msra.mxu0 %v6476_v39  ;;  %v3902_v8 = vadd.f32 %v3901_v19, %v3888_v22  ;;  %v3971_v37 = vpop.f32.mrf.mxu0 }
 0x31e   :  { %4202 = vmatpush.bf16.msra.mxu3 %v5832_v45 }
 0x31f   :  { %4230 = vmatpush.bf16.msra.mxu2 %v6280_v32  ;;  %v3916_v25 = vadd.f32 %v3915_v20, %v3902_v8 }
 0x320   :  { %4218 = vmatpush.bf16.msra.mxu1 %v6000_v17  ;;  %v3927_v30 = vpop.f32.mrf.mxu3 }
 0x321   :  { %4246 = vmatpush.bf16.msra.mxu0 %v6448_v53  ;;  %v7152_v31 = vpop.eup %7151  ;;  %v6624_v34 = vmul.f32 -1.442695, %v3916_v25  ;;  %v3928_v35 = vadd.f32 %v3927_v30, %v2697_v24  ;;  %v3955_v36 = vpop.f32.mrf.mxu2 }
 0x322   :  { %4203 = vmatpush.bf16.msra.mxu3 %v5804_v59 }
 0x323   :  { %4231 = vmatpush.bf16.msra.mxu2 %v6252_v0  ;;  %7153 = vpow2.f32 %v6624_v34 }
 0x324   :  { %4219 = vmatpush.bf16.msra.mxu1 %v5972_v3  ;;  %v3997_v56 = vpop.f32.mrf.mxu1 }
 0x325   :  { %4247 = vmatpush.bf16.msra.mxu0 %v6420_v6  ;;  %v4025_v7 = vpop.f32.mrf.mxu0 }
 0x326   :  { %4204 = vmatpush.bf16.msra.mxu3 %v5776_v9 }
 0x327   :  { %4232 = vmatpush.bf16.msra.mxu2 %v6224_v11  ;;  %4220 = vmatmul.bf16.vlgmr.msra.gmra.mxu1 %v9567_v2  ;;  %v10558_v2 = vadd.f32 1.0, %v7152_v31 }
 0x328   :  { %4248 = vmatmul.bf16.vlgmr.msra.gmra.mxu0 %v9575_v57  ;;  %v3942_v57 = vadd.f32 %v3941_v26, %v3928_v35  ;;  %v3929_v40 = vpop.f32.mrf.mxu3 }
 0x329   :  { %7155 = vrcp.f32 %v10558_v2  ;;  %v7154_v41 = vpop.eup %7153  ;;  %v3930_v45 = vadd.f32 %v3929_v40, %v2697_v24  ;;  %v3957_v32 = vpop.f32.mrf.mxu2  ;;  %vm4315_vm2 = vweird.f32 %v10558_v2  ;;  %v4319_v12 = vand.u32 2147483647, %v10558_v2 }
 0x32a   :  { %4205 = vmatpush.bf16.msra.mxu3 %v5748_v21  ;;  %v3956_v38 = vadd.f32 %v3955_v36, %v3942_v57  ;;  %v4321_v13 = vand.u32 2147483648, %v10558_v2 }
 0x32b   :  { %4233 = vmatpush.bf16.msra.mxu2 %v6196_v23  ;;  %v3944_v27 = vadd.f32 %v3943_v46, %v3930_v45  ;;  %vm4320_vm6 = vcmp.eq.f32.partialorder %v4319_v12, 8.507059e+37 }
 0x32c   :  { %v3970_v39 = vadd.f32 %v3969_v54, %v3956_v38  ;;  %v3999_v15 = vpop.f32.mrf.mxu1  ;;  %v4322_v24 = vor.u32 1.1754944e-38, %v4321_v13 }
 0x32d   :  { %4206 = vmatmul.bf16.vlgmr.msra.gmra.mxu3 %v9609_v28  ;;  %v10561_v28 = vadd.f32 1.0, %v7154_v41  ;;  %v3958_v60 = vadd.f32 %v3957_v32, %v3944_v27 }
 0x32e   :  { %4234 = vmatmul.bf16.vlgmr.msra.gmra.mxu2 %v9617_v33  ;;  %v6618_v44 = vmul.f32 -1.442695, %v3970_v39 }
 0x32f   :  { %v7156_v33 = vpop.eup %7155  ;;  %v3972_v42 = vadd.f32 %v3971_v37, %v3958_v60  ;;  %vm4420_vm10 = vweird.f32 %v10561_v28  ;;  %v4424_v39 = vand.u32 2147483647, %v10561_v28  ;;  %v4426_v40 = vand.u32 2147483648, %v10561_v28 }
 0x330   :  { %7157 = vpow2.f32 %v6618_v44  ;;  %v4311_v47 = vmul.f32 %v7156_v33, %v10558_v2  ;;  %v3983_v17 = vpop.f32.mrf.mxu3  ;;  %vm4316_vm1 = vweird.f32 %v7156_v33  ;;  %v4027_v44 = vpop.f32.mrf.mxu0  ;;  %v2699_v37 = vperm.slane %v10478_v29, 3 }
 0x331   :  { %7159 = vrcp.f32 %v10561_v28  ;;  %v6625_v49 = vmul.f32 -1.442695, %v3972_v42  ;;  %v3984_v58 = vadd.f32 %v3983_v17, %v2698_v51  ;;  %v4011_v62 = vpop.f32.mrf.mxu2  ;;  %vm10576_vm3 = vmor %vm4315_vm2, %vm4316_vm1  ;;  %vm4425_vm15 = vcmp.eq.f32.partialorder %v4424_v39, 8.507059e+37 }
 0x332   :  { %v4312_v53 = vsub.f32 1.0, %v4311_v47 }
 0x333   :  { %7161 = vpow2.f32 %v6625_v49  ;;  %v3998_v43 = vadd.f32 %v3997_v56, %v3984_v58 }
 0x334   :  { %v4313_v61 = vmul.f32 %v7156_v33, %v4312_v53 }
 0x335   :  { %v4012_v11 = vadd.f32 %v4011_v62, %v3998_v43 }
 0x336   :  { %v7158_v48 = vpop.eup %7157  ;;  %v4314_v6 = vadd.f32 %v7156_v33, %v4313_v61 }
 0x337   :  { %v4297_v52 = vadd.f32 1.0, %v7158_v48  ;;  %v10566_v59 = vpop.eup %7159  ;;  %v4026_v23 = vadd.f32 %v4025_v7, %v4012_v11 }
 0x338   :  { %v3985_v63 = vpop.f32.mrf.mxu3  ;;  %v4416_v1 = vmul.f32 %v10566_v59, %v10561_v28  ;;  %v4318_v20 = vsel %vm10576_vm3, %v7156_v33, %v4314_v6  ;;  %vm4421_vm9 = vweird.f32 %v10566_v59  ;;  %v4427_v28 = vor.u32 1.1754944e-38, %v4426_v40 }
 0x339   :  { %7163 = vrcp.f32 %v4297_v52  ;;  %v7162_v0 = vpop.eup %7161  ;;  %v3986_v55 = vadd.f32 %v3985_v63, %v2698_v51  ;;  %v4336_v14 = vand.u32 2147483648, %v4297_v52  ;;  %v4334_v18 = vand.u32 2147483647, %v4297_v52  ;;  %v4013_v26 = vpop.f32.mrf.mxu2  ;;  %vm4422_vm12 = vmor %vm4420_vm10, %vm4421_vm9 }
 0x33a   :  { %v10570_v4 = vadd.f32 1.0, %v7162_v0  ;;  %v4417_v9 = vsub.f32 1.0, %v4416_v1  ;;  %vm4330_vm5 = vweird.f32 %v4297_v52  ;;  %v4323_v35 = vsel %vm4320_vm6, %v4322_v24, %v4318_v20 }
 0x33b   :  { %v4000_v19 = vadd.f32 %v3999_v15, %v3986_v55  ;;  %v4337_v25 = vor.u32 1.1754944e-38, %v4336_v14  ;;  %vm4335_vm8 = vcmp.eq.f32.partialorder %v4334_v18, 8.507059e+37  ;;  %v6619_v38 = vmul.f32 -1.442695, %v4026_v23 }
 0x33c   :  { %7165 = vrcp.f32 %v10570_v4  ;;  %v4418_v21 = vmul.f32 %v10566_v59, %v4417_v9  ;;  %v4441_v41 = vand.u32 2147483648, %v10570_v4  ;;  %v4439_v46 = vand.u32 2147483647, %v10570_v4 }
 0x33d   :  { %v4014_v34 = vadd.f32 %v4013_v26, %v4000_v19  ;;  %vm4435_vm13 = vweird.f32 %v10570_v4  ;;  %7167 = vpow2.f32 %v6619_v38 }
 0x33e   :  { %v4419_v2 = vadd.f32 %v10566_v59, %v4418_v21  ;;  %v4442_v60 = vor.u32 1.1754944e-38, %v4441_v41  ;;  %vm4440_vm0 = vcmp.eq.f32.partialorder %v4439_v46, 8.507059e+37 }
 0x33f   :  { %v7164_v3 = vpop.eup %7163  ;;  %v4028_v27 = vadd.f32 %v4027_v44, %v4014_v34 }
 0x340   :  { %v4326_v5 = vmul.f32 %v7164_v3, %v4297_v52  ;;  %vm4331_vm4 = vweird.f32 %v7164_v3  ;;  %v4423_v32 = vsel %vm4422_vm12, %v10566_v59, %v4419_v2 }
 0x341   :  { %vm4332_vm7 = vmor %vm4330_vm5, %vm4331_vm4  ;;  %v6626_v47 = vmul.f32 -1.442695, %v4028_v27  ;;  %v4428_v17 = vsel %vm4425_vm15, %v4427_v28, %v4423_v32 }
 0x342   :  { %v4327_v10 = vsub.f32 1.0, %v4326_v5  ;;  %v7166_v8 = vpop.eup %7165 }
 0x343   :  { %v4431_v31 = vmul.f32 %v7166_v8, %v10570_v4  ;;  %vm4436_vm11 = vweird.f32 %v7166_v8  ;;  %v7168_v53 = vpop.eup %7167  ;;  %7169 = vpow2.f32 %v6626_v47 }
 0x344   :  { %v4328_v50 = vmul.f32 %v7164_v3, %v4327_v10  ;;  %vm4437_vm14 = vmor %vm4435_vm13, %vm4436_vm11  ;;  %v4053_v51 = vpop.f32.mrf.mxu1  ;;  %v4298_v62 = vadd.f32 1.0, %v7168_v53 }
 0x345   :  { %v4432_v54 = vsub.f32 1.0, %v4431_v31  ;;  %v4081_v59 = vpop.f32.mrf.mxu0 }
 0x346   :  { %v4329_v22 = vadd.f32 %v7164_v3, %v4328_v50  ;;  %7171 = vrcp.f32 %v4298_v62  ;;  %vm4345_vm2 = vweird.f32 %v4298_v62  ;;  %v4349_v34 = vand.u32 2147483647, %v4298_v62 }
 0x347   :  { %v4433_v45 = vmul.f32 %v7166_v8, %v4432_v54 }
 0x348   :  { %v4333_v30 = vsel %vm4332_vm7, %v7164_v3, %v4329_v22  ;;  %vm4350_vm6 = vcmp.eq.f32.partialorder %v4349_v34, 8.507059e+37 }
 0x349   :  { %v4338_v36 = vsel %vm4335_vm8, %v4337_v25, %v4333_v30  ;;  %v4434_v33 = vadd.f32 %v7166_v8, %v4433_v45  ;;  %v7170_v0 = vpop.eup %7169  ;;  %v2700_v25 = vperm.slane %v10478_v29, 4 }
 0x34a   :  { %v4520_v57 = vpack.c.bf16 %v4338_v36, %v4323_v35  ;;  %v10602_v55 = vadd.f32 1.0, %v7170_v0  ;;  %v4351_v35 = vand.u32 2147483648, %v4298_v62 }
 0x34b   :  { %v4438_v42 = vsel %vm4437_vm14, %v7166_v8, %v4434_v33 }
 0x34c   :  { %4528 = vst [vmem:[%s10697_s10] sm:$0xff] %v4520_v57  ;;  %v4443_v48 = vsel %vm4440_vm0, %v4442_v60, %v4438_v42  ;;  %v4055_v4 = vpop.f32.mrf.mxu1  ;;  %v7172_v11 = vpop.eup %7171  ;;  %v4352_v46 = vor.u32 1.1754944e-38, %v4351_v35  ;;  %vm4450_vm10 = vweird.f32 %v10602_v55 }
 0x34d   :  { %v4524_v49 = vpack.c.bf16 %v4443_v48, %v4428_v17  ;;  %v4083_v10 = vpop.f32.mrf.mxu0  ;;  %v4341_v15 = vmul.f32 %v7172_v11, %v4298_v62  ;;  %vm4346_vm1 = vweird.f32 %v7172_v11  ;;  %v4456_v17 = vand.u32 2147483648, %v10602_v55 }
 0x34e   :  { %vm10611_vm4 = vmor %vm4345_vm2, %vm4346_vm1 }
 0x34f   :  { %4533 = vst [vmem:[%s10697_s10 + $0x1c] sm:$0xff] %v4524_v49  ;;  %v4342_v18 = vsub.f32 1.0, %v4341_v15 }
 0x350   :  { %v4039_v52 = vpop.f32.mrf.mxu3 }
 0x351   :  { %v4040_v56 = vadd.f32 %v4039_v52, %v2699_v37  ;;  %v4067_v58 = vpop.f32.mrf.mxu2  ;;  %v4343_v21 = vmul.f32 %v7172_v11, %v4342_v18 }
 0x353   :  { %v4054_v61 = vadd.f32 %v4053_v51, %v4040_v56  ;;  %v4344_v30 = vadd.f32 %v7172_v11, %v4343_v21  ;;  %v4454_v56 = vand.u32 2147483647, %v10602_v55 }
 0x355   :  { %v4068_v63 = vadd.f32 %v4067_v58, %v4054_v61  ;;  %v4348_v41 = vsel %vm10611_vm4, %v7172_v11, %v4344_v30  ;;  %vm4455_vm15 = vcmp.eq.f32.partialorder %v4454_v56, 8.507059e+37 }
 0x356   :  { %v4353_v60 = vsel %vm4350_vm6, %v4352_v46, %v4348_v41 }
 0x357   :  { %v4082_v1 = vadd.f32 %v4081_v59, %v4068_v63 }
 0x358   :  { %v4041_v43 = vpop.f32.mrf.mxu3 }
 0x359   :  { %v4042_v3 = vadd.f32 %v4041_v43, %v2699_v37  ;;  %v6620_v5 = vmul.f32 -1.442695, %v4082_v1  ;;  %v4069_v7 = vpop.f32.mrf.mxu2  ;;  %v4457_v1 = vor.u32 1.1754944e-38, %v4456_v17  ;;  %v2702_v17 = vperm.slane %v10478_v29, 6 }
 0x35b   :  { %v4056_v6 = vadd.f32 %v4055_v4, %v4042_v3  ;;  %7173 = vpow2.f32 %v6620_v5 }
 0x35c   :  { %7175 = vrcp.f32 %v10602_v55 }
 0x35d   :  { %v4070_v9 = vadd.f32 %v4069_v7, %v4056_v6 }
 0x35f   :  { %v4084_v12 = vadd.f32 %v4083_v10, %v4070_v9 }
 0x361   :  { %v6627_v13 = vmul.f32 -1.442695, %v4084_v12  ;;  %v7174_v14 = vpop.eup %7173 }
 0x362   :  { %v4299_v16 = vadd.f32 1.0, %v7174_v14  ;;  %v10605_v50 = vpop.eup %7175 }
 0x363   :  { %7177 = vpow2.f32 %v6627_v13  ;;  %v4446_v19 = vmul.f32 %v10605_v50, %v10602_v55  ;;  %vm4451_vm8 = vweird.f32 %v10605_v50 }
 0x364   :  { %7179 = vrcp.f32 %v4299_v16  ;;  %v4366_v36 = vand.u32 2147483648, %v4299_v16  ;;  %v4364_v54 = vand.u32 2147483647, %v4299_v16  ;;  %vm4360_vm5 = vweird.f32 %v4299_v16  ;;  %v4109_v45 = vpop.f32.mrf.mxu1  ;;  %vm10621_vm11 = vmor %vm4450_vm10, %vm4451_vm8 }
 0x365   :  { %v4447_v8 = vsub.f32 1.0, %v4446_v19  ;;  %v4137_v3 = vpop.f32.mrf.mxu0 }
 0x366   :  { %v4367_v27 = vor.u32 1.1754944e-38, %v4366_v36  ;;  %vm4365_vm9 = vcmp.eq.f32.partialorder %v4364_v54, 8.507059e+37 }
 0x367   :  { %v4448_v2 = vmul.f32 %v10605_v50, %v4447_v8 }
 0x369   :  { %v7178_v20 = vpop.eup %7177  ;;  %v4449_v33 = vadd.f32 %v10605_v50, %v4448_v2 }
 0x36a   :  { %v4306_v22 = vadd.f32 1.0, %v7178_v20  ;;  %v7180_v23 = vpop.eup %7179 }
 0x36b   :  { %v4356_v24 = vmul.f32 %v7180_v23, %v4299_v16  ;;  %vm4361_vm3 = vweird.f32 %v7180_v23  ;;  %v4453_v61 = vsel %vm10621_vm11, %v10605_v50, %v4449_v33  ;;  %v2701_v16 = vperm.slane %v10478_v29, 5 }
 0x36c   :  { %7181 = vrcp.f32 %v4306_v22  ;;  %vm4362_vm7 = vmor %vm4360_vm5, %vm4361_vm3  ;;  %v4471_v49 = vand.u32 2147483648, %v4306_v22  ;;  %v4469_v59 = vand.u32 2147483647, %v4306_v22  ;;  %vm4465_vm13 = vweird.f32 %v4306_v22  ;;  %v4111_v6 = vpop.f32.mrf.mxu1 }
 0x36d   :  { %v4357_v31 = vsub.f32 1.0, %v4356_v24  ;;  %v4458_v5 = vsel %vm4455_vm15, %v4457_v1, %v4453_v61  ;;  %v4139_v14 = vpop.f32.mrf.mxu0 }
 0x36e   :  { %v4472_v43 = vor.u32 1.1754944e-38, %v4471_v49  ;;  %vm4470_vm0 = vcmp.eq.f32.partialorder %v4469_v59, 8.507059e+37 }
 0x36f   :  { %v4358_v57 = vmul.f32 %v7180_v23, %v4357_v31 }
 0x370   :  { %v4095_v26 = vpop.f32.mrf.mxu3 }
 0x371   :  { %v4096_v39 = vadd.f32 %v4095_v26, %v2700_v25  ;;  %v4359_v44 = vadd.f32 %v7180_v23, %v4358_v57  ;;  %v4123_v51 = vpop.f32.mrf.mxu2 }
 0x372   :  { %v7182_v40 = vpop.eup %7181 }
 0x373   :  { %v4461_v32 = vmul.f32 %v7182_v40, %v4306_v22  ;;  %v4363_v28 = vsel %vm4362_vm7, %v7180_v23, %v4359_v44  ;;  %v4110_v47 = vadd.f32 %v4109_v45, %v4096_v39  ;;  %vm4466_vm12 = vweird.f32 %v7182_v40 }
 0x374   :  { %v4368_v37 = vsel %vm4365_vm9, %v4367_v27, %v4363_v28  ;;  %vm4467_vm14 = vmor %vm4465_vm13, %vm4466_vm12 }
 0x375   :  { %v4462_v42 = vsub.f32 1.0, %v4461_v32  ;;  %v4521_v48 = vpack.c.bf16 %v4368_v37, %v4353_v60  ;;  %v4124_v63 = vadd.f32 %v4123_v51, %v4110_v47 }
 0x377   :  { %v4463_v58 = vmul.f32 %v7182_v40, %v4462_v42  ;;  %4529 = vst [vmem:[%s10697_s10 + $0x8] sm:$0xff] %v4521_v48  ;;  %v4138_v9 = vadd.f32 %v4137_v3, %v4124_v63 }
 0x378   :  { %v4097_v52 = vpop.f32.mrf.mxu3 }
 0x379   :  { %v4464_v62 = vadd.f32 %v7182_v40, %v4463_v58  ;;  %v4098_v0 = vadd.f32 %v4097_v52, %v2700_v25  ;;  %v4125_v11 = vpop.f32.mrf.mxu2  ;;  %v6621_v12 = vmul.f32 -1.442695, %v4138_v9 }
 0x37b   :  { %v4468_v4 = vsel %vm4467_vm14, %v7182_v40, %v4464_v62  ;;  %v4112_v10 = vadd.f32 %v4111_v6, %v4098_v0  ;;  %7183 = vpow2.f32 %v6621_v12 }
 0x37c   :  { %v4473_v55 = vsel %vm4470_vm0, %v4472_v43, %v4468_v4 }
 0x37d   :  { %v4525_v7 = vpack.c.bf16 %v4473_v55, %v4458_v5  ;;  %v4126_v13 = vadd.f32 %v4125_v11, %v4112_v10 }
 0x37f   :  { %4534 = vst [vmem:[%s10697_s10 + $0x24] sm:$0xff] %v4525_v7  ;;  %v4140_v15 = vadd.f32 %v4139_v14, %v4126_v13 }
 0x381   :  { %v6628_v50 = vmul.f32 -1.442695, %v4140_v15  ;;  %v7184_v20 = vpop.eup %7183 }
 0x382   :  { %v4300_v8 = vadd.f32 1.0, %v7184_v20 }
 0x383   :  { %7185 = vpow2.f32 %v6628_v50 }
 0x384   :  { %v4165_v18 = vpop.f32.mrf.mxu1  ;;  %7187 = vrcp.f32 %v4300_v8  ;;  %vm4375_vm2 = vweird.f32 %v4300_v8  ;;  %v4381_v58 = vand.u32 2147483648, %v4300_v8  ;;  %v4379_v62 = vand.u32 2147483647, %v4300_v8 }
 0x385   :  { %v4193_v24 = vpop.f32.mrf.mxu0 }
 0x386   :  { %v4382_v7 = vor.u32 1.1754944e-38, %v4381_v58  ;;  %vm4380_vm7 = vcmp.eq.f32.partialorder %v4379_v62, 8.507059e+37 }
 0x389   :  { %v7186_v31 = vpop.eup %7185 }
 0x38a   :  { %v10636_v57 = vadd.f32 1.0, %v7186_v31  ;;  %v7188_v39 = vpop.eup %7187 }
 0x38b   :  { %v4371_v45 = vmul.f32 %v7188_v39, %v4300_v8  ;;  %vm4376_vm1 = vweird.f32 %v7188_v39 }
 0x38c   :  { %v4167_v36 = vpop.f32.mrf.mxu1  ;;  %vm10647_vm4 = vmor %vm4375_vm2, %vm4376_vm1  ;;  %vm4480_vm9 = vweird.f32 %v10636_v57  ;;  %v4486_v20 = vand.u32 2147483648, %v10636_v57  ;;  %v4484_v8 = vand.u32 2147483647, %v10636_v57 }
 0x38d   :  { %v4195_v40 = vpop.f32.mrf.mxu0  ;;  %v4372_v32 = vsub.f32 1.0, %v4371_v45 }
 0x38e   :  { %vm4485_vm15 = vcmp.eq.f32.partialorder %v4484_v8, 8.507059e+37 }
 0x38f   :  { %v4373_v60 = vmul.f32 %v7188_v39, %v4372_v32 }
 0x390   :  { %v4151_v19 = vpop.f32.mrf.mxu3 }
 0x391   :  { %v4152_v21 = vadd.f32 %v4151_v19, %v2701_v16  ;;  %v4179_v22 = vpop.f32.mrf.mxu2  ;;  %v4374_v49 = vadd.f32 %v7188_v39, %v4373_v60 }
 0x393   :  { %v4166_v23 = vadd.f32 %v4165_v18, %v4152_v21  ;;  %v4378_v3 = vsel %vm10647_vm4, %v7188_v39, %v4374_v49 }
 0x394   :  { %v4383_v13 = vsel %vm4380_vm7, %v4382_v7, %v4378_v3 }
 0x395   :  { %v4180_v25 = vadd.f32 %v4179_v22, %v4166_v23 }
 0x397   :  { %v4194_v26 = vadd.f32 %v4193_v24, %v4180_v25 }
 0x398   :  { %v4153_v30 = vpop.f32.mrf.mxu3 }
 0x399   :  { %v6622_v34 = vmul.f32 -1.442695, %v4194_v26  ;;  %v4154_v35 = vadd.f32 %v4153_v30, %v2701_v16  ;;  %v4181_v54 = vpop.f32.mrf.mxu2 }
 0x39b   :  { %7189 = vpow2.f32 %v6622_v34  ;;  %v4168_v2 = vadd.f32 %v4167_v36, %v4154_v35 }
 0x39c   :  { %7191 = vrcp.f32 %v10636_v57 }
 0x39d   :  { %v4182_v38 = vadd.f32 %v4181_v54, %v4168_v2  ;;  %v4487_v2 = vor.u32 1.1754944e-38, %v4486_v20 }
 0x39f   :  { %v4196_v41 = vadd.f32 %v4195_v40, %v4182_v38 }
 0x3a1   :  { %v7190_v44 = vpop.eup %7189  ;;  %v6629_v46 = vmul.f32 -1.442695, %v4196_v41 }
 0x3a2   :  { %v4301_v27 = vadd.f32 1.0, %v7190_v44  ;;  %v10639_v33 = vpop.eup %7191 }
 0x3a3   :  { %7193 = vpow2.f32 %v6629_v46  ;;  %v4476_v37 = vmul.f32 %v10639_v33, %v10636_v57  ;;  %vm4481_vm10 = vweird.f32 %v10639_v33 }
 0x3a4   :  { %7195 = vrcp.f32 %v4301_v27  ;;  %v4221_v53 = vpop.f32.mrf.mxu1  ;;  %v4396_v59 = vand.u32 2147483648, %v4301_v27  ;;  %v4394_v0 = vand.u32 2147483647, %v4301_v27  ;;  %vm4390_vm5 = vweird.f32 %v4301_v27  ;;  %vm10667_vm12 = vmor %vm4480_vm9, %vm4481_vm10 }
 0x3a5   :  { %v4477_v51 = vsub.f32 1.0, %v4476_v37  ;;  %v4249_v55 = vpop.f32.mrf.mxu0 }
 0x3a6   :  { %v4397_v9 = vor.u32 1.1754944e-38, %v4396_v59  ;;  %vm4395_vm8 = vcmp.eq.f32.partialorder %v4394_v0, 8.507059e+37 }
 0x3a7   :  { %v4478_v4 = vmul.f32 %v10639_v33, %v4477_v51 }
 0x3a9   :  { %v7194_v28 = vpop.eup %7193  ;;  %v4479_v16 = vadd.f32 %v10639_v33, %v4478_v4 }
 0x3aa   :  { %v7196_v42 = vpop.eup %7195  ;;  %v10643_v47 = vadd.f32 1.0, %v7194_v28 }
 0x3ab   :  { %v4386_v48 = vmul.f32 %v7196_v42, %v4301_v27  ;;  %vm4391_vm3 = vweird.f32 %v7196_v42  ;;  %v4483_v34 = vsel %vm10667_vm12, %v10639_v33, %v4479_v16 }
 0x3ac   :  { %7197 = vrcp.f32 %v10643_v47  ;;  %vm4392_vm6 = vmor %vm4390_vm5, %vm4391_vm3  ;;  %v4501_v21 = vand.u32 2147483648, %v10643_v47  ;;  %v4499_v25 = vand.u32 2147483647, %v10643_v47  ;;  %v4223_v26 = vpop.f32.mrf.mxu1  ;;  %vm4495_vm13 = vweird.f32 %v10643_v47 }
 0x3ad   :  { %v4387_v52 = vsub.f32 1.0, %v4386_v48  ;;  %v4251_v39 = vpop.f32.mrf.mxu0  ;;  %v4488_v40 = vsel %vm4485_vm15, %v4487_v2, %v4483_v34  ;;  %vm4531_vm5 = vcmask 125952  }
 0x3ae   :  { %v4502_v54 = vor.u32 1.1754944e-38, %v4501_v21  ;;  %vm4500_vm0 = vcmp.eq.f32.partialorder %v4499_v25, 8.507059e+37 }
 0x3af   :  { %v4388_v63 = vmul.f32 %v7196_v42, %v4387_v52 }
 0x3b0   :  { %v4207_v56 = vpop.f32.mrf.mxu3 }
 0x3b1   :  { %v4208_v61 = vadd.f32 %v4207_v56, %v2702_v17  ;;  %v4235_v1 = vpop.f32.mrf.mxu2  ;;  %v4389_v5 = vadd.f32 %v7196_v42, %v4388_v63 }
 0x3b2   :  { %v7198_v6 = vpop.eup %7197 }
 0x3b3   :  { %v4222_v43 = vadd.f32 %v4221_v53, %v4208_v61  ;;  %v4393_v11 = vsel %vm4392_vm6, %v7196_v42, %v4389_v5  ;;  %v4491_v12 = vmul.f32 %v7198_v6, %v10643_v47  ;;  %vm4496_vm11 = vweird.f32 %v7198_v6 }
 0x3b4   :  { %v4398_v14 = vsel %vm4395_vm8, %v4397_v9, %v4393_v11  ;;  %vm4497_vm14 = vmor %vm4495_vm13, %vm4496_vm11 }
 0x3b5   :  { %v4236_v10 = vadd.f32 %v4235_v1, %v4222_v43  ;;  %v4522_v50 = vpack.c.bf16 %v4398_v14, %v4383_v13  ;;  %v4492_v18 = vsub.f32 1.0, %v4491_v12 }
 0x3b7   :  { %v4250_v15 = vadd.f32 %v4249_v55, %v4236_v10  ;;  %4530 = vst [vmem:[%s10697_s10 + $0x10] sm:$0xff] %v4522_v50  ;;  %v4493_v24 = vmul.f32 %v7198_v6, %v4492_v18 }
 0x3b8   :  { %v4209_v19 = vpop.f32.mrf.mxu3 }
 0x3b9   :  { %v6623_v22 = vmul.f32 -1.442695, %v4250_v15  ;;  %v4210_v23 = vadd.f32 %v4209_v19, %v2702_v17  ;;  %v4494_v35 = vadd.f32 %v7198_v6, %v4493_v24  ;;  %v4237_v36 = vpop.f32.mrf.mxu2 }
 0x3bb   :  { %7199 = vpow2.f32 %v6623_v22  ;;  %v4224_v31 = vadd.f32 %v4223_v26, %v4210_v23  ;;  %v4498_v57 = vsel %vm4497_vm14, %v7198_v6, %v4494_v35 }
 0x3bc   :  { %v4503_v41 = vsel %vm4500_vm0, %v4502_v54, %v4498_v57 }
 0x3bd   :  { %v4238_v38 = vadd.f32 %v4237_v36, %v4224_v31  ;;  %v4526_v45 = vpack.c.bf16 %v4503_v41, %v4488_v40 }
 0x3bf   :  { %v4252_v44 = vadd.f32 %v4251_v39, %v4238_v38  ;;  %4535 = vst [vmem:[%s10697_s10 + $0x2c] sm:$0xff] %v4526_v45 }
 0x3c1   :  { %v7200_v46 = vpop.eup %7199  ;;  %v6630_v27 = vmul.f32 -1.442695, %v4252_v44 }
 0x3c2   :  { %v4302_v32 = vadd.f32 1.0, %v7200_v46 }
 0x3c3   :  { %7201 = vpow2.f32 %v6630_v27 }
 0x3c4   :  { %7203 = vrcp.f32 %v4302_v32  ;;  %v4411_v47 = vand.u32 2147483648, %v4302_v32  ;;  %v4409_v48 = vand.u32 2147483647, %v4302_v32  ;;  %vm4405_vm2 = vweird.f32 %v4302_v32 }
 0x3c6   :  { %v4412_v52 = vor.u32 1.1754944e-38, %v4411_v47  ;;  %vm4410_vm4 = vcmp.eq.f32.partialorder %v4409_v48, 8.507059e+37 }
 0x3c9   :  { %v7202_v33 = vpop.eup %7201 }
 0x3ca   :  { %v7204_v28 = vpop.eup %7203  ;;  %v4309_v60 = vadd.f32 1.0, %v7202_v33 }
 0x3cb   :  { %v4401_v37 = vmul.f32 %v7204_v28, %v4302_v32  ;;  %vm4406_vm1 = vweird.f32 %v7204_v28 }
 0x3cc   :  { %7205 = vrcp.f32 %v4309_v60  ;;  %vm4407_vm3 = vmor %vm4405_vm2, %vm4406_vm1  ;;  %v4516_v62 = vand.u32 2147483648, %v4309_v60  ;;  %v4514_v0 = vand.u32 2147483647, %v4309_v60  ;;  %vm4510_vm7 = vweird.f32 %v4309_v60 }
 0x3cd   :  { %v4402_v42 = vsub.f32 1.0, %v4401_v37 }
 0x3ce   :  { %v4517_v29 = vor.u32 1.1754944e-38, %v4516_v62  ;;  %vm4515_vm9 = vcmp.eq.f32.partialorder %v4514_v0, 8.507059e+37 }
 0x3cf   :  { %v4403_v17 = vmul.f32 %v7204_v28, %v4402_v42 }
 0x3d1   :  { %v4404_v49 = vadd.f32 %v7204_v28, %v4403_v17 }
 0x3d2   :  { %v7206_v51 = vpop.eup %7205 }
 0x3d3   :  { %v4408_v53 = vsel %vm4407_vm3, %v7204_v28, %v4404_v49  ;;  %v4506_v56 = vmul.f32 %v7206_v51, %v4309_v60  ;;  %vm4511_vm6 = vweird.f32 %v7206_v51 }
 0x3d4   :  { %v4413_v58 = vsel %vm4410_vm4, %v4412_v52, %v4408_v53  ;;  %vm4512_vm8 = vmor %vm4510_vm7, %vm4511_vm6 }
 0x3d5   :  { %v4523_v59 = vpack.c.bf16 %v4413_v58, %v4413_v58  ;;  %v4507_v61 = vsub.f32 1.0, %v4506_v56 }
 0x3d7   :  { %4532 = vst.msk [vmem:[%s10697_s10 + $0x18] sm:$0xf] %vm4531_vm5, %v4523_v59  ;;  %v4508_v63 = vmul.f32 %v7206_v51, %v4507_v61 }
 0x3d9   :  { %v4509_v1 = vadd.f32 %v7206_v51, %v4508_v63 }
 0x3db   :  { %v4513_v43 = vsel %vm4512_vm8, %v7206_v51, %v4509_v1 }
 0x3dc   :  { %v4518_v3 = vsel %vm4515_vm9, %v4517_v29, %v4513_v43 }
 0x3dd   :  { %v4527_v4 = vpack.c.bf16 %v4518_v3, %v4518_v3 }
 0x3df   :  { %4536 = vst.msk [vmem:[%s10697_s10 + $0x34] sm:$0xf] %vm4531_vm5, %v4527_v4 }

</bundles_post_ra>
